<compile_context>
chip_gen: v6e
topology: v6e:2x2x1
jax: 0.10.0
libtpu: 0.0.40
codegen_flags: <defaults>
</compile_context>

<pallas_src>
import functools
import math

import jax
import jax.numpy as jnp
from jax.experimental import pallas as pl
from jax.experimental.pallas import tpu as pltpu


def _vmem_cap_bytes():
    try:
        return int(pltpu.get_tpu_info().vmem_capacity_bytes)
    except Exception:
        return 64 * 1024 * 1024  # safe for v5e/v6e/v7x


# ---------------------------------------------------------------------------
# Fast path: stride >= kernel, padding == 0, output_padding == 0
# (taps never overlap; gaps, if any, are bias-only positions)
# ---------------------------------------------------------------------------

def _fused_upsample_kernel(x_ref, w_ref, s_ref, b_ref, a_ref, o_ref, *,
                           rows_in, stride, kH, kW, Cout, out_rows):
    """One image x one row-tile: GEMM + tap spreading + bias + PReLU, written
    straight into the final NCHW output block (single HBM pass for the output).

    x_ref: (Cin, rows_in, W)        input rows of one image
    w_ref: (kH*kW*Cout, Cin)        weight rows ordered (kh, kw, cout) -- resident
    s_ref: (kW, W, Wout)            0/1 spread matrices: S[kw, j, j*stride + kw] = 1
    b_ref: (Cout, 1)                bias column -- resident
    a_ref: (1,) SMEM                PReLU slope (single shared parameter)
    o_ref: (Cout, out_rows, Wout)   block of the final (N, Cout, Hout, Wout) output
    """
    alpha = a_ref[0]
    bcol = b_ref[...]                                       # (Cout, 1)
    if stride > kH:
        # Gap rows receive only bias; hoist the broadcast out of the loops.
        gap = jnp.where(bcol > 0, bcol, alpha * bcol)
        gap_row = jnp.broadcast_to(gap, (Cout, o_ref.shape[-1]))

    for ri in range(rows_in):                               # static unroll (<= 8)
        x_row = x_ref[:, ri, :]                             # (Cin, W)
        for kh in range(kH):                                # static
            row = ri * stride + kh
            if row >= out_rows:
                continue                                    # truncated tail rows
            acc = None
            for kw in range(kW):                            # static
                base = (kh * kW + kw) * Cout
                taps = jnp.dot(w_ref[base:base + Cout, :], x_row,
                               preferred_element_type=jnp.float32)      # (Cout, W)
                spread = jnp.dot(taps, s_ref[kw],
                                 preferred_element_type=jnp.float32)    # (Cout, Wout)
                acc = spread if acc is None else acc + spread
            y = acc + bcol
            # TODO(synk): per-row stores are 1-of-8 sublane dense in VMEM; batching
            # ceil(8/kH) rows per store would make them dense (the HBM writeback is
            # already one dense DMA per block either way).
            o_ref[:, row, :] = jnp.where(y > 0, y, alpha * y)
        if stride > kH:
            for dh in range(kH, stride):                    # bias-only gap rows
                row = ri * stride + dh
                if row < out_rows:
                    o_ref[:, row, :] = gap_row


def _fast_path(x, weight, bias, alpha, *, stride):
    N, Cin, H, W = x.shape
    _, Cout, kH, kW = weight.shape
    s = stride
    Hout = (H - 1) * s + kH
    Wout = (W - 1) * s + kW
    Ncol = kH * kW * Cout

    # Weight rows ordered (kh, kw, cout) so per-(kh, kw) slabs are contiguous ref slices.
    w2 = jnp.transpose(weight, (2, 3, 1, 0)).reshape(Ncol, Cin).astype(jnp.float32)
    # 0/1 spread matrices: input column j lands at output column j*s + kw.
    jidx = jnp.arange(W)
    s_mats = jnp.zeros((kW, W, Wout), jnp.float32)
    for kw in range(kW):
        s_mats = s_mats.at[kw, jidx, jidx * s + kw].set(1.0)
    b_col = bias.astype(jnp.float32).reshape(Cout, 1)
    a1 = jnp.asarray(alpha, jnp.float32).reshape(1)

    # Row tile: 8 input rows keeps every block (8,128)-legal; whole image if tiny.
    r = 8 if H >= 8 else H
    grid_h = pl.cdiv(H, r)
    out_rows = r * s if r < H else Hout           # output-block row extent

    x_blk = 4 * Cin * r * W
    o_blk = 4 * Cout * out_rows * Wout
    resident = 4 * (w2.size + s_mats.size + Cout + 1)
    cap = _vmem_cap_bytes()
    vmem_limit = int(min(cap, max(32 * 1024 * 1024,
                                  2 * (x_blk + o_blk) + resident + (4 << 20))))

    kernel = functools.partial(_fused_upsample_kernel, rows_in=r, stride=s,
                               kH=kH, kW=kW, Cout=Cout, out_rows=out_rows)

    flops = 2 * N * H * W * Cin * Ncol + 2 * N * H * kH * kW * Cout * W * Wout
    bytes_accessed = 4 * (x.size + w2.size + s_mats.size + Cout + 1
                          + N * Cout * Hout * Wout)

    return pl.pallas_call(
        kernel,
        out_shape=jax.ShapeDtypeStruct((N, Cout, Hout, Wout), jnp.float32),
        grid=(N, grid_h),
        in_specs=[
            pl.BlockSpec((None, Cin, r, W), lambda n, t: (n, 0, t, 0)),
            pl.BlockSpec((Ncol, Cin), lambda n, t: (0, 0)),
            pl.BlockSpec((kW, W, Wout), lambda n, t: (0, 0, 0)),
            pl.BlockSpec((Cout, 1), lambda n, t: (0, 0)),
            pl.BlockSpec(memory_space=pltpu.MemorySpace.SMEM),
        ],
        out_specs=pl.BlockSpec((None, Cout, out_rows, Wout), lambda n, t: (n, 0, t, 0)),
        compiler_params=pltpu.CompilerParams(
            dimension_semantics=("parallel", "parallel"),
            vmem_limit_bytes=vmem_limit),
        cost_estimate=pl.CostEstimate(flops=flops, transcendentals=0,
                                      bytes_accessed=bytes_accessed),
    )(x.astype(jnp.float32), w2, s_mats, b_col, a1)


# ---------------------------------------------------------------------------
# General path: overlapping taps (stride < kernel) or padding / output_padding
# ---------------------------------------------------------------------------

def _transconv_matmul_kernel(x_ref, w_ref, o_ref):
    o_ref[...] = jnp.dot(w_ref[...], x_ref[...], preferred_element_type=jnp.float32)


def _bias_prelu_kernel(y_ref, b_ref, a_ref, o_ref):
    y = y_ref[...] + b_ref[...]
    alpha = a_ref[0]
    o_ref[...] = jnp.where(y > 0, y, alpha * y)


def _general_path(x, weight, bias, alpha, *, stride, padding, output_padding):
    N, Cin, H, W = x.shape
    _, Cout, kH, kW = weight.shape
    s = stride
    Hout = (H - 1) * s - 2 * padding + kH + output_padding
    Wout = (W - 1) * s - 2 * padding + kW + output_padding
    P = H * W
    Ncol = Cout * kH * kW

    x3 = x.reshape(N, Cin, P).astype(jnp.float32)
    w2 = jnp.transpose(weight.reshape(Cin, Ncol)).astype(jnp.float32)  # (Ncol, Cin)
    a1 = jnp.asarray(alpha, jnp.float32).reshape(1)

    # Pixel tile: multiple of 128 lanes (cdiv grid, masked last tile), or full P if tiny.
    TP = min(1024, (P // 128) * 128) if P >= 128 else P
    grid = (N, pl.cdiv(P, TP))
    cap = _vmem_cap_bytes()
    vmem_limit = int(min(cap, max(32 * 1024 * 1024,
                                  2 * 4 * (Cin + Ncol) * TP + 4 * w2.size + (4 << 20))))

    contrib = pl.pallas_call(
        _transconv_matmul_kernel,
        out_shape=jax.ShapeDtypeStruct((N, Ncol, P), jnp.float32),
        grid=grid,
        in_specs=[pl.BlockSpec((None, Cin, TP), lambda n, p: (n, 0, p)),
                  pl.BlockSpec((Ncol, Cin), lambda n, p: (0, 0))],
        out_specs=pl.BlockSpec((None, Ncol, TP), lambda n, p: (n, 0, p)),
        compiler_params=pltpu.CompilerParams(
            dimension_semantics=("parallel", "parallel"),
            vmem_limit_bytes=vmem_limit),
        cost_estimate=pl.CostEstimate(flops=2 * N * Ncol * Cin * P, transcendentals=0,
                                      bytes_accessed=4 * (x3.size + w2.size + N * Ncol * P)),
    )(x3, w2)

    # TODO(synk): fuse this strided scatter-add + crop into a Pallas gather-accumulate
    # kernel over final-output tiles (stride/kernel/padding are static); it is XLA glue.
    contrib = contrib.reshape(N, Cout, kH, kW, H, W)
    full_h = (H - 1) * s + kH
    full_w = (W - 1) * s + kW
    out_full = jnp.zeros((N, Cout, full_h, full_w), jnp.float32)
    for kh in range(kH):
        for kw in range(kW):
            out_full = out_full.at[:, :,
                                   kh:kh + (H - 1) * s + 1:s,
                                   kw:kw + (W - 1) * s + 1:s].add(contrib[:, :, kh, kw])

    # PyTorch semantics: crop by `padding`; positions introduced by output_padding have
    # no taps and become bias-only (bias + PReLU applied below to every position).
    h_end = min(full_h, padding + Hout)
    w_end = min(full_w, padding + Wout)
    out = out_full[:, :, padding:h_end, padding:w_end]
    pad_h = Hout - (h_end - padding)
    pad_w = Wout - (w_end - padding)
    if pad_h or pad_w:
        out = jnp.pad(out, ((0, 0), (0, 0), (0, pad_h), (0, pad_w)))

    # Fused bias + PReLU, 2-D tiled (rows x lanes) so blocks stay within VMEM budgets.
    R = N * Cout
    HW = Hout * Wout
    y2 = out.reshape(R, HW)
    b_col = jnp.tile(bias.astype(jnp.float32), N).reshape(R, 1)
    TR = min(256, (R // 8) * 8) if R >= 8 else R
    TL = min(2048, (HW // 128) * 128) if HW >= 128 else HW
    y_act = pl.pallas_call(
        _bias_prelu_kernel,
        out_shape=jax.ShapeDtypeStruct((R, HW), jnp.float32),
        grid=(pl.cdiv(R, TR), pl.cdiv(HW, TL)),
        in_specs=[pl.BlockSpec((TR, TL), lambda i, j: (i, j)),
                  pl.BlockSpec((TR, 1), lambda i, j: (i, 0)),
                  pl.BlockSpec(memory_space=pltpu.MemorySpace.SMEM)],
        out_specs=pl.BlockSpec((TR, TL), lambda i, j: (i, j)),
        compiler_params=pltpu.CompilerParams(
            dimension_semantics=("parallel", "parallel")),
        cost_estimate=pl.CostEstimate(flops=2 * R * HW, transcendentals=0,
                                      bytes_accessed=4 * (2 * R * HW + R)),
    )(y2, b_col, a1)
    return y_act.reshape(N, Cout, Hout, Wout)


# ---------------------------------------------------------------------------
# Public wrapper
# ---------------------------------------------------------------------------

def trans_conv_with_prelu(x, weight, bias, alpha, *, stride, padding=0, output_padding=0):
    """PReLU(ConvTranspose2d(x)); x: (N,Cin,H,W), weight: (Cin,Cout,kH,kW) (PyTorch layout)."""
    N, Cin, H, W = x.shape
    cin_w, Cout, kH, kW = weight.shape
    assert cin_w == Cin
    s = int(stride)
    padding = int(padding)
    output_padding = int(output_padding)

    fast = (s >= kH) and (s >= kW) and padding == 0 and output_padding == 0
    if fast:
        return _fast_path(x, weight, bias, alpha, stride=s)
    return _general_path(x, weight, bias, alpha, stride=s,
                         padding=padding, output_padding=output_padding)


# ---------------------------------------------------------------------------
# Pure-JAX reference (PyTorch ConvTranspose2d via input-dilated conv) for sanity.
# ---------------------------------------------------------------------------

def _reference(x, weight, bias, alpha, *, stride, padding=0, output_padding=0):
    _, Cout, kH, kW = weight.shape
    w_conv = jnp.transpose(weight[:, :, ::-1, ::-1], (1, 0, 2, 3))   # (Cout, Cin, kH, kW)
    y = jax.lax.conv_general_dilated(
        x, w_conv,
        window_strides=(1, 1),
        padding=((kH - 1 - padding, kH - 1 - padding + output_padding),
                 (kW - 1 - padding, kW - 1 - padding + output_padding)),
        lhs_dilation=(stride, stride),
        dimension_numbers=("NCHW", "OIHW", "NCHW"),
        precision=jax.lax.Precision.HIGHEST)
    y = y + bias.reshape(1, Cout, 1, 1)
    a = jnp.asarray(alpha, jnp.float32)
    return jnp.where(y > 0, y, a * y)


if __name__ == "__main__":
    key = jax.random.PRNGKey(0)
    k_x, k_w, k_b, k_x2, k_w2, k_b2 = jax.random.split(key, 6)

    # ---- fast path: typical decoder upsampling block (kernel == stride == 2) ----
    N, Cin, H, W = 2, 4, 16, 16
    Cout, kH, kW = 8, 2, 2
    stride = 2

    x = jax.random.normal(k_x, (N, Cin, H, W), jnp.float32)

    # nn.init.kaiming_normal_(weight, mode='fan_out', nonlinearity='leaky_relu');
    # for ConvTranspose2d weight (Cin, Cout, kH, kW): fan_out = Cin * kH * kW.
    fan_out = Cin * kH * kW
    gain = math.sqrt(2.0 / (1.0 + 0.01 ** 2))
    std = gain / math.sqrt(fan_out)
    weight = std * jax.random.normal(k_w, (Cin, Cout, kH, kW), jnp.float32)

    # ConvTranspose2d default bias init: U(-1/sqrt(fan_in)), fan_in = Cout*kH*kW.
    fan_in = Cout * kH * kW
    bound = 1.0 / math.sqrt(fan_in)
    bias = jax.random.uniform(k_b, (Cout,), jnp.float32, -bound, bound)

    # nn.PReLU() default: single shared parameter initialized to 0.25.
    alpha = jnp.float32(0.25)

    fwd = jax.jit(lambda xx: trans_conv_with_prelu(xx, weight, bias, alpha, stride=stride))
    y = fwd(x)
    jax.block_until_ready(y)

    Hout = (H - 1) * stride + kH
    Wout = (W - 1) * stride + kW
    assert y.shape == (N, Cout, Hout, Wout), y.shape
    assert y.dtype == jnp.float32
    y_ref = _reference(x, weight, bias, alpha, stride=stride)
    err = float(jnp.max(jnp.abs(y - y_ref)))
    assert jnp.allclose(y, y_ref, atol=1e-2, rtol=1e-2), err

    # ---- general path: overlapping taps with padding / output_padding ----
    N2, Cin2, H2, Wsp2 = 2, 4, 8, 8
    Cout2, k2, s2, p2, op2 = 8, 3, 2, 1, 1
    x2 = jax.random.normal(k_x2, (N2, Cin2, H2, Wsp2), jnp.float32)
    w2t = 0.1 * jax.random.normal(k_w2, (Cin2, Cout2, k2, k2), jnp.float32)
    b2 = 0.1 * jax.random.uniform(k_b2, (Cout2,), jnp.float32, -1.0, 1.0)

    fwd2 = jax.jit(lambda xx: trans_conv_with_prelu(
        xx, w2t, b2, alpha, stride=s2, padding=p2, output_padding=op2))
    y2 = fwd2(x2)
    jax.block_until_ready(y2)
    y2_ref = _reference(x2, w2t, b2, alpha, stride=s2, padding=p2, output_padding=op2)
    assert y2.shape == y2_ref.shape, (y2.shape, y2_ref.shape)
    err2 = float(jnp.max(jnp.abs(y2 - y2_ref)))
    assert jnp.allclose(y2, y2_ref, atol=1e-2, rtol=1e-2), err2

    print("KERNEL_OK")
</pallas_src>

<mosaic_0001>
module attributes {stable_mosaic.version = 11 : i64} {
  func.func @_fused_upsample_kernel(%arg0: i32, %arg1: i32, %arg2: memref<1x4x8x16xf32, #tpu.memory_space<vmem>>, %arg3: memref<32x4xf32, #tpu.memory_space<vmem>>, %arg4: memref<2x16x32xf32, #tpu.memory_space<vmem>>, %arg5: memref<8x1xf32, #tpu.memory_space<vmem>>, %arg6: memref<1xf32, #tpu.memory_space<smem>>, %arg7: memref<1x8x16x32xf32, #tpu.memory_space<vmem>>) attributes {dimension_semantics = [#tpu.dimension_semantics<parallel>, #tpu.dimension_semantics<parallel>], iteration_bounds = array<i64: 2, 2>, scalar_prefetch = 0 : i64, scratch_operands = 0 : i64, tpu.core_type = #tpu.core_type<tc>, window_params = [{transform_indices = @transform_0, window_bounds = array<i64: 1, 4, 8, 16>}, {pipeline_mode = #tpu.pipeline_mode<synchronous>, transform_indices = @transform_1, window_bounds = array<i64: 32, 4>}, {pipeline_mode = #tpu.pipeline_mode<synchronous>, transform_indices = @transform_2, window_bounds = array<i64: 2, 16, 32>}, {pipeline_mode = #tpu.pipeline_mode<synchronous>, transform_indices = @transform_3, window_bounds = array<i64: 8, 1>}, {transform_indices = @transform_4, window_bounds = array<i64: 1>}, {transform_indices = @transform_5, window_bounds = array<i64: 1, 8, 16, 32>}]} {
    %c0 = arith.constant 0 : index
    %0 = memref.load %arg6[%c0] : memref<1xf32, #tpu.memory_space<smem>>
    %c0_0 = arith.constant 0 : index
    %c0_1 = arith.constant 0 : index
    %1 = vector.load %arg5[%c0_0, %c0_1] : memref<8x1xf32, #tpu.memory_space<vmem>>, vector<8x1xf32>
    %c0_2 = arith.constant 0 : index
    %c0_3 = arith.constant 0 : index
    %c0_4 = arith.constant 0 : index
    %c0_5 = arith.constant 0 : index
    %2 = vector.load %arg2[%c0_2, %c0_3, %c0_4, %c0_5] : memref<1x4x8x16xf32, #tpu.memory_space<vmem>>, vector<1x4x1x16xf32>
    %3 = vector.shape_cast %2 : vector<1x4x1x16xf32> to vector<4x16xf32>
    %c0_6 = arith.constant 0 : index
    %c0_7 = arith.constant 0 : index
    %4 = vector.load %arg3[%c0_6, %c0_7] : memref<32x4xf32, #tpu.memory_space<vmem>>, vector<8x4xf32>
    %cst = arith.constant dense<0.000000e+00> : vector<8x16xf32>
    %5 = tpu.matmul %4, %3, %cst {dimension_numbers = #tpu.dot_dimension_numbers<[1], [0], [0], [1], [0, 0, 1, 1], [], []>} : vector<8x4xf32>, vector<4x16xf32>, vector<8x16xf32> -> vector<8x16xf32>
    %c0_8 = arith.constant 0 : index
    %c0_9 = arith.constant 0 : index
    %c0_10 = arith.constant 0 : index
    %6 = vector.load %arg4[%c0_8, %c0_9, %c0_10] : memref<2x16x32xf32, #tpu.memory_space<vmem>>, vector<1x16x32xf32>
    %7 = vector.shape_cast %6 : vector<1x16x32xf32> to vector<16x32xf32>
    %cst_11 = arith.constant dense<0.000000e+00> : vector<8x32xf32>
    %8 = tpu.matmul %5, %7, %cst_11 {dimension_numbers = #tpu.dot_dimension_numbers<[1], [0], [0], [1], [0, 0, 1, 1], [], []>} : vector<8x16xf32>, vector<16x32xf32>, vector<8x32xf32> -> vector<8x32xf32>
    %c8 = arith.constant 8 : index
    %c0_12 = arith.constant 0 : index
    %9 = vector.load %arg3[%c8, %c0_12] : memref<32x4xf32, #tpu.memory_space<vmem>>, vector<8x4xf32>
    %cst_13 = arith.constant dense<0.000000e+00> : vector<8x16xf32>
    %10 = tpu.matmul %9, %3, %cst_13 {dimension_numbers = #tpu.dot_dimension_numbers<[1], [0], [0], [1], [0, 0, 1, 1], [], []>} : vector<8x4xf32>, vector<4x16xf32>, vector<8x16xf32> -> vector<8x16xf32>
    %c1 = arith.constant 1 : index
    %c0_14 = arith.constant 0 : index
    %c0_15 = arith.constant 0 : index
    %11 = vector.load %arg4[%c1, %c0_14, %c0_15] : memref<2x16x32xf32, #tpu.memory_space<vmem>>, vector<1x16x32xf32>
    %12 = vector.shape_cast %11 : vector<1x16x32xf32> to vector<16x32xf32>
    %cst_16 = arith.constant dense<0.000000e+00> : vector<8x32xf32>
    %13 = tpu.matmul %10, %12, %cst_16 {dimension_numbers = #tpu.dot_dimension_numbers<[1], [0], [0], [1], [0, 0, 1, 1], [], []>} : vector<8x16xf32>, vector<16x32xf32>, vector<8x32xf32> -> vector<8x32xf32>
    %14 = arith.addf %8, %13 : vector<8x32xf32>
    %15 = vector.broadcast %1 : vector<8x1xf32> to vector<8x32xf32>
    %16 = arith.addf %14, %15 : vector<8x32xf32>
    %cst_17 = arith.constant 0.000000e+00 : f32
    %17 = vector.broadcast %cst_17 : f32 to vector<8x32xf32>
    %18 = arith.cmpf ogt, %16, %17 : vector<8x32xf32>
    %19 = vector.broadcast %0 : f32 to vector<8x32xf32>
    %20 = arith.mulf %19, %16 : vector<8x32xf32>
    %21 = arith.select %18, %16, %20 : vector<8x32xi1>, vector<8x32xf32>
    %c0_18 = arith.constant 0 : index
    %c0_19 = arith.constant 0 : index
    %c0_20 = arith.constant 0 : index
    %c0_21 = arith.constant 0 : index
    %22 = vector.load %arg7[%c0_18, %c0_19, %c0_20, %c0_21] : memref<1x8x16x32xf32, #tpu.memory_space<vmem>>, vector<1x8x1x32xf32>
    %23 = vector.shape_cast %22 : vector<1x8x1x32xf32> to vector<8x32xf32>
    %24 = vector.shape_cast %21 : vector<8x32xf32> to vector<1x8x1x32xf32>
    tpu.vector_store %arg7[%c0_18, %c0_19, %c0_20, %c0_21], %24 {strides = array<i32>} : memref<1x8x16x32xf32, #tpu.memory_space<vmem>>, vector<1x8x1x32xf32>,
    %c16 = arith.constant 16 : index
    %c0_22 = arith.constant 0 : index
    %25 = vector.load %arg3[%c16, %c0_22] : memref<32x4xf32, #tpu.memory_space<vmem>>, vector<8x4xf32>
    %cst_23 = arith.constant dense<0.000000e+00> : vector<8x16xf32>
    %26 = tpu.matmul %25, %3, %cst_23 {dimension_numbers = #tpu.dot_dimension_numbers<[1], [0], [0], [1], [0, 0, 1, 1], [], []>} : vector<8x4xf32>, vector<4x16xf32>, vector<8x16xf32> -> vector<8x16xf32>
    %c0_24 = arith.constant 0 : index
    %c0_25 = arith.constant 0 : index
    %c0_26 = arith.constant 0 : index
    %27 = vector.load %arg4[%c0_24, %c0_25, %c0_26] : memref<2x16x32xf32, #tpu.memory_space<vmem>>, vector<1x16x32xf32>
    %28 = vector.shape_cast %27 : vector<1x16x32xf32> to vector<16x32xf32>
    %cst_27 = arith.constant dense<0.000000e+00> : vector<8x32xf32>
    %29 = tpu.matmul %26, %28, %cst_27 {dimension_numbers = #tpu.dot_dimension_numbers<[1], [0], [0], [1], [0, 0, 1, 1], [], []>} : vector<8x16xf32>, vector<16x32xf32>, vector<8x32xf32> -> vector<8x32xf32>
    %c24 = arith.constant 24 : index
    %c0_28 = arith.constant 0 : index
    %30 = vector.load %arg3[%c24, %c0_28] : memref<32x4xf32, #tpu.memory_space<vmem>>, vector<8x4xf32>
    %cst_29 = arith.constant dense<0.000000e+00> : vector<8x16xf32>
    %31 = tpu.matmul %30, %3, %cst_29 {dimension_numbers = #tpu.dot_dimension_numbers<[1], [0], [0], [1], [0, 0, 1, 1], [], []>} : vector<8x4xf32>, vector<4x16xf32>, vector<8x16xf32> -> vector<8x16xf32>
    %c1_30 = arith.constant 1 : index
    %c0_31 = arith.constant 0 : index
    %c0_32 = arith.constant 0 : index
    %32 = vector.load %arg4[%c1_30, %c0_31, %c0_32] : memref<2x16x32xf32, #tpu.memory_space<vmem>>, vector<1x16x32xf32>
    %33 = vector.shape_cast %32 : vector<1x16x32xf32> to vector<16x32xf32>
    %cst_33 = arith.constant dense<0.000000e+00> : vector<8x32xf32>
    %34 = tpu.matmul %31, %33, %cst_33 {dimension_numbers = #tpu.dot_dimension_numbers<[1], [0], [0], [1], [0, 0, 1, 1], [], []>} : vector<8x16xf32>, vector<16x32xf32>, vector<8x32xf32> -> vector<8x32xf32>
    %35 = arith.addf %29, %34 : vector<8x32xf32>
    %36 = vector.broadcast %1 : vector<8x1xf32> to vector<8x32xf32>
    %37 = arith.addf %35, %36 : vector<8x32xf32>
    %cst_34 = arith.constant 0.000000e+00 : f32
    %38 = vector.broadcast %cst_34 : f32 to vector<8x32xf32>
    %39 = arith.cmpf ogt, %37, %38 : vector<8x32xf32>
    %40 = vector.broadcast %0 : f32 to vector<8x32xf32>
    %41 = arith.mulf %40, %37 : vector<8x32xf32>
    %42 = arith.select %39, %37, %41 : vector<8x32xi1>, vector<8x32xf32>
    %c0_35 = arith.constant 0 : index
    %c0_36 = arith.constant 0 : index
    %c1_37 = arith.constant 1 : index
    %c0_38 = arith.constant 0 : index
    %43 = vector.load %arg7[%c0_35, %c0_36, %c1_37, %c0_38] : memref<1x8x16x32xf32, #tpu.memory_space<vmem>>, vector<1x8x1x32xf32>
    %44 = vector.shape_cast %43 : vector<1x8x1x32xf32> to vector<8x32xf32>
    %45 = vector.shape_cast %42 : vector<8x32xf32> to vector<1x8x1x32xf32>
    tpu.vector_store %arg7[%c0_35, %c0_36, %c1_37, %c0_38], %45 {strides = array<i32>} : memref<1x8x16x32xf32, #tpu.memory_space<vmem>>, vector<1x8x1x32xf32>,
    %c0_39 = arith.constant 0 : index
    %c0_40 = arith.constant 0 : index
    %c1_41 = arith.constant 1 : index
    %c0_42 = arith.constant 0 : index
    %46 = vector.load %arg2[%c0_39, %c0_40, %c1_41, %c0_42] : memref<1x4x8x16xf32, #tpu.memory_space<vmem>>, vector<1x4x1x16xf32>
    %47 = vector.shape_cast %46 : vector<1x4x1x16xf32> to vector<4x16xf32>
    %c0_43 = arith.constant 0 : index
    %c0_44 = arith.constant 0 : index
    %48 = vector.load %arg3[%c0_43, %c0_44] : memref<32x4xf32, #tpu.memory_space<vmem>>, vector<8x4xf32>
    %cst_45 = arith.constant dense<0.000000e+00> : vector<8x16xf32>
    %49 = tpu.matmul %48, %47, %cst_45 {dimension_numbers = #tpu.dot_dimension_numbers<[1], [0], [0], [1], [0, 0, 1, 1], [], []>} : vector<8x4xf32>, vector<4x16xf32>, vector<8x16xf32> -> vector<8x16xf32>
    %c0_46 = arith.constant 0 : index
    %c0_47 = arith.constant 0 : index
    %c0_48 = arith.constant 0 : index
    %50 = vector.load %arg4[%c0_46, %c0_47, %c0_48] : memref<2x16x32xf32, #tpu.memory_space<vmem>>, vector<1x16x32xf32>
    %51 = vector.shape_cast %50 : vector<1x16x32xf32> to vector<16x32xf32>
    %cst_49 = arith.constant dense<0.000000e+00> : vector<8x32xf32>
    %52 = tpu.matmul %49, %51, %cst_49 {dimension_numbers = #tpu.dot_dimension_numbers<[1], [0], [0], [1], [0, 0, 1, 1], [], []>} : vector<8x16xf32>, vector<16x32xf32>, vector<8x32xf32> -> vector<8x32xf32>
    %c8_50 = arith.constant 8 : index
    %c0_51 = arith.constant 0 : index
    %53 = vector.load %arg3[%c8_50, %c0_51] : memref<32x4xf32, #tpu.memory_space<vmem>>, vector<8x4xf32>
    %cst_52 = arith.constant dense<0.000000e+00> : vector<8x16xf32>
    %54 = tpu.matmul %53, %47, %cst_52 {dimension_numbers = #tpu.dot_dimension_numbers<[1], [0], [0], [1], [0, 0, 1, 1], [], []>} : vector<8x4xf32>, vector<4x16xf32>, vector<8x16xf32> -> vector<8x16xf32>
    %c1_53 = arith.constant 1 : index
    %c0_54 = arith.constant 0 : index
    %c0_55 = arith.constant 0 : index
    %55 = vector.load %arg4[%c1_53, %c0_54, %c0_55] : memref<2x16x32xf32, #tpu.memory_space<vmem>>, vector<1x16x32xf32>
    %56 = vector.shape_cast %55 : vector<1x16x32xf32> to vector<16x32xf32>
    %cst_56 = arith.constant dense<0.000000e+00> : vector<8x32xf32>
    %57 = tpu.matmul %54, %56, %cst_56 {dimension_numbers = #tpu.dot_dimension_numbers<[1], [0], [0], [1], [0, 0, 1, 1], [], []>} : vector<8x16xf32>, vector<16x32xf32>, vector<8x32xf32> -> vector<8x32xf32>
    %58 = arith.addf %52, %57 : vector<8x32xf32>
    %59 = vector.broadcast %1 : vector<8x1xf32> to vector<8x32xf32>
    %60 = arith.addf %58, %59 : vector<8x32xf32>
    %cst_57 = arith.constant 0.000000e+00 : f32
    %61 = vector.broadcast %cst_57 : f32 to vector<8x32xf32>
    %62 = arith.cmpf ogt, %60, %61 : vector<8x32xf32>
    %63 = vector.broadcast %0 : f32 to vector<8x32xf32>
    %64 = arith.mulf %63, %60 : vector<8x32xf32>
    %65 = arith.select %62, %60, %64 : vector<8x32xi1>, vector<8x32xf32>
    %c0_58 = arith.constant 0 : index
    %c0_59 = arith.constant 0 : index
    %c2 = arith.constant 2 : index
    %c0_60 = arith.constant 0 : index
    %66 = vector.load %arg7[%c0_58, %c0_59, %c2, %c0_60] : memref<1x8x16x32xf32, #tpu.memory_space<vmem>>, vector<1x8x1x32xf32>
    %67 = vector.shape_cast %66 : vector<1x8x1x32xf32> to vector<8x32xf32>
    %68 = vector.shape_cast %65 : vector<8x32xf32> to vector<1x8x1x32xf32>
    tpu.vector_store %arg7[%c0_58, %c0_59, %c2, %c0_60], %68 {strides = array<i32>} : memref<1x8x16x32xf32, #tpu.memory_space<vmem>>, vector<1x8x1x32xf32>,
    %c16_61 = arith.constant 16 : index
    %c0_62 = arith.constant 0 : index
    %69 = vector.load %arg3[%c16_61, %c0_62] : memref<32x4xf32, #tpu.memory_space<vmem>>, vector<8x4xf32>
    %cst_63 = arith.constant dense<0.000000e+00> : vector<8x16xf32>
    %70 = tpu.matmul %69, %47, %cst_63 {dimension_numbers = #tpu.dot_dimension_numbers<[1], [0], [0], [1], [0, 0, 1, 1], [], []>} : vector<8x4xf32>, vector<4x16xf32>, vector<8x16xf32> -> vector<8x16xf32>
    %c0_64 = arith.constant 0 : index
    %c0_65 = arith.constant 0 : index
    %c0_66 = arith.constant 0 : index
    %71 = vector.load %arg4[%c0_64, %c0_65, %c0_66] : memref<2x16x32xf32, #tpu.memory_space<vmem>>, vector<1x16x32xf32>
    %72 = vector.shape_cast %71 : vector<1x16x32xf32> to vector<16x32xf32>
    %cst_67 = arith.constant dense<0.000000e+00> : vector<8x32xf32>
    %73 = tpu.matmul %70, %72, %cst_67 {dimension_numbers = #tpu.dot_dimension_numbers<[1], [0], [0], [1], [0, 0, 1, 1], [], []>} : vector<8x16xf32>, vector<16x32xf32>, vector<8x32xf32> -> vector<8x32xf32>
    %c24_68 = arith.constant 24 : index
    %c0_69 = arith.constant 0 : index
    %74 = vector.load %arg3[%c24_68, %c0_69] : memref<32x4xf32, #tpu.memory_space<vmem>>, vector<8x4xf32>
    %cst_70 = arith.constant dense<0.000000e+00> : vector<8x16xf32>
    %75 = tpu.matmul %74, %47, %cst_70 {dimension_numbers = #tpu.dot_dimension_numbers<[1], [0], [0], [1], [0, 0, 1, 1], [], []>} : vector<8x4xf32>, vector<4x16xf32>, vector<8x16xf32> -> vector<8x16xf32>
    %c1_71 = arith.constant 1 : index
    %c0_72 = arith.constant 0 : index
    %c0_73 = arith.constant 0 : index
    %76 = vector.load %arg4[%c1_71, %c0_72, %c0_73] : memref<2x16x32xf32, #tpu.memory_space<vmem>>, vector<1x16x32xf32>
    %77 = vector.shape_cast %76 : vector<1x16x32xf32> to vector<16x32xf32>
    %cst_74 = arith.constant dense<0.000000e+00> : vector<8x32xf32>
    %78 = tpu.matmul %75, %77, %cst_74 {dimension_numbers = #tpu.dot_dimension_numbers<[1], [0], [0], [1], [0, 0, 1, 1], [], []>} : vector<8x16xf32>, vector<16x32xf32>, vector<8x32xf32> -> vector<8x32xf32>
    %79 = arith.addf %73, %78 : vector<8x32xf32>
    %80 = vector.broadcast %1 : vector<8x1xf32> to vector<8x32xf32>
    %81 = arith.addf %79, %80 : vector<8x32xf32>
    %cst_75 = arith.constant 0.000000e+00 : f32
    %82 = vector.broadcast %cst_75 : f32 to vector<8x32xf32>
    %83 = arith.cmpf ogt, %81, %82 : vector<8x32xf32>
    %84 = vector.broadcast %0 : f32 to vector<8x32xf32>
    %85 = arith.mulf %84, %81 : vector<8x32xf32>
    %86 = arith.select %83, %81, %85 : vector<8x32xi1>, vector<8x32xf32>
    %c0_76 = arith.constant 0 : index
    %c0_77 = arith.constant 0 : index
    %c3 = arith.constant 3 : index
    %c0_78 = arith.constant 0 : index
    %87 = vector.load %arg7[%c0_76, %c0_77, %c3, %c0_78] : memref<1x8x16x32xf32, #tpu.memory_space<vmem>>, vector<1x8x1x32xf32>
    %88 = vector.shape_cast %87 : vector<1x8x1x32xf32> to vector<8x32xf32>
    %89 = vector.shape_cast %86 : vector<8x32xf32> to vector<1x8x1x32xf32>
    tpu.vector_store %arg7[%c0_76, %c0_77, %c3, %c0_78], %89 {strides = array<i32>} : memref<1x8x16x32xf32, #tpu.memory_space<vmem>>, vector<1x8x1x32xf32>,
    %c0_79 = arith.constant 0 : index
    %c0_80 = arith.constant 0 : index
    %c2_81 = arith.constant 2 : index
    %c0_82 = arith.constant 0 : index
    %90 = vector.load %arg2[%c0_79, %c0_80, %c2_81, %c0_82] : memref<1x4x8x16xf32, #tpu.memory_space<vmem>>, vector<1x4x1x16xf32>
    %91 = vector.shape_cast %90 : vector<1x4x1x16xf32> to vector<4x16xf32>
    %c0_83 = arith.constant 0 : index
    %c0_84 = arith.constant 0 : index
    %92 = vector.load %arg3[%c0_83, %c0_84] : memref<32x4xf32, #tpu.memory_space<vmem>>, vector<8x4xf32>
    %cst_85 = arith.constant dense<0.000000e+00> : vector<8x16xf32>
    %93 = tpu.matmul %92, %91, %cst_85 {dimension_numbers = #tpu.dot_dimension_numbers<[1], [0], [0], [1], [0, 0, 1, 1], [], []>} : vector<8x4xf32>, vector<4x16xf32>, vector<8x16xf32> -> vector<8x16xf32>
    %c0_86 = arith.constant 0 : index
    %c0_87 = arith.constant 0 : index
    %c0_88 = arith.constant 0 : index
    %94 = vector.load %arg4[%c0_86, %c0_87, %c0_88] : memref<2x16x32xf32, #tpu.memory_space<vmem>>, vector<1x16x32xf32>
    %95 = vector.shape_cast %94 : vector<1x16x32xf32> to vector<16x32xf32>
    %cst_89 = arith.constant dense<0.000000e+00> : vector<8x32xf32>
    %96 = tpu.matmul %93, %95, %cst_89 {dimension_numbers = #tpu.dot_dimension_numbers<[1], [0], [0], [1], [0, 0, 1, 1], [], []>} : vector<8x16xf32>, vector<16x32xf32>, vector<8x32xf32> -> vector<8x32xf32>
    %c8_90 = arith.constant 8 : index
    %c0_91 = arith.constant 0 : index
    %97 = vector.load %arg3[%c8_90, %c0_91] : memref<32x4xf32, #tpu.memory_space<vmem>>, vector<8x4xf32>
    %cst_92 = arith.constant dense<0.000000e+00> : vector<8x16xf32>
    %98 = tpu.matmul %97, %91, %cst_92 {dimension_numbers = #tpu.dot_dimension_numbers<[1], [0], [0], [1], [0, 0, 1, 1], [], []>} : vector<8x4xf32>, vector<4x16xf32>, vector<8x16xf32> -> vector<8x16xf32>
    %c1_93 = arith.constant 1 : index
    %c0_94 = arith.constant 0 : index
    %c0_95 = arith.constant 0 : index
    %99 = vector.load %arg4[%c1_93, %c0_94, %c0_95] : memref<2x16x32xf32, #tpu.memory_space<vmem>>, vector<1x16x32xf32>
    %100 = vector.shape_cast %99 : vector<1x16x32xf32> to vector<16x32xf32>
    %cst_96 = arith.constant dense<0.000000e+00> : vector<8x32xf32>
    %101 = tpu.matmul %98, %100, %cst_96 {dimension_numbers = #tpu.dot_dimension_numbers<[1], [0], [0], [1], [0, 0, 1, 1], [], []>} : vector<8x16xf32>, vector<16x32xf32>, vector<8x32xf32> -> vector<8x32xf32>
    %102 = arith.addf %96, %101 : vector<8x32xf32>
    %103 = vector.broadcast %1 : vector<8x1xf32> to vector<8x32xf32>
    %104 = arith.addf %102, %103 : vector<8x32xf32>
    %cst_97 = arith.constant 0.000000e+00 : f32
    %105 = vector.broadcast %cst_97 : f32 to vector<8x32xf32>
    %106 = arith.cmpf ogt, %104, %105 : vector<8x32xf32>
    %107 = vector.broadcast %0 : f32 to vector<8x32xf32>
    %108 = arith.mulf %107, %104 : vector<8x32xf32>
    %109 = arith.select %106, %104, %108 : vector<8x32xi1>, vector<8x32xf32>
    %c0_98 = arith.constant 0 : index
    %c0_99 = arith.constant 0 : index
    %c4 = arith.constant 4 : index
    %c0_100 = arith.constant 0 : index
    %110 = vector.load %arg7[%c0_98, %c0_99, %c4, %c0_100] : memref<1x8x16x32xf32, #tpu.memory_space<vmem>>, vector<1x8x1x32xf32>
    %111 = vector.shape_cast %110 : vector<1x8x1x32xf32> to vector<8x32xf32>
    %112 = vector.shape_cast %109 : vector<8x32xf32> to vector<1x8x1x32xf32>
    tpu.vector_store %arg7[%c0_98, %c0_99, %c4, %c0_100], %112 {strides = array<i32>} : memref<1x8x16x32xf32, #tpu.memory_space<vmem>>, vector<1x8x1x32xf32>,
    %c16_101 = arith.constant 16 : index
    %c0_102 = arith.constant 0 : index
    %113 = vector.load %arg3[%c16_101, %c0_102] : memref<32x4xf32, #tpu.memory_space<vmem>>, vector<8x4xf32>
    %cst_103 = arith.constant dense<0.000000e+00> : vector<8x16xf32>
    %114 = tpu.matmul %113, %91, %cst_103 {dimension_numbers = #tpu.dot_dimension_numbers<[1], [0], [0], [1], [0, 0, 1, 1], [], []>} : vector<8x4xf32>, vector<4x16xf32>, vector<8x16xf32> -> vector<8x16xf32>
    %c0_104 = arith.constant 0 : index
    %c0_105 = arith.constant 0 : index
    %c0_106 = arith.constant 0 : index
    %115 = vector.load %arg4[%c0_104, %c0_105, %c0_106] : memref<2x16x32xf32, #tpu.memory_space<vmem>>, vector<1x16x32xf32>
    %116 = vector.shape_cast %115 : vector<1x16x32xf32> to vector<16x32xf32>
    %cst_107 = arith.constant dense<0.000000e+00> : vector<8x32xf32>
    %117 = tpu.matmul %114, %116, %cst_107 {dimension_numbers = #tpu.dot_dimension_numbers<[1], [0], [0], [1], [0, 0, 1, 1], [], []>} : vector<8x16xf32>, vector<16x32xf32>, vector<8x32xf32> -> vector<8x32xf32>
    %c24_108 = arith.constant 24 : index
    %c0_109 = arith.constant 0 : index
    %118 = vector.load %arg3[%c24_108, %c0_109] : memref<32x4xf32, #tpu.memory_space<vmem>>, vector<8x4xf32>
    %cst_110 = arith.constant dense<0.000000e+00> : vector<8x16xf32>
    %119 = tpu.matmul %118, %91, %cst_110 {dimension_numbers = #tpu.dot_dimension_numbers<[1], [0], [0], [1], [0, 0, 1, 1], [], []>} : vector<8x4xf32>, vector<4x16xf32>, vector<8x16xf32> -> vector<8x16xf32>
    %c1_111 = arith.constant 1 : index
    %c0_112 = arith.constant 0 : index
    %c0_113 = arith.constant 0 : index
    %120 = vector.load %arg4[%c1_111, %c0_112, %c0_113] : memref<2x16x32xf32, #tpu.memory_space<vmem>>, vector<1x16x32xf32>
    %121 = vector.shape_cast %120 : vector<1x16x32xf32> to vector<16x32xf32>
    %cst_114 = arith.constant dense<0.000000e+00> : vector<8x32xf32>
    %122 = tpu.matmul %119, %121, %cst_114 {dimension_numbers = #tpu.dot_dimension_numbers<[1], [0], [0], [1], [0, 0, 1, 1], [], []>} : vector<8x16xf32>, vector<16x32xf32>, vector<8x32xf32> -> vector<8x32xf32>
    %123 = arith.addf %117, %122 : vector<8x32xf32>
    %124 = vector.broadcast %1 : vector<8x1xf32> to vector<8x32xf32>
    %125 = arith.addf %123, %124 : vector<8x32xf32>
    %cst_115 = arith.constant 0.000000e+00 : f32
    %126 = vector.broadcast %cst_115 : f32 to vector<8x32xf32>
    %127 = arith.cmpf ogt, %125, %126 : vector<8x32xf32>
    %128 = vector.broadcast %0 : f32 to vector<8x32xf32>
    %129 = arith.mulf %128, %125 : vector<8x32xf32>
    %130 = arith.select %127, %125, %129 : vector<8x32xi1>, vector<8x32xf32>
    %c0_116 = arith.constant 0 : index
    %c0_117 = arith.constant 0 : index
    %c5 = arith.constant 5 : index
    %c0_118 = arith.constant 0 : index
    %131 = vector.load %arg7[%c0_116, %c0_117, %c5, %c0_118] : memref<1x8x16x32xf32, #tpu.memory_space<vmem>>, vector<1x8x1x32xf32>
    %132 = vector.shape_cast %131 : vector<1x8x1x32xf32> to vector<8x32xf32>
    %133 = vector.shape_cast %130 : vector<8x32xf32> to vector<1x8x1x32xf32>
    tpu.vector_store %arg7[%c0_116, %c0_117, %c5, %c0_118], %133 {strides = array<i32>} : memref<1x8x16x32xf32, #tpu.memory_space<vmem>>, vector<1x8x1x32xf32>,
    %c0_119 = arith.constant 0 : index
    %c0_120 = arith.constant 0 : index
    %c3_121 = arith.constant 3 : index
    %c0_122 = arith.constant 0 : index
    %134 = vector.load %arg2[%c0_119, %c0_120, %c3_121, %c0_122] : memref<1x4x8x16xf32, #tpu.memory_space<vmem>>, vector<1x4x1x16xf32>
    %135 = vector.shape_cast %134 : vector<1x4x1x16xf32> to vector<4x16xf32>
    %c0_123 = arith.constant 0 : index
    %c0_124 = arith.constant 0 : index
    %136 = vector.load %arg3[%c0_123, %c0_124] : memref<32x4xf32, #tpu.memory_space<vmem>>, vector<8x4xf32>
    %cst_125 = arith.constant dense<0.000000e+00> : vector<8x16xf32>
    %137 = tpu.matmul %136, %135, %cst_125 {dimension_numbers = #tpu.dot_dimension_numbers<[1], [0], [0], [1], [0, 0, 1, 1], [], []>} : vector<8x4xf32>, vector<4x16xf32>, vector<8x16xf32> -> vector<8x16xf32>
    %c0_126 = arith.constant 0 : index
    %c0_127 = arith.constant 0 : index
    %c0_128 = arith.constant 0 : index
    %138 = vector.load %arg4[%c0_126, %c0_127, %c0_128] : memref<2x16x32xf32, #tpu.memory_space<vmem>>, vector<1x16x32xf32>
    %139 = vector.shape_cast %138 : vector<1x16x32xf32> to vector<16x32xf32>
    %cst_129 = arith.constant dense<0.000000e+00> : vector<8x32xf32>
    %140 = tpu.matmul %137, %139, %cst_129 {dimension_numbers = #tpu.dot_dimension_numbers<[1], [0], [0], [1], [0, 0, 1, 1], [], []>} : vector<8x16xf32>, vector<16x32xf32>, vector<8x32xf32> -> vector<8x32xf32>
    %c8_130 = arith.constant 8 : index
    %c0_131 = arith.constant 0 : index
    %141 = vector.load %arg3[%c8_130, %c0_131] : memref<32x4xf32, #tpu.memory_space<vmem>>, vector<8x4xf32>
    %cst_132 = arith.constant dense<0.000000e+00> : vector<8x16xf32>
    %142 = tpu.matmul %141, %135, %cst_132 {dimension_numbers = #tpu.dot_dimension_numbers<[1], [0], [0], [1], [0, 0, 1, 1], [], []>} : vector<8x4xf32>, vector<4x16xf32>, vector<8x16xf32> -> vector<8x16xf32>
    %c1_133 = arith.constant 1 : index
    %c0_134 = arith.constant 0 : index
    %c0_135 = arith.constant 0 : index
    %143 = vector.load %arg4[%c1_133, %c0_134, %c0_135] : memref<2x16x32xf32, #tpu.memory_space<vmem>>, vector<1x16x32xf32>
    %144 = vector.shape_cast %143 : vector<1x16x32xf32> to vector<16x32xf32>
    %cst_136 = arith.constant dense<0.000000e+00> : vector<8x32xf32>
    %145 = tpu.matmul %142, %144, %cst_136 {dimension_numbers = #tpu.dot_dimension_numbers<[1], [0], [0], [1], [0, 0, 1, 1], [], []>} : vector<8x16xf32>, vector<16x32xf32>, vector<8x32xf32> -> vector<8x32xf32>
    %146 = arith.addf %140, %145 : vector<8x32xf32>
    %147 = vector.broadcast %1 : vector<8x1xf32> to vector<8x32xf32>
    %148 = arith.addf %146, %147 : vector<8x32xf32>
    %cst_137 = arith.constant 0.000000e+00 : f32
    %149 = vector.broadcast %cst_137 : f32 to vector<8x32xf32>
    %150 = arith.cmpf ogt, %148, %149 : vector<8x32xf32>
    %151 = vector.broadcast %0 : f32 to vector<8x32xf32>
    %152 = arith.mulf %151, %148 : vector<8x32xf32>
    %153 = arith.select %150, %148, %152 : vector<8x32xi1>, vector<8x32xf32>
    %c0_138 = arith.constant 0 : index
    %c0_139 = arith.constant 0 : index
    %c6 = arith.constant 6 : index
    %c0_140 = arith.constant 0 : index
    %154 = vector.load %arg7[%c0_138, %c0_139, %c6, %c0_140] : memref<1x8x16x32xf32, #tpu.memory_space<vmem>>, vector<1x8x1x32xf32>
    %155 = vector.shape_cast %154 : vector<1x8x1x32xf32> to vector<8x32xf32>
    %156 = vector.shape_cast %153 : vector<8x32xf32> to vector<1x8x1x32xf32>
    tpu.vector_store %arg7[%c0_138, %c0_139, %c6, %c0_140], %156 {strides = array<i32>} : memref<1x8x16x32xf32, #tpu.memory_space<vmem>>, vector<1x8x1x32xf32>,
    %c16_141 = arith.constant 16 : index
    %c0_142 = arith.constant 0 : index
    %157 = vector.load %arg3[%c16_141, %c0_142] : memref<32x4xf32, #tpu.memory_space<vmem>>, vector<8x4xf32>
    %cst_143 = arith.constant dense<0.000000e+00> : vector<8x16xf32>
    %158 = tpu.matmul %157, %135, %cst_143 {dimension_numbers = #tpu.dot_dimension_numbers<[1], [0], [0], [1], [0, 0, 1, 1], [], []>} : vector<8x4xf32>, vector<4x16xf32>, vector<8x16xf32> -> vector<8x16xf32>
    %c0_144 = arith.constant 0 : index
    %c0_145 = arith.constant 0 : index
    %c0_146 = arith.constant 0 : index
    %159 = vector.load %arg4[%c0_144, %c0_145, %c0_146] : memref<2x16x32xf32, #tpu.memory_space<vmem>>, vector<1x16x32xf32>
    %160 = vector.shape_cast %159 : vector<1x16x32xf32> to vector<16x32xf32>
    %cst_147 = arith.constant dense<0.000000e+00> : vector<8x32xf32>
    %161 = tpu.matmul %158, %160, %cst_147 {dimension_numbers = #tpu.dot_dimension_numbers<[1], [0], [0], [1], [0, 0, 1, 1], [], []>} : vector<8x16xf32>, vector<16x32xf32>, vector<8x32xf32> -> vector<8x32xf32>
    %c24_148 = arith.constant 24 : index
    %c0_149 = arith.constant 0 : index
    %162 = vector.load %arg3[%c24_148, %c0_149] : memref<32x4xf32, #tpu.memory_space<vmem>>, vector<8x4xf32>
    %cst_150 = arith.constant dense<0.000000e+00> : vector<8x16xf32>
    %163 = tpu.matmul %162, %135, %cst_150 {dimension_numbers = #tpu.dot_dimension_numbers<[1], [0], [0], [1], [0, 0, 1, 1], [], []>} : vector<8x4xf32>, vector<4x16xf32>, vector<8x16xf32> -> vector<8x16xf32>
    %c1_151 = arith.constant 1 : index
    %c0_152 = arith.constant 0 : index
    %c0_153 = arith.constant 0 : index
    %164 = vector.load %arg4[%c1_151, %c0_152, %c0_153] : memref<2x16x32xf32, #tpu.memory_space<vmem>>, vector<1x16x32xf32>
    %165 = vector.shape_cast %164 : vector<1x16x32xf32> to vector<16x32xf32>
    %cst_154 = arith.constant dense<0.000000e+00> : vector<8x32xf32>
    %166 = tpu.matmul %163, %165, %cst_154 {dimension_numbers = #tpu.dot_dimension_numbers<[1], [0], [0], [1], [0, 0, 1, 1], [], []>} : vector<8x16xf32>, vector<16x32xf32>, vector<8x32xf32> -> vector<8x32xf32>
    %167 = arith.addf %161, %166 : vector<8x32xf32>
    %168 = vector.broadcast %1 : vector<8x1xf32> to vector<8x32xf32>
    %169 = arith.addf %167, %168 : vector<8x32xf32>
    %cst_155 = arith.constant 0.000000e+00 : f32
    %170 = vector.broadcast %cst_155 : f32 to vector<8x32xf32>
    %171 = arith.cmpf ogt, %169, %170 : vector<8x32xf32>
    %172 = vector.broadcast %0 : f32 to vector<8x32xf32>
    %173 = arith.mulf %172, %169 : vector<8x32xf32>
    %174 = arith.select %171, %169, %173 : vector<8x32xi1>, vector<8x32xf32>
    %c0_156 = arith.constant 0 : index
    %c0_157 = arith.constant 0 : index
    %c7 = arith.constant 7 : index
    %c0_158 = arith.constant 0 : index
    %175 = vector.load %arg7[%c0_156, %c0_157, %c7, %c0_158] : memref<1x8x16x32xf32, #tpu.memory_space<vmem>>, vector<1x8x1x32xf32>
    %176 = vector.shape_cast %175 : vector<1x8x1x32xf32> to vector<8x32xf32>
    %177 = vector.shape_cast %174 : vector<8x32xf32> to vector<1x8x1x32xf32>
    tpu.vector_store %arg7[%c0_156, %c0_157, %c7, %c0_158], %177 {strides = array<i32>} : memref<1x8x16x32xf32, #tpu.memory_space<vmem>>, vector<1x8x1x32xf32>,
    %c0_159 = arith.constant 0 : index
    %c0_160 = arith.constant 0 : index
    %c4_161 = arith.constant 4 : index
    %c0_162 = arith.constant 0 : index
    %178 = vector.load %arg2[%c0_159, %c0_160, %c4_161, %c0_162] : memref<1x4x8x16xf32, #tpu.memory_space<vmem>>, vector<1x4x1x16xf32>
    %179 = vector.shape_cast %178 : vector<1x4x1x16xf32> to vector<4x16xf32>
    %c0_163 = arith.constant 0 : index
    %c0_164 = arith.constant 0 : index
    %180 = vector.load %arg3[%c0_163, %c0_164] : memref<32x4xf32, #tpu.memory_space<vmem>>, vector<8x4xf32>
    %cst_165 = arith.constant dense<0.000000e+00> : vector<8x16xf32>
    %181 = tpu.matmul %180, %179, %cst_165 {dimension_numbers = #tpu.dot_dimension_numbers<[1], [0], [0], [1], [0, 0, 1, 1], [], []>} : vector<8x4xf32>, vector<4x16xf32>, vector<8x16xf32> -> vector<8x16xf32>
    %c0_166 = arith.constant 0 : index
    %c0_167 = arith.constant 0 : index
    %c0_168 = arith.constant 0 : index
    %182 = vector.load %arg4[%c0_166, %c0_167, %c0_168] : memref<2x16x32xf32, #tpu.memory_space<vmem>>, vector<1x16x32xf32>
    %183 = vector.shape_cast %182 : vector<1x16x32xf32> to vector<16x32xf32>
    %cst_169 = arith.constant dense<0.000000e+00> : vector<8x32xf32>
    %184 = tpu.matmul %181, %183, %cst_169 {dimension_numbers = #tpu.dot_dimension_numbers<[1], [0], [0], [1], [0, 0, 1, 1], [], []>} : vector<8x16xf32>, vector<16x32xf32>, vector<8x32xf32> -> vector<8x32xf32>
    %c8_170 = arith.constant 8 : index
    %c0_171 = arith.constant 0 : index
    %185 = vector.load %arg3[%c8_170, %c0_171] : memref<32x4xf32, #tpu.memory_space<vmem>>, vector<8x4xf32>
    %cst_172 = arith.constant dense<0.000000e+00> : vector<8x16xf32>
    %186 = tpu.matmul %185, %179, %cst_172 {dimension_numbers = #tpu.dot_dimension_numbers<[1], [0], [0], [1], [0, 0, 1, 1], [], []>} : vector<8x4xf32>, vector<4x16xf32>, vector<8x16xf32> -> vector<8x16xf32>
    %c1_173 = arith.constant 1 : index
    %c0_174 = arith.constant 0 : index
    %c0_175 = arith.constant 0 : index
    %187 = vector.load %arg4[%c1_173, %c0_174, %c0_175] : memref<2x16x32xf32, #tpu.memory_space<vmem>>, vector<1x16x32xf32>
    %188 = vector.shape_cast %187 : vector<1x16x32xf32> to vector<16x32xf32>
    %cst_176 = arith.constant dense<0.000000e+00> : vector<8x32xf32>
    %189 = tpu.matmul %186, %188, %cst_176 {dimension_numbers = #tpu.dot_dimension_numbers<[1], [0], [0], [1], [0, 0, 1, 1], [], []>} : vector<8x16xf32>, vector<16x32xf32>, vector<8x32xf32> -> vector<8x32xf32>
    %190 = arith.addf %184, %189 : vector<8x32xf32>
    %191 = vector.broadcast %1 : vector<8x1xf32> to vector<8x32xf32>
    %192 = arith.addf %190, %191 : vector<8x32xf32>
    %cst_177 = arith.constant 0.000000e+00 : f32
    %193 = vector.broadcast %cst_177 : f32 to vector<8x32xf32>
    %194 = arith.cmpf ogt, %192, %193 : vector<8x32xf32>
    %195 = vector.broadcast %0 : f32 to vector<8x32xf32>
    %196 = arith.mulf %195, %192 : vector<8x32xf32>
    %197 = arith.select %194, %192, %196 : vector<8x32xi1>, vector<8x32xf32>
    %c0_178 = arith.constant 0 : index
    %c0_179 = arith.constant 0 : index
    %c8_180 = arith.constant 8 : index
    %c0_181 = arith.constant 0 : index
    %198 = vector.load %arg7[%c0_178, %c0_179, %c8_180, %c0_181] : memref<1x8x16x32xf32, #tpu.memory_space<vmem>>, vector<1x8x1x32xf32>
    %199 = vector.shape_cast %198 : vector<1x8x1x32xf32> to vector<8x32xf32>
    %200 = vector.shape_cast %197 : vector<8x32xf32> to vector<1x8x1x32xf32>
    tpu.vector_store %arg7[%c0_178, %c0_179, %c8_180, %c0_181], %200 {strides = array<i32>} : memref<1x8x16x32xf32, #tpu.memory_space<vmem>>, vector<1x8x1x32xf32>,
    %c16_182 = arith.constant 16 : index
    %c0_183 = arith.constant 0 : index
    %201 = vector.load %arg3[%c16_182, %c0_183] : memref<32x4xf32, #tpu.memory_space<vmem>>, vector<8x4xf32>
    %cst_184 = arith.constant dense<0.000000e+00> : vector<8x16xf32>
    %202 = tpu.matmul %201, %179, %cst_184 {dimension_numbers = #tpu.dot_dimension_numbers<[1], [0], [0], [1], [0, 0, 1, 1], [], []>} : vector<8x4xf32>, vector<4x16xf32>, vector<8x16xf32> -> vector<8x16xf32>
    %c0_185 = arith.constant 0 : index
    %c0_186 = arith.constant 0 : index
    %c0_187 = arith.constant 0 : index
    %203 = vector.load %arg4[%c0_185, %c0_186, %c0_187] : memref<2x16x32xf32, #tpu.memory_space<vmem>>, vector<1x16x32xf32>
    %204 = vector.shape_cast %203 : vector<1x16x32xf32> to vector<16x32xf32>
    %cst_188 = arith.constant dense<0.000000e+00> : vector<8x32xf32>
    %205 = tpu.matmul %202, %204, %cst_188 {dimension_numbers = #tpu.dot_dimension_numbers<[1], [0], [0], [1], [0, 0, 1, 1], [], []>} : vector<8x16xf32>, vector<16x32xf32>, vector<8x32xf32> -> vector<8x32xf32>
    %c24_189 = arith.constant 24 : index
    %c0_190 = arith.constant 0 : index
    %206 = vector.load %arg3[%c24_189, %c0_190] : memref<32x4xf32, #tpu.memory_space<vmem>>, vector<8x4xf32>
    %cst_191 = arith.constant dense<0.000000e+00> : vector<8x16xf32>
    %207 = tpu.matmul %206, %179, %cst_191 {dimension_numbers = #tpu.dot_dimension_numbers<[1], [0], [0], [1], [0, 0, 1, 1], [], []>} : vector<8x4xf32>, vector<4x16xf32>, vector<8x16xf32> -> vector<8x16xf32>
    %c1_192 = arith.constant 1 : index
    %c0_193 = arith.constant 0 : index
    %c0_194 = arith.constant 0 : index
    %208 = vector.load %arg4[%c1_192, %c0_193, %c0_194] : memref<2x16x32xf32, #tpu.memory_space<vmem>>, vector<1x16x32xf32>
    %209 = vector.shape_cast %208 : vector<1x16x32xf32> to vector<16x32xf32>
    %cst_195 = arith.constant dense<0.000000e+00> : vector<8x32xf32>
    %210 = tpu.matmul %207, %209, %cst_195 {dimension_numbers = #tpu.dot_dimension_numbers<[1], [0], [0], [1], [0, 0, 1, 1], [], []>} : vector<8x16xf32>, vector<16x32xf32>, vector<8x32xf32> -> vector<8x32xf32>
    %211 = arith.addf %205, %210 : vector<8x32xf32>
    %212 = vector.broadcast %1 : vector<8x1xf32> to vector<8x32xf32>
    %213 = arith.addf %211, %212 : vector<8x32xf32>
    %cst_196 = arith.constant 0.000000e+00 : f32
    %214 = vector.broadcast %cst_196 : f32 to vector<8x32xf32>
    %215 = arith.cmpf ogt, %213, %214 : vector<8x32xf32>
    %216 = vector.broadcast %0 : f32 to vector<8x32xf32>
    %217 = arith.mulf %216, %213 : vector<8x32xf32>
    %218 = arith.select %215, %213, %217 : vector<8x32xi1>, vector<8x32xf32>
    %c0_197 = arith.constant 0 : index
    %c0_198 = arith.constant 0 : index
    %c9 = arith.constant 9 : index
    %c0_199 = arith.constant 0 : index
    %219 = vector.load %arg7[%c0_197, %c0_198, %c9, %c0_199] : memref<1x8x16x32xf32, #tpu.memory_space<vmem>>, vector<1x8x1x32xf32>
    %220 = vector.shape_cast %219 : vector<1x8x1x32xf32> to vector<8x32xf32>
    %221 = vector.shape_cast %218 : vector<8x32xf32> to vector<1x8x1x32xf32>
    tpu.vector_store %arg7[%c0_197, %c0_198, %c9, %c0_199], %221 {strides = array<i32>} : memref<1x8x16x32xf32, #tpu.memory_space<vmem>>, vector<1x8x1x32xf32>,
    %c0_200 = arith.constant 0 : index
    %c0_201 = arith.constant 0 : index
    %c5_202 = arith.constant 5 : index
    %c0_203 = arith.constant 0 : index
    %222 = vector.load %arg2[%c0_200, %c0_201, %c5_202, %c0_203] : memref<1x4x8x16xf32, #tpu.memory_space<vmem>>, vector<1x4x1x16xf32>
    %223 = vector.shape_cast %222 : vector<1x4x1x16xf32> to vector<4x16xf32>
    %c0_204 = arith.constant 0 : index
    %c0_205 = arith.constant 0 : index
    %224 = vector.load %arg3[%c0_204, %c0_205] : memref<32x4xf32, #tpu.memory_space<vmem>>, vector<8x4xf32>
    %cst_206 = arith.constant dense<0.000000e+00> : vector<8x16xf32>
    %225 = tpu.matmul %224, %223, %cst_206 {dimension_numbers = #tpu.dot_dimension_numbers<[1], [0], [0], [1], [0, 0, 1, 1], [], []>} : vector<8x4xf32>, vector<4x16xf32>, vector<8x16xf32> -> vector<8x16xf32>
    %c0_207 = arith.constant 0 : index
    %c0_208 = arith.constant 0 : index
    %c0_209 = arith.constant 0 : index
    %226 = vector.load %arg4[%c0_207, %c0_208, %c0_209] : memref<2x16x32xf32, #tpu.memory_space<vmem>>, vector<1x16x32xf32>
    %227 = vector.shape_cast %226 : vector<1x16x32xf32> to vector<16x32xf32>
    %cst_210 = arith.constant dense<0.000000e+00> : vector<8x32xf32>
    %228 = tpu.matmul %225, %227, %cst_210 {dimension_numbers = #tpu.dot_dimension_numbers<[1], [0], [0], [1], [0, 0, 1, 1], [], []>} : vector<8x16xf32>, vector<16x32xf32>, vector<8x32xf32> -> vector<8x32xf32>
    %c8_211 = arith.constant 8 : index
    %c0_212 = arith.constant 0 : index
    %229 = vector.load %arg3[%c8_211, %c0_212] : memref<32x4xf32, #tpu.memory_space<vmem>>, vector<8x4xf32>
    %cst_213 = arith.constant dense<0.000000e+00> : vector<8x16xf32>
    %230 = tpu.matmul %229, %223, %cst_213 {dimension_numbers = #tpu.dot_dimension_numbers<[1], [0], [0], [1], [0, 0, 1, 1], [], []>} : vector<8x4xf32>, vector<4x16xf32>, vector<8x16xf32> -> vector<8x16xf32>
    %c1_214 = arith.constant 1 : index
    %c0_215 = arith.constant 0 : index
    %c0_216 = arith.constant 0 : index
    %231 = vector.load %arg4[%c1_214, %c0_215, %c0_216] : memref<2x16x32xf32, #tpu.memory_space<vmem>>, vector<1x16x32xf32>
    %232 = vector.shape_cast %231 : vector<1x16x32xf32> to vector<16x32xf32>
    %cst_217 = arith.constant dense<0.000000e+00> : vector<8x32xf32>
    %233 = tpu.matmul %230, %232, %cst_217 {dimension_numbers = #tpu.dot_dimension_numbers<[1], [0], [0], [1], [0, 0, 1, 1], [], []>} : vector<8x16xf32>, vector<16x32xf32>, vector<8x32xf32> -> vector<8x32xf32>
    %234 = arith.addf %228, %233 : vector<8x32xf32>
    %235 = vector.broadcast %1 : vector<8x1xf32> to vector<8x32xf32>
    %236 = arith.addf %234, %235 : vector<8x32xf32>
    %cst_218 = arith.constant 0.000000e+00 : f32
    %237 = vector.broadcast %cst_218 : f32 to vector<8x32xf32>
    %238 = arith.cmpf ogt, %236, %237 : vector<8x32xf32>
    %239 = vector.broadcast %0 : f32 to vector<8x32xf32>
    %240 = arith.mulf %239, %236 : vector<8x32xf32>
    %241 = arith.select %238, %236, %240 : vector<8x32xi1>, vector<8x32xf32>
    %c0_219 = arith.constant 0 : index
    %c0_220 = arith.constant 0 : index
    %c10 = arith.constant 10 : index
    %c0_221 = arith.constant 0 : index
    %242 = vector.load %arg7[%c0_219, %c0_220, %c10, %c0_221] : memref<1x8x16x32xf32, #tpu.memory_space<vmem>>, vector<1x8x1x32xf32>
    %243 = vector.shape_cast %242 : vector<1x8x1x32xf32> to vector<8x32xf32>
    %244 = vector.shape_cast %241 : vector<8x32xf32> to vector<1x8x1x32xf32>
    tpu.vector_store %arg7[%c0_219, %c0_220, %c10, %c0_221], %244 {strides = array<i32>} : memref<1x8x16x32xf32, #tpu.memory_space<vmem>>, vector<1x8x1x32xf32>,
    %c16_222 = arith.constant 16 : index
    %c0_223 = arith.constant 0 : index
    %245 = vector.load %arg3[%c16_222, %c0_223] : memref<32x4xf32, #tpu.memory_space<vmem>>, vector<8x4xf32>
    %cst_224 = arith.constant dense<0.000000e+00> : vector<8x16xf32>
    %246 = tpu.matmul %245, %223, %cst_224 {dimension_numbers = #tpu.dot_dimension_numbers<[1], [0], [0], [1], [0, 0, 1, 1], [], []>} : vector<8x4xf32>, vector<4x16xf32>, vector<8x16xf32> -> vector<8x16xf32>
    %c0_225 = arith.constant 0 : index
    %c0_226 = arith.constant 0 : index
    %c0_227 = arith.constant 0 : index
    %247 = vector.load %arg4[%c0_225, %c0_226, %c0_227] : memref<2x16x32xf32, #tpu.memory_space<vmem>>, vector<1x16x32xf32>
    %248 = vector.shape_cast %247 : vector<1x16x32xf32> to vector<16x32xf32>
    %cst_228 = arith.constant dense<0.000000e+00> : vector<8x32xf32>
    %249 = tpu.matmul %246, %248, %cst_228 {dimension_numbers = #tpu.dot_dimension_numbers<[1], [0], [0], [1], [0, 0, 1, 1], [], []>} : vector<8x16xf32>, vector<16x32xf32>, vector<8x32xf32> -> vector<8x32xf32>
    %c24_229 = arith.constant 24 : index
    %c0_230 = arith.constant 0 : index
    %250 = vector.load %arg3[%c24_229, %c0_230] : memref<32x4xf32, #tpu.memory_space<vmem>>, vector<8x4xf32>
    %cst_231 = arith.constant dense<0.000000e+00> : vector<8x16xf32>
    %251 = tpu.matmul %250, %223, %cst_231 {dimension_numbers = #tpu.dot_dimension_numbers<[1], [0], [0], [1], [0, 0, 1, 1], [], []>} : vector<8x4xf32>, vector<4x16xf32>, vector<8x16xf32> -> vector<8x16xf32>
    %c1_232 = arith.constant 1 : index
    %c0_233 = arith.constant 0 : index
    %c0_234 = arith.constant 0 : index
    %252 = vector.load %arg4[%c1_232, %c0_233, %c0_234] : memref<2x16x32xf32, #tpu.memory_space<vmem>>, vector<1x16x32xf32>
    %253 = vector.shape_cast %252 : vector<1x16x32xf32> to vector<16x32xf32>
    %cst_235 = arith.constant dense<0.000000e+00> : vector<8x32xf32>
    %254 = tpu.matmul %251, %253, %cst_235 {dimension_numbers = #tpu.dot_dimension_numbers<[1], [0], [0], [1], [0, 0, 1, 1], [], []>} : vector<8x16xf32>, vector<16x32xf32>, vector<8x32xf32> -> vector<8x32xf32>
    %255 = arith.addf %249, %254 : vector<8x32xf32>
    %256 = vector.broadcast %1 : vector<8x1xf32> to vector<8x32xf32>
    %257 = arith.addf %255, %256 : vector<8x32xf32>
    %cst_236 = arith.constant 0.000000e+00 : f32
    %258 = vector.broadcast %cst_236 : f32 to vector<8x32xf32>
    %259 = arith.cmpf ogt, %257, %258 : vector<8x32xf32>
    %260 = vector.broadcast %0 : f32 to vector<8x32xf32>
    %261 = arith.mulf %260, %257 : vector<8x32xf32>
    %262 = arith.select %259, %257, %261 : vector<8x32xi1>, vector<8x32xf32>
    %c0_237 = arith.constant 0 : index
    %c0_238 = arith.constant 0 : index
    %c11 = arith.constant 11 : index
    %c0_239 = arith.constant 0 : index
    %263 = vector.load %arg7[%c0_237, %c0_238, %c11, %c0_239] : memref<1x8x16x32xf32, #tpu.memory_space<vmem>>, vector<1x8x1x32xf32>
    %264 = vector.shape_cast %263 : vector<1x8x1x32xf32> to vector<8x32xf32>
    %265 = vector.shape_cast %262 : vector<8x32xf32> to vector<1x8x1x32xf32>
    tpu.vector_store %arg7[%c0_237, %c0_238, %c11, %c0_239], %265 {strides = array<i32>} : memref<1x8x16x32xf32, #tpu.memory_space<vmem>>, vector<1x8x1x32xf32>,
    %c0_240 = arith.constant 0 : index
    %c0_241 = arith.constant 0 : index
    %c6_242 = arith.constant 6 : index
    %c0_243 = arith.constant 0 : index
    %266 = vector.load %arg2[%c0_240, %c0_241, %c6_242, %c0_243] : memref<1x4x8x16xf32, #tpu.memory_space<vmem>>, vector<1x4x1x16xf32>
    %267 = vector.shape_cast %266 : vector<1x4x1x16xf32> to vector<4x16xf32>
    %c0_244 = arith.constant 0 : index
    %c0_245 = arith.constant 0 : index
    %268 = vector.load %arg3[%c0_244, %c0_245] : memref<32x4xf32, #tpu.memory_space<vmem>>, vector<8x4xf32>
    %cst_246 = arith.constant dense<0.000000e+00> : vector<8x16xf32>
    %269 = tpu.matmul %268, %267, %cst_246 {dimension_numbers = #tpu.dot_dimension_numbers<[1], [0], [0], [1], [0, 0, 1, 1], [], []>} : vector<8x4xf32>, vector<4x16xf32>, vector<8x16xf32> -> vector<8x16xf32>
    %c0_247 = arith.constant 0 : index
    %c0_248 = arith.constant 0 : index
    %c0_249 = arith.constant 0 : index
    %270 = vector.load %arg4[%c0_247, %c0_248, %c0_249] : memref<2x16x32xf32, #tpu.memory_space<vmem>>, vector<1x16x32xf32>
    %271 = vector.shape_cast %270 : vector<1x16x32xf32> to vector<16x32xf32>
    %cst_250 = arith.constant dense<0.000000e+00> : vector<8x32xf32>
    %272 = tpu.matmul %269, %271, %cst_250 {dimension_numbers = #tpu.dot_dimension_numbers<[1], [0], [0], [1], [0, 0, 1, 1], [], []>} : vector<8x16xf32>, vector<16x32xf32>, vector<8x32xf32> -> vector<8x32xf32>
    %c8_251 = arith.constant 8 : index
    %c0_252 = arith.constant 0 : index
    %273 = vector.load %arg3[%c8_251, %c0_252] : memref<32x4xf32, #tpu.memory_space<vmem>>, vector<8x4xf32>
    %cst_253 = arith.constant dense<0.000000e+00> : vector<8x16xf32>
    %274 = tpu.matmul %273, %267, %cst_253 {dimension_numbers = #tpu.dot_dimension_numbers<[1], [0], [0], [1], [0, 0, 1, 1], [], []>} : vector<8x4xf32>, vector<4x16xf32>, vector<8x16xf32> -> vector<8x16xf32>
    %c1_254 = arith.constant 1 : index
    %c0_255 = arith.constant 0 : index
    %c0_256 = arith.constant 0 : index
    %275 = vector.load %arg4[%c1_254, %c0_255, %c0_256] : memref<2x16x32xf32, #tpu.memory_space<vmem>>, vector<1x16x32xf32>
    %276 = vector.shape_cast %275 : vector<1x16x32xf32> to vector<16x32xf32>
    %cst_257 = arith.constant dense<0.000000e+00> : vector<8x32xf32>
    %277 = tpu.matmul %274, %276, %cst_257 {dimension_numbers = #tpu.dot_dimension_numbers<[1], [0], [0], [1], [0, 0, 1, 1], [], []>} : vector<8x16xf32>, vector<16x32xf32>, vector<8x32xf32> -> vector<8x32xf32>
    %278 = arith.addf %272, %277 : vector<8x32xf32>
    %279 = vector.broadcast %1 : vector<8x1xf32> to vector<8x32xf32>
    %280 = arith.addf %278, %279 : vector<8x32xf32>
    %cst_258 = arith.constant 0.000000e+00 : f32
    %281 = vector.broadcast %cst_258 : f32 to vector<8x32xf32>
    %282 = arith.cmpf ogt, %280, %281 : vector<8x32xf32>
    %283 = vector.broadcast %0 : f32 to vector<8x32xf32>
    %284 = arith.mulf %283, %280 : vector<8x32xf32>
    %285 = arith.select %282, %280, %284 : vector<8x32xi1>, vector<8x32xf32>
    %c0_259 = arith.constant 0 : index
    %c0_260 = arith.constant 0 : index
    %c12 = arith.constant 12 : index
    %c0_261 = arith.constant 0 : index
    %286 = vector.load %arg7[%c0_259, %c0_260, %c12, %c0_261] : memref<1x8x16x32xf32, #tpu.memory_space<vmem>>, vector<1x8x1x32xf32>
    %287 = vector.shape_cast %286 : vector<1x8x1x32xf32> to vector<8x32xf32>
    %288 = vector.shape_cast %285 : vector<8x32xf32> to vector<1x8x1x32xf32>
    tpu.vector_store %arg7[%c0_259, %c0_260, %c12, %c0_261], %288 {strides = array<i32>} : memref<1x8x16x32xf32, #tpu.memory_space<vmem>>, vector<1x8x1x32xf32>,
    %c16_262 = arith.constant 16 : index
    %c0_263 = arith.constant 0 : index
    %289 = vector.load %arg3[%c16_262, %c0_263] : memref<32x4xf32, #tpu.memory_space<vmem>>, vector<8x4xf32>
    %cst_264 = arith.constant dense<0.000000e+00> : vector<8x16xf32>
    %290 = tpu.matmul %289, %267, %cst_264 {dimension_numbers = #tpu.dot_dimension_numbers<[1], [0], [0], [1], [0, 0, 1, 1], [], []>} : vector<8x4xf32>, vector<4x16xf32>, vector<8x16xf32> -> vector<8x16xf32>
    %c0_265 = arith.constant 0 : index
    %c0_266 = arith.constant 0 : index
    %c0_267 = arith.constant 0 : index
    %291 = vector.load %arg4[%c0_265, %c0_266, %c0_267] : memref<2x16x32xf32, #tpu.memory_space<vmem>>, vector<1x16x32xf32>
    %292 = vector.shape_cast %291 : vector<1x16x32xf32> to vector<16x32xf32>
    %cst_268 = arith.constant dense<0.000000e+00> : vector<8x32xf32>
    %293 = tpu.matmul %290, %292, %cst_268 {dimension_numbers = #tpu.dot_dimension_numbers<[1], [0], [0], [1], [0, 0, 1, 1], [], []>} : vector<8x16xf32>, vector<16x32xf32>, vector<8x32xf32> -> vector<8x32xf32>
    %c24_269 = arith.constant 24 : index
    %c0_270 = arith.constant 0 : index
    %294 = vector.load %arg3[%c24_269, %c0_270] : memref<32x4xf32, #tpu.memory_space<vmem>>, vector<8x4xf32>
    %cst_271 = arith.constant dense<0.000000e+00> : vector<8x16xf32>
    %295 = tpu.matmul %294, %267, %cst_271 {dimension_numbers = #tpu.dot_dimension_numbers<[1], [0], [0], [1], [0, 0, 1, 1], [], []>} : vector<8x4xf32>, vector<4x16xf32>, vector<8x16xf32> -> vector<8x16xf32>
    %c1_272 = arith.constant 1 : index
    %c0_273 = arith.constant 0 : index
    %c0_274 = arith.constant 0 : index
    %296 = vector.load %arg4[%c1_272, %c0_273, %c0_274] : memref<2x16x32xf32, #tpu.memory_space<vmem>>, vector<1x16x32xf32>
    %297 = vector.shape_cast %296 : vector<1x16x32xf32> to vector<16x32xf32>
    %cst_275 = arith.constant dense<0.000000e+00> : vector<8x32xf32>
    %298 = tpu.matmul %295, %297, %cst_275 {dimension_numbers = #tpu.dot_dimension_numbers<[1], [0], [0], [1], [0, 0, 1, 1], [], []>} : vector<8x16xf32>, vector<16x32xf32>, vector<8x32xf32> -> vector<8x32xf32>
    %299 = arith.addf %293, %298 : vector<8x32xf32>
    %300 = vector.broadcast %1 : vector<8x1xf32> to vector<8x32xf32>
    %301 = arith.addf %299, %300 : vector<8x32xf32>
    %cst_276 = arith.constant 0.000000e+00 : f32
    %302 = vector.broadcast %cst_276 : f32 to vector<8x32xf32>
    %303 = arith.cmpf ogt, %301, %302 : vector<8x32xf32>
    %304 = vector.broadcast %0 : f32 to vector<8x32xf32>
    %305 = arith.mulf %304, %301 : vector<8x32xf32>
    %306 = arith.select %303, %301, %305 : vector<8x32xi1>, vector<8x32xf32>
    %c0_277 = arith.constant 0 : index
    %c0_278 = arith.constant 0 : index
    %c13 = arith.constant 13 : index
    %c0_279 = arith.constant 0 : index
    %307 = vector.load %arg7[%c0_277, %c0_278, %c13, %c0_279] : memref<1x8x16x32xf32, #tpu.memory_space<vmem>>, vector<1x8x1x32xf32>
    %308 = vector.shape_cast %307 : vector<1x8x1x32xf32> to vector<8x32xf32>
    %309 = vector.shape_cast %306 : vector<8x32xf32> to vector<1x8x1x32xf32>
    tpu.vector_store %arg7[%c0_277, %c0_278, %c13, %c0_279], %309 {strides = array<i32>} : memref<1x8x16x32xf32, #tpu.memory_space<vmem>>, vector<1x8x1x32xf32>,
    %c0_280 = arith.constant 0 : index
    %c0_281 = arith.constant 0 : index
    %c7_282 = arith.constant 7 : index
    %c0_283 = arith.constant 0 : index
    %310 = vector.load %arg2[%c0_280, %c0_281, %c7_282, %c0_283] : memref<1x4x8x16xf32, #tpu.memory_space<vmem>>, vector<1x4x1x16xf32>
    %311 = vector.shape_cast %310 : vector<1x4x1x16xf32> to vector<4x16xf32>
    %c0_284 = arith.constant 0 : index
    %c0_285 = arith.constant 0 : index
    %312 = vector.load %arg3[%c0_284, %c0_285] : memref<32x4xf32, #tpu.memory_space<vmem>>, vector<8x4xf32>
    %cst_286 = arith.constant dense<0.000000e+00> : vector<8x16xf32>
    %313 = tpu.matmul %312, %311, %cst_286 {dimension_numbers = #tpu.dot_dimension_numbers<[1], [0], [0], [1], [0, 0, 1, 1], [], []>} : vector<8x4xf32>, vector<4x16xf32>, vector<8x16xf32> -> vector<8x16xf32>
    %c0_287 = arith.constant 0 : index
    %c0_288 = arith.constant 0 : index
    %c0_289 = arith.constant 0 : index
    %314 = vector.load %arg4[%c0_287, %c0_288, %c0_289] : memref<2x16x32xf32, #tpu.memory_space<vmem>>, vector<1x16x32xf32>
    %315 = vector.shape_cast %314 : vector<1x16x32xf32> to vector<16x32xf32>
    %cst_290 = arith.constant dense<0.000000e+00> : vector<8x32xf32>
    %316 = tpu.matmul %313, %315, %cst_290 {dimension_numbers = #tpu.dot_dimension_numbers<[1], [0], [0], [1], [0, 0, 1, 1], [], []>} : vector<8x16xf32>, vector<16x32xf32>, vector<8x32xf32> -> vector<8x32xf32>
    %c8_291 = arith.constant 8 : index
    %c0_292 = arith.constant 0 : index
    %317 = vector.load %arg3[%c8_291, %c0_292] : memref<32x4xf32, #tpu.memory_space<vmem>>, vector<8x4xf32>
    %cst_293 = arith.constant dense<0.000000e+00> : vector<8x16xf32>
    %318 = tpu.matmul %317, %311, %cst_293 {dimension_numbers = #tpu.dot_dimension_numbers<[1], [0], [0], [1], [0, 0, 1, 1], [], []>} : vector<8x4xf32>, vector<4x16xf32>, vector<8x16xf32> -> vector<8x16xf32>
    %c1_294 = arith.constant 1 : index
    %c0_295 = arith.constant 0 : index
    %c0_296 = arith.constant 0 : index
    %319 = vector.load %arg4[%c1_294, %c0_295, %c0_296] : memref<2x16x32xf32, #tpu.memory_space<vmem>>, vector<1x16x32xf32>
    %320 = vector.shape_cast %319 : vector<1x16x32xf32> to vector<16x32xf32>
    %cst_297 = arith.constant dense<0.000000e+00> : vector<8x32xf32>
    %321 = tpu.matmul %318, %320, %cst_297 {dimension_numbers = #tpu.dot_dimension_numbers<[1], [0], [0], [1], [0, 0, 1, 1], [], []>} : vector<8x16xf32>, vector<16x32xf32>, vector<8x32xf32> -> vector<8x32xf32>
    %322 = arith.addf %316, %321 : vector<8x32xf32>
    %323 = vector.broadcast %1 : vector<8x1xf32> to vector<8x32xf32>
    %324 = arith.addf %322, %323 : vector<8x32xf32>
    %cst_298 = arith.constant 0.000000e+00 : f32
    %325 = vector.broadcast %cst_298 : f32 to vector<8x32xf32>
    %326 = arith.cmpf ogt, %324, %325 : vector<8x32xf32>
    %327 = vector.broadcast %0 : f32 to vector<8x32xf32>
    %328 = arith.mulf %327, %324 : vector<8x32xf32>
    %329 = arith.select %326, %324, %328 : vector<8x32xi1>, vector<8x32xf32>
    %c0_299 = arith.constant 0 : index
    %c0_300 = arith.constant 0 : index
    %c14 = arith.constant 14 : index
    %c0_301 = arith.constant 0 : index
    %330 = vector.load %arg7[%c0_299, %c0_300, %c14, %c0_301] : memref<1x8x16x32xf32, #tpu.memory_space<vmem>>, vector<1x8x1x32xf32>
    %331 = vector.shape_cast %330 : vector<1x8x1x32xf32> to vector<8x32xf32>
    %332 = vector.shape_cast %329 : vector<8x32xf32> to vector<1x8x1x32xf32>
    tpu.vector_store %arg7[%c0_299, %c0_300, %c14, %c0_301], %332 {strides = array<i32>} : memref<1x8x16x32xf32, #tpu.memory_space<vmem>>, vector<1x8x1x32xf32>,
    %c16_302 = arith.constant 16 : index
    %c0_303 = arith.constant 0 : index
    %333 = vector.load %arg3[%c16_302, %c0_303] : memref<32x4xf32, #tpu.memory_space<vmem>>, vector<8x4xf32>
    %cst_304 = arith.constant dense<0.000000e+00> : vector<8x16xf32>
    %334 = tpu.matmul %333, %311, %cst_304 {dimension_numbers = #tpu.dot_dimension_numbers<[1], [0], [0], [1], [0, 0, 1, 1], [], []>} : vector<8x4xf32>, vector<4x16xf32>, vector<8x16xf32> -> vector<8x16xf32>
    %c0_305 = arith.constant 0 : index
    %c0_306 = arith.constant 0 : index
    %c0_307 = arith.constant 0 : index
    %335 = vector.load %arg4[%c0_305, %c0_306, %c0_307] : memref<2x16x32xf32, #tpu.memory_space<vmem>>, vector<1x16x32xf32>
    %336 = vector.shape_cast %335 : vector<1x16x32xf32> to vector<16x32xf32>
    %cst_308 = arith.constant dense<0.000000e+00> : vector<8x32xf32>
    %337 = tpu.matmul %334, %336, %cst_308 {dimension_numbers = #tpu.dot_dimension_numbers<[1], [0], [0], [1], [0, 0, 1, 1], [], []>} : vector<8x16xf32>, vector<16x32xf32>, vector<8x32xf32> -> vector<8x32xf32>
    %c24_309 = arith.constant 24 : index
    %c0_310 = arith.constant 0 : index
    %338 = vector.load %arg3[%c24_309, %c0_310] : memref<32x4xf32, #tpu.memory_space<vmem>>, vector<8x4xf32>
    %cst_311 = arith.constant dense<0.000000e+00> : vector<8x16xf32>
    %339 = tpu.matmul %338, %311, %cst_311 {dimension_numbers = #tpu.dot_dimension_numbers<[1], [0], [0], [1], [0, 0, 1, 1], [], []>} : vector<8x4xf32>, vector<4x16xf32>, vector<8x16xf32> -> vector<8x16xf32>
    %c1_312 = arith.constant 1 : index
    %c0_313 = arith.constant 0 : index
    %c0_314 = arith.constant 0 : index
    %340 = vector.load %arg4[%c1_312, %c0_313, %c0_314] : memref<2x16x32xf32, #tpu.memory_space<vmem>>, vector<1x16x32xf32>
    %341 = vector.shape_cast %340 : vector<1x16x32xf32> to vector<16x32xf32>
    %cst_315 = arith.constant dense<0.000000e+00> : vector<8x32xf32>
    %342 = tpu.matmul %339, %341, %cst_315 {dimension_numbers = #tpu.dot_dimension_numbers<[1], [0], [0], [1], [0, 0, 1, 1], [], []>} : vector<8x16xf32>, vector<16x32xf32>, vector<8x32xf32> -> vector<8x32xf32>
    %343 = arith.addf %337, %342 : vector<8x32xf32>
    %344 = vector.broadcast %1 : vector<8x1xf32> to vector<8x32xf32>
    %345 = arith.addf %343, %344 : vector<8x32xf32>
    %cst_316 = arith.constant 0.000000e+00 : f32
    %346 = vector.broadcast %cst_316 : f32 to vector<8x32xf32>
    %347 = arith.cmpf ogt, %345, %346 : vector<8x32xf32>
    %348 = vector.broadcast %0 : f32 to vector<8x32xf32>
    %349 = arith.mulf %348, %345 : vector<8x32xf32>
    %350 = arith.select %347, %345, %349 : vector<8x32xi1>, vector<8x32xf32>
    %c0_317 = arith.constant 0 : index
    %c0_318 = arith.constant 0 : index
    %c15 = arith.constant 15 : index
    %c0_319 = arith.constant 0 : index
    %351 = vector.load %arg7[%c0_317, %c0_318, %c15, %c0_319] : memref<1x8x16x32xf32, #tpu.memory_space<vmem>>, vector<1x8x1x32xf32>
    %352 = vector.shape_cast %351 : vector<1x8x1x32xf32> to vector<8x32xf32>
    %353 = vector.shape_cast %350 : vector<8x32xf32> to vector<1x8x1x32xf32>
    tpu.vector_store %arg7[%c0_317, %c0_318, %c15, %c0_319], %353 {strides = array<i32>} : memref<1x8x16x32xf32, #tpu.memory_space<vmem>>, vector<1x8x1x32xf32>,
    return
  }
  func.func @transform_0(%arg0: i32, %arg1: i32) -> (i32, i32, i32, i32) {
    %c0_i32 = arith.constant 0 : i32
    %c0_i32_0 = arith.constant 0 : i32
    %c0_i32_1 = arith.constant 0 : i32
    return %arg0, %c0_i32, %arg1, %c0_i32_0 : i32, i32, i32, i32
  }
  func.func @transform_1(%arg0: i32, %arg1: i32) -> (i32, i32) {
    %c0_i32 = arith.constant 0 : i32
    %c0_i32_0 = arith.constant 0 : i32
    %c0_i32_1 = arith.constant 0 : i32
    return %c0_i32, %c0_i32_0 : i32, i32
  }
  func.func @transform_2(%arg0: i32, %arg1: i32) -> (i32, i32, i32) {
    %c0_i32 = arith.constant 0 : i32
    %c0_i32_0 = arith.constant 0 : i32
    %c0_i32_1 = arith.constant 0 : i32
    %c0_i32_2 = arith.constant 0 : i32
    return %c0_i32, %c0_i32_0, %c0_i32_1 : i32, i32, i32
  }
  func.func @transform_3(%arg0: i32, %arg1: i32) -> (i32, i32) {
    %c0_i32 = arith.constant 0 : i32
    %c0_i32_0 = arith.constant 0 : i32
    %c0_i32_1 = arith.constant 0 : i32
    return %c0_i32, %c0_i32_0 : i32, i32
  }
  func.func @transform_4(%arg0: i32, %arg1: i32) -> i32 {
    %c0_i32 = arith.constant 0 : i32
    %c0_i32_0 = arith.constant 0 : i32
    return %c0_i32 : i32
  }
  func.func @transform_5(%arg0: i32, %arg1: i32) -> (i32, i32, i32, i32) {
    %c0_i32 = arith.constant 0 : i32
    %c0_i32_0 = arith.constant 0 : i32
    %c0_i32_1 = arith.constant 0 : i32
    return %arg0, %c0_i32, %arg1, %c0_i32_0 : i32, i32, i32, i32
  }
}

</mosaic_0001>

<bundles_post_ra>
// kernel: _lambda_.1
= control target key start
LH: loop header
LB: loop body
LE: loop exit
PB: predicated region body
PF: predicated region fallthrough
CT: control target
= control target key end

     0   :  { %s8440_s0 = inlined_call_operand.vmem [shape: f32[2,4,16,16], index: 0, kind: input, shape index: {}]   ;;  %s8441_s1 = inlined_call_operand.vmem [shape: f32[32,4], index: 1, kind: input, shape index: {}]   ;;  %s8442_s2 = inlined_call_operand.vmem [shape: f32[2,16,32], index: 2, kind: input, shape index: {}]   ;;  %s8443_s3 = inlined_call_operand.vmem [shape: f32[8,1], index: 3, kind: input, shape index: {}]   ;;  %s8444_s4 = inlined_call_operand.<no memory space> [shape: f32[1], index: 4, kind: input, shape index: {}]   ;;  %s8445_s5 = inlined_call_operand.hbm [shape: f32[2,8,32,32], index: 5, kind: output, shape index: {}]  }
   0x1   :  { %10 = sst [smem:[#allocation2]] %s8444_s4 }
   0x2   :  { %11 = vsyncpa [#allocation5], 0 }
   0x3   :  { %13 = vsyncpa [#allocation5 + $0x1], 0  ;;  %s7334_s20 = smov 0   ;;  %s7336_s21 = smov 0  }
   0x4   :  { %s7338_s22 = smov 0   ;;  %s7340_s23 = smov 0  }
   0x5   :  { %s7342_s24 = smov 0   ;;  %s7344_s25 = smov 0  }
   0x6   :  { %s7346_s26 = smov 0   ;;  %s7348_s27 = smov 0  }
   0x7 LB: > { %s6445_s4 = sadd.s32 4294967295, %s7288_s27   ;;  %s6446_s28 = sadd.s32 4294967294, %s7288_s27   ;;  %s7288_s27 = sphi %s7348_s27, %s19_s27   ;;  %s7284_s26 = sphi %s7346_s26, %s8455_s26   ;;  %s7280_s25 = sphi %s7344_s25, %s8454_s25   ;;  %s7276_s24 = sphi %s7342_s24, %s8453_s24   ;;  %s7272_s23 = sphi %s7340_s23, %s8452_s23   ;;  %s7268_s22 = sphi %s7338_s22, %s8451_s22   ;;  %s7264_s21 = sphi %s7336_s21, %s8450_s21   ;;  %s7260_s20 = sphi %s7334_s20, %s8449_s20  }
   0x8   : > { %s28_s29 = sadd.s32 1, %s7280_s25  ;;  %s31_s30 = sadd.s32 1, %s7284_s26 }
   0x9   : > { %p29_p0 = scmp.ge.s32.totalorder %s28_s29, 2  ;;  %p47_p1 = scmp.ne.s32.totalorder %s7268_s22, %s7264_s21 }
   0xa   : > { %p48_p2 = scmp.eq.s32.totalorder %s7288_s27, 0  ;;  %p163_p5 = scmp.eq.s32.totalorder %s6445_s4, 3 }
   0xb   : > { %s8457_s29 = smov (%p29_p0, %s28_s29), 0  ;;  %s8459_s30 = smov (!%p29_p0, %s31_s30), %s7284_s26 }
   0xc   : > { %s36_s6 = ssub.s32 %s7280_s25, %s8457_s29  ;;  %p7386_p3 = por %p48_p2, %p47_p1 }
   0xd   : > { %p33_p4 = scmp.ge.s32.totalorder %s8459_s30, 2  ;;  %p168_p6 = scmp.ne.s32.totalorder %s7264_s21, %s7260_s20 }
   0xe   : > { %p169_p7 = scmp.eq.s32.totalorder %s6446_s28, 3  ;;  %p7394_p8 = por %p163_p5, %p47_p1 }
   0xf   : > { %s8461_s30 = smov (%p33_p4, %s8459_s30), 0  ;;  %s40_s12 = sadd.s32 1, %s7268_s22 }
  0x10   : > { %p7398_p9 = por %p169_p7, %p168_p6  ;;  %s35_s10 = ssub.s32 %s7284_s26, %s8461_s30 }
  0x11   : > { %s37_s11 = sor.u32 %s36_s6, %s35_s10  ;;  %p6448_p11 = scmp.ge.s32.totalorder %s7288_s27, 4 }
  0x12   : > { %p38_p10 = scmp.eq.s32.totalorder %s37_s11, 0 }
  0x13   : > { %197 = sbr.rel (%p6448_p11) target bundleno = 32 (0x20), region = 32 }
  0x14   : > { %s7406_s13 = scalar_select %p38_p10, %s7268_s22, %s40_s12  }
  0x18   : > { %200 = sbr.rel (!%p7386_p3) target bundleno = 32 (0x20), region = 36  ;;  %s202_s14 = sand.u32 (%p7386_p3), 1, %s7268_s22  }
  0x19   : > { %s6450_s15 = sshll.u32 (%p7386_p3), %s7284_s26, 3  ;;  %s6449_s16 = sshll.u32 (%p7386_p3), %s202_s14, 5 }
  0x1a   : > { %s206_s17 = sadd.s32 (%p7386_p3), %s7280_s25, %s6450_s15  ;;  %s204_s6 = scalar_lea.vmem (%p7386_p3), [#allocation3], %s6449_s16 }
  0x1b   : > { %s6451_s18 = sshll.u32 (%p7386_p3), %s206_s17, 3 }
  0x1c   : > { %s208_s28 = scalar_lea.vmem (%p7386_p3), %s8440_s0, %s6451_s18 }
  0x1d   : > { %v243_v0 = vld [vmem:[%s208_s28] sm:$0xff]  ;;  %v245_v1 = vld [vmem:[%s208_s28 + $0x10] sm:$0xff] }
  0x1e   : > { %v247_v2 = vld [vmem:[%s208_s28 + $0x20] sm:$0xff]  ;;  %244 = vst [vmem:[%s204_s6] sm:$0xff] %v243_v0  ;;  %246 = vst [vmem:[%s204_s6 + $0x8] sm:$0xff] %v245_v1  ;;  %v249_v3 = vld [vmem:[%s208_s28 + $0x30] sm:$0xff] }
  0x1f   : > { %248 = vst [vmem:[%s204_s6 + $0x10] sm:$0xff] %v247_v2  ;;  %250 = vst [vmem:[%s204_s6 + $0x18] sm:$0xff] %v249_v3 }
  0x20 PF: > { %p6452_p12 = scmp.ge.s32.totalorder %s7288_s27, 1  ;;  %p255_p13 = scmp.lt.s32.totalorder %s7288_s27, 5 }
  0x22   : > { %p256_p0 = pnand %p6452_p12, %p255_p13 }
  0x23   : > { %s7420_s7 = sand.u32 (!%p256_p0), 1, %s7264_s21   ;;  %s290_s4 = sld [smem:[#allocation2]] (!%p256_p0) }
  0x24   : > { %259 = sbr.rel (%p256_p0) target bundleno = 3419 (0xd5b), region = 74  ;;  %s6453_s10 = sshll.u32 (!%p256_p0), %s7420_s7, 5 }
  0x25   : > { %s7429_s11 = scalar_lea.vmem (!%p256_p0), [#allocation3], %s6453_s10  ;;  %s6454_s28 = sshll.u32 (!%p256_p0), %s7420_s7, 7 }
  0x26   : > { %s7570_s6 = scalar_lea.vmem (!%p256_p0), [#allocation4], %s6454_s28 }
  0x29   : > { %v7290_v4 = vmov 0.0   ;;  %vm302_vm0 = vcmask 1041409   ;;  %vm7291_vm1 = vmmov 0   ;;  %v292_v5 = vld [vmem:[%s7429_s11] sm:$0x1]  ;;  %vm305_vm2 = vcmask 1042434  }
  0x2a   : > { %6749 = vmatprep.subr.mxu0 %v7290_v4  ;;  %6754 = vmatprep.subr.mxu1 %v7290_v4  ;;  %v293_v6 = vld [vmem:[%s7429_s11 + $0x8] sm:$0x1]  ;;  %v294_v7 = vld [vmem:[%s7429_s11 + $0x10] sm:$0x1]  ;;  %v295_v8 = vld [vmem:[%s7429_s11 + $0x18] sm:$0x1]  ;;  %v628_v35 = vlaneseq  ;;  %v7535_v47 = vstv %s290_s4 }
  0x2b   : > { %6751 = vmatprep.mubr.msk.f32.mxu0 %vm7291_vm1, %v7290_v4  ;;  %6756 = vmatprep.mubr.msk.f32.mxu1 %vm7291_vm1, %v7290_v4  ;;  %v301_v9 = vrot.slane %v293_v6, 7  ;;  %v304_v10 = vrot.slane %v294_v7, 6  ;;  %v307_v11 = vrot.slane %v295_v8, 5  ;;  %vm308_vm3 = vcmask 1043459   ;;  %v7440_v14 = vld [vmem:[%s8441_s1] sm:$0xff]  ;;  %v7445_v15 = vld [vmem:[%s8441_s1 + $0x8] sm:$0xff] }
  0x2c   : > { %vm314_vm4 = vcmask 1043456   ;;  %vm310_vm5 = vcmask 31744   ;;  %v7453_v17 = vld [vmem:[%s8442_s2 + $0x18] sm:$0xff]  ;;  %v7458_v18 = vld [vmem:[%s8442_s2 + $0x8] sm:$0xff]  ;;  %v7469_v19 = vld [vmem:[%s8442_s2 + $0x10] sm:$0xff]  ;;  %v7292_v22 = vmov 0  }
  0x2d   : > { %v303_v12 = vsel %vm302_vm0, %v301_v9, %v292_v5  ;;  %v7474_v20 = vld [vmem:[%s8442_s2] sm:$0xff]  ;;  %7221 = vset.pattern.permute.xlu0 %v7292_v22  ;;  %vm466_vm6 = vcmask 130048   ;;  %v7498_v27 = vld [vmem:[%s8441_s1 + $0x10] sm:$0xff]  ;;  %v7503_v28 = vld [vmem:[%s8441_s1 + $0x18] sm:$0xff]  ;;  %v7293_v33 = vmov 1966171168  }
  0x2e   : > { %v306_v13 = vsel %vm305_vm2, %v304_v10, %v303_v12  ;;  %v291_v21 = vld [vmem:[%s8443_s3] sm:$0xff]  ;;  %v1059_v29 = vld [vmem:[%s7429_s11 + $0x9] sm:$0x1]  ;;  %v1060_v30 = vld [vmem:[%s7429_s11 + $0x11] sm:$0x1]  ;;  %v626_v34 = vunpack.c.l.s4 %v7293_v33  ;;  %v629_v44 = vshrl.u32 %v628_v35, 7 }
  0x2f   : > { %v309_v16 = vsel %vm308_vm3, %v307_v11, %v306_v13  ;;  %615 = vperm.xlu0 %7221, %v291_v21   ;;  %v1067_v31 = vrot.slane %v1059_v29, 7  ;;  %v1058_v32 = vld [vmem:[%s7429_s11 + $0x1] sm:$0x1]  ;;  %v1061_v36 = vld [vmem:[%s7429_s11 + $0x19] sm:$0x1]  ;;  %v1069_v37 = vrot.slane %v1060_v30, 6 }
  0x30   : > { %6750 = vmatpush3.msk.msra.mxu0 %vm314_vm4, %v309_v16  ;;  %6755 = vmatpush3.msk.msra.mxu1 %vm314_vm4, %v309_v16  ;;  %v1071_v40 = vrot.slane %v1061_v36, 5  ;;  %v627_v43 = vunpack.c.0.s8 %v626_v34  ;;  %vm681_vm8 = vcmask 253952  }
  0x31   : > { %6752 = vmatmul.mubr.msk.f32.vlgmr.msra.gmra.mxu0 %vm310_vm5, %v7440_v14  ;;  %6757 = vmatmul.mubr.msk.f32.vlgmr.msra.gmra.mxu1 %vm310_vm5, %v7445_v15  ;;  %v1068_v38 = vsel %vm302_vm0, %v1067_v31, %v1058_v32 }
  0x32   : > { %6759 = vmatprep.subr.mxu0 %v7290_v4  ;;  %6766 = vmatprep.subr.mxu1 %v7290_v4  ;;  %v1070_v45 = vsel %vm305_vm2, %v1069_v37, %v1068_v38  ;;  %v7541_v52 = vsub.s32 %v627_v43, %v629_v44  ;;  %v1811_v43 = vld [vmem:[%s7429_s11 + $0xa] sm:$0x1]  ;;  %v1812_v44 = vld [vmem:[%s7429_s11 + $0x12] sm:$0x1] }
  0x33   : > { %6760 = vmatpush3.msra.mxu0 %v7453_v17  ;;  %6767 = vmatpush3.msra.mxu1 %v7458_v18  ;;  %v7539_v51 = vsel %vm308_vm3, %v1071_v40, %v1070_v45  ;;  %v1819_v45 = vrot.slane %v1811_v43, 7 }
  0x34   : > { %6761 = vmatprep.subr.mxu0 %v7290_v4  ;;  %6768 = vmatprep.subr.mxu1 %v7290_v4 }
  0x35   : > { %6762 = vmatpush3.msra.mxu0 %v7469_v19  ;;  %6769 = vmatpush3.msra.mxu1 %v7474_v20 }
  0x36   : > { %6763 = vmatprep.mubr.msk.f32.mxu0 %vm7291_vm1, %v7290_v4  ;;  %6770 = vmatprep.mubr.msk.f32.mxu1 %vm7291_vm1, %v7290_v4 }
  0x37   : > { %6773 = vmatprep.subr.mxu0 %v7290_v4  ;;  %6778 = vmatprep.subr.mxu1 %v7290_v4 }
  0xaa   : > { %v7532_v39 = vpop.permute.xlu0 %615 }
  0xf1   : > { %v383_v23 = vpop.f32.mrf.mxu0  ;;  %v459_v24 = vpop.f32.mrf.mxu1 }
  0xf2   : > { %6764 = vmatmul.mubr.msk.f32.vlgmr.msra.gmra.mxu0 %vm466_vm6, %v459_v24  ;;  %6771 = vmatmul.mubr.msk.f32.vlgmr.msra.gmra.mxu1 %vm466_vm6, %v383_v23 }
  0xf3   : > { %6774 = vmatpush3.msk.msra.mxu0 %vm314_vm4, %v309_v16  ;;  %6779 = vmatpush3.msk.msra.mxu1 %vm314_vm4, %v309_v16  ;;  %v6753_v25 = vpop.f32.mrf.mxu0  ;;  %v6758_v26 = vpop.f32.mrf.mxu1 }
  0xf4   : > { %6775 = vmatprep.mubr.msk.f32.mxu0 %vm7291_vm1, %v7290_v4  ;;  %6780 = vmatprep.mubr.msk.f32.mxu1 %vm7291_vm1, %v7290_v4 }
  0xf5   : > { %6783 = vmatprep.subr.mxu0 %v7290_v4  ;;  %6790 = vmatprep.subr.mxu1 %v7290_v4 }
  0xf6   : > { %6776 = vmatmul.mubr.msk.f32.vlgmr.msra.gmra.mxu0 %vm310_vm5, %v7498_v27  ;;  %6781 = vmatmul.mubr.msk.f32.vlgmr.msra.gmra.mxu1 %vm310_vm5, %v7503_v28 }
  0xf7   : > { %6784 = vmatpush3.msra.mxu0 %v7453_v17  ;;  %6791 = vmatpush3.msra.mxu1 %v7458_v18 }
  0xf8   : > { %6785 = vmatprep.subr.mxu0 %v7290_v4  ;;  %6792 = vmatprep.subr.mxu1 %v7290_v4 }
  0xf9   : > { %6786 = vmatpush3.msra.mxu0 %v7469_v19  ;;  %6793 = vmatpush3.msra.mxu1 %v7474_v20 }
  0xfa   : > { %6787 = vmatprep.mubr.msk.f32.mxu0 %vm7291_vm1, %v7290_v4  ;;  %6794 = vmatprep.mubr.msk.f32.mxu1 %vm7291_vm1, %v7290_v4 }
  0xfb   : > { %6797 = vmatprep.subr.mxu0 %v7290_v4  ;;  %6802 = vmatprep.subr.mxu1 %v7290_v4 }
 0x1b2   : > { %v536_v41 = vpop.f32.mrf.mxu0  ;;  %v609_v42 = vpop.f32.mrf.mxu1 }
 0x1b3   : > { %v610_v46 = vadd.f32 %v609_v42, %v536_v41 }
 0x1b4   : > { %v6765_v48 = vpop.f32.mrf.mxu0  ;;  %v6772_v49 = vpop.f32.mrf.mxu1 }
 0x1b5   : > { %v618_v50 = vadd.f32 %v7532_v39, %v610_v46  ;;  %v1810_v46 = vld [vmem:[%s7429_s11 + $0x2] sm:$0x1]  ;;  %v1813_v48 = vld [vmem:[%s7429_s11 + $0x1a] sm:$0x1]  ;;  %v1821_v49 = vrot.slane %v1812_v44, 6 }
 0x1b6   : > { %v760_v53 = vpop.f32.mrf.mxu0  ;;  %v836_v54 = vpop.f32.mrf.mxu1 }
 0x1b7   : > { %vm619_vm7 = vcmp.gt.f32.partialorder %v618_v50, 0.0  ;;  %v621_v55 = vmul.f32 %v7535_v47, %v618_v50  ;;  %6788 = vmatmul.mubr.msk.f32.vlgmr.msra.gmra.mxu0 %vm466_vm6, %v836_v54  ;;  %6795 = vmatmul.mubr.msk.f32.vlgmr.msra.gmra.mxu1 %vm466_vm6, %v760_v53 }
 0x1b8   : > { %6798 = vmatpush3.msk.msra.mxu0 %vm314_vm4, %v7539_v51  ;;  %6803 = vmatpush3.msk.msra.mxu1 %vm314_vm4, %v7539_v51  ;;  %v6777_v56 = vpop.f32.mrf.mxu0  ;;  %v6782_v57 = vpop.f32.mrf.mxu1 }
 0x1b9   : > { %v622_v58 = vsel %vm619_vm7, %v618_v50, %v621_v55  ;;  %6799 = vmatprep.mubr.msk.f32.mxu0 %vm7291_vm1, %v7290_v4  ;;  %6804 = vmatprep.mubr.msk.f32.mxu1 %vm7291_vm1, %v7290_v4  ;;  %v1820_v50 = vsel %vm302_vm0, %v1819_v45, %v1810_v46 }
 0x1ba   : > { %v624_v59 = vcombine.high %v622_v58, %v622_v58  ;;  %v631_v60 = vrot.slane %v622_v58, %v7541_v52  ;;  %6807 = vmatprep.subr.mxu0 %v7290_v4  ;;  %6814 = vmatprep.subr.mxu1 %v7290_v4  ;;  %v1822_v55 = vsel %vm305_vm2, %v1821_v49, %v1820_v50 }
 0x1bb   : > { %6800 = vmatmul.mubr.msk.f32.vlgmr.msra.gmra.mxu0 %vm310_vm5, %v7440_v14  ;;  %6805 = vmatmul.mubr.msk.f32.vlgmr.msra.gmra.mxu1 %vm310_vm5, %v7445_v15 }
 0x1bc   : > { %v638_v61 = vrot.slane %v624_v59, %v7541_v52  ;;  %v639_v62 = vcombine.high %v631_v60, %v631_v60  ;;  %v647_v63 = vrot.slane %v631_v60, %v7541_v52  ;;  %6808 = vmatpush3.msra.mxu0 %v7453_v17  ;;  %6815 = vmatpush3.msra.mxu1 %v7458_v18 }
 0x1bd   : > { %6809 = vmatprep.subr.mxu0 %v7290_v4  ;;  %6816 = vmatprep.subr.mxu1 %v7290_v4 }
 0x1be   : > { %v640_v0 = vcombine.high %v638_v61, %v638_v61  ;;  %v654_v1 = vrot.slane %v638_v61, %v7541_v52  ;;  %v661_v2 = vrot.slane %v639_v62, %v7541_v52  ;;  %v669_v3 = vcombine.high %v647_v63, %v647_v63  ;;  %682 = vst.msk [vmem:[%s7570_s6] sm:$0x1] %vm681_vm8, %v647_v63 }
 0x1bf   : > { %6810 = vmatpush3.msra.mxu0 %v7469_v19  ;;  %6817 = vmatpush3.msra.mxu1 %v7474_v20 }
 0x1c0   : > { %6811 = vmatprep.mubr.msk.f32.mxu0 %vm7291_vm1, %v7290_v4  ;;  %v668_v5 = vrot.slane %v640_v0, %v7541_v52  ;;  %v670_v6 = vcombine.high %v654_v1, %v654_v1  ;;  %v671_v7 = vcombine.high %v661_v2, %v661_v2  ;;  %683 = vst.msk [vmem:[%s7570_s6 + $0x10] sm:$0x1] %vm681_vm8, %v661_v2  ;;  %684 = vst.msk [vmem:[%s7570_s6 + $0x20] sm:$0x1] %vm681_vm8, %v669_v3 }
 0x1c1   : > { %686 = vst.msk [vmem:[%s7570_s6 + $0x40] sm:$0x1] %vm681_vm8, %v654_v1  ;;  %6818 = vmatprep.mubr.msk.f32.mxu1 %vm7291_vm1, %v7290_v4  ;;  %6821 = vmatprep.subr.mxu0 %v7290_v4 }
 0x1c2   : > { %6826 = vmatprep.subr.mxu1 %v7290_v4  ;;  %v672_v8 = vcombine.high %v668_v5, %v668_v5  ;;  %685 = vst.msk [vmem:[%s7570_s6 + $0x30] sm:$0x1] %vm681_vm8, %v671_v7  ;;  %687 = vst.msk [vmem:[%s7570_s6 + $0x50] sm:$0x1] %vm681_vm8, %v668_v5 }
 0x1c3   : > { %688 = vst.msk [vmem:[%s7570_s6 + $0x60] sm:$0x1] %vm681_vm8, %v670_v6 }
 0x1c4   : > { %689 = vst.msk [vmem:[%s7570_s6 + $0x70] sm:$0x1] %vm681_vm8, %v672_v8 }
 0x277   : > { %v911_v9 = vpop.f32.mrf.mxu0  ;;  %v984_v10 = vpop.f32.mrf.mxu1 }
 0x278   : > { %v985_v11 = vadd.f32 %v984_v10, %v911_v9 }
 0x279   : > { %v6789_v12 = vpop.f32.mrf.mxu0  ;;  %v6796_v13 = vpop.f32.mrf.mxu1 }
 0x27a   : > { %v988_v16 = vadd.f32 %v985_v11, %v7532_v39 }
 0x27b   : > { %v1144_v21 = vpop.f32.mrf.mxu0  ;;  %v1220_v22 = vpop.f32.mrf.mxu1 }
 0x27c   : > { %vm989_vm9 = vcmp.gt.f32.partialorder %v988_v16, 0.0  ;;  %v990_v23 = vmul.f32 %v988_v16, %v7535_v47  ;;  %6812 = vmatmul.mubr.msk.f32.vlgmr.msra.gmra.mxu0 %vm466_vm6, %v1220_v22  ;;  %6819 = vmatmul.mubr.msk.f32.vlgmr.msra.gmra.mxu1 %vm466_vm6, %v1144_v21 }
 0x27d   : > { %6822 = vmatpush3.msk.msra.mxu0 %vm314_vm4, %v7539_v51  ;;  %6827 = vmatpush3.msk.msra.mxu1 %vm314_vm4, %v7539_v51  ;;  %v6801_v24 = vpop.f32.mrf.mxu0  ;;  %v6806_v25 = vpop.f32.mrf.mxu1  ;;  %v1823_v51 = vrot.slane %v1813_v48, 5 }
 0x27e   : > { %v991_v26 = vsel %vm989_vm9, %v988_v16, %v990_v23  ;;  %6823 = vmatprep.mubr.msk.f32.mxu0 %vm7291_vm1, %v7290_v4  ;;  %6828 = vmatprep.mubr.msk.f32.mxu1 %vm7291_vm1, %v7290_v4 }
 0x27f   : > { %v993_v29 = vcombine.high %v991_v26, %v991_v26  ;;  %v1000_v30 = vrot.slane %v991_v26, %v7541_v52  ;;  %6831 = vmatprep.subr.mxu0 %v7290_v4  ;;  %6838 = vmatprep.subr.mxu1 %v7290_v4  ;;  %v1824_v60 = vsel %vm308_vm3, %v1823_v51, %v1822_v55 }
 0x280   : > { %6824 = vmatmul.mubr.msk.f32.vlgmr.msra.gmra.mxu0 %vm310_vm5, %v7498_v27  ;;  %6829 = vmatmul.mubr.msk.f32.vlgmr.msra.gmra.mxu1 %vm310_vm5, %v7503_v28 }
 0x281   : > { %v1007_v31 = vrot.slane %v993_v29, %v7541_v52  ;;  %v1008_v32 = vcombine.high %v1000_v30, %v1000_v30  ;;  %v1016_v33 = vrot.slane %v1000_v30, %v7541_v52  ;;  %6832 = vmatpush3.msra.mxu0 %v7453_v17  ;;  %6839 = vmatpush3.msra.mxu1 %v7458_v18 }
 0x282   : > { %6833 = vmatprep.subr.mxu0 %v7290_v4  ;;  %6840 = vmatprep.subr.mxu1 %v7290_v4 }
 0x283   : > { %v1009_v34 = vcombine.high %v1007_v31, %v1007_v31  ;;  %v1023_v35 = vrot.slane %v1007_v31, %v7541_v52  ;;  %v1030_v36 = vrot.slane %v1008_v32, %v7541_v52  ;;  %v1038_v37 = vcombine.high %v1016_v33, %v1016_v33  ;;  %1050 = vst.msk [vmem:[%s7570_s6 + $0x1] sm:$0x1] %vm681_vm8, %v1016_v33 }
 0x284   : > { %6834 = vmatpush3.msra.mxu0 %v7469_v19  ;;  %6841 = vmatpush3.msra.mxu1 %v7474_v20 }
 0x285   : > { %6835 = vmatprep.mubr.msk.f32.mxu0 %vm7291_vm1, %v7290_v4  ;;  %v1037_v38 = vrot.slane %v1009_v34, %v7541_v52  ;;  %v1039_v40 = vcombine.high %v1023_v35, %v1023_v35  ;;  %v1040_v41 = vcombine.high %v1030_v36, %v1030_v36  ;;  %1051 = vst.msk [vmem:[%s7570_s6 + $0x11] sm:$0x1] %vm681_vm8, %v1030_v36  ;;  %1052 = vst.msk [vmem:[%s7570_s6 + $0x21] sm:$0x1] %vm681_vm8, %v1038_v37 }
 0x286   : > { %1054 = vst.msk [vmem:[%s7570_s6 + $0x41] sm:$0x1] %vm681_vm8, %v1023_v35  ;;  %6842 = vmatprep.mubr.msk.f32.mxu1 %vm7291_vm1, %v7290_v4  ;;  %6845 = vmatprep.subr.mxu0 %v7290_v4 }
 0x287   : > { %6850 = vmatprep.subr.mxu1 %v7290_v4  ;;  %v1041_v42 = vcombine.high %v1037_v38, %v1037_v38  ;;  %1053 = vst.msk [vmem:[%s7570_s6 + $0x31] sm:$0x1] %vm681_vm8, %v1040_v41  ;;  %1055 = vst.msk [vmem:[%s7570_s6 + $0x51] sm:$0x1] %vm681_vm8, %v1037_v38 }
 0x288   : > { %1056 = vst.msk [vmem:[%s7570_s6 + $0x61] sm:$0x1] %vm681_vm8, %v1039_v40 }
 0x289   : > { %1057 = vst.msk [vmem:[%s7570_s6 + $0x71] sm:$0x1] %vm681_vm8, %v1041_v42 }
 0x33c   : > { %v1295_v53 = vpop.f32.mrf.mxu0  ;;  %v1368_v54 = vpop.f32.mrf.mxu1 }
 0x33d   : > { %v1369_v56 = vadd.f32 %v1368_v54, %v1295_v53  ;;  %v2563_v53 = vld [vmem:[%s7429_s11 + $0xb] sm:$0x1]  ;;  %v2564_v54 = vld [vmem:[%s7429_s11 + $0x13] sm:$0x1] }
 0x33e   : > { %v6813_v57 = vpop.f32.mrf.mxu0  ;;  %v6820_v58 = vpop.f32.mrf.mxu1  ;;  %v2571_v55 = vrot.slane %v2563_v53, 7 }
 0x33f   : > { %v1372_v59 = vadd.f32 %v1369_v56, %v7532_v39  ;;  %v2562_v56 = vld [vmem:[%s7429_s11 + $0x3] sm:$0x1]  ;;  %v2565_v57 = vld [vmem:[%s7429_s11 + $0x1b] sm:$0x1]  ;;  %v2573_v58 = vrot.slane %v2564_v54, 6 }
 0x340   : > { %v1512_v61 = vpop.f32.mrf.mxu0  ;;  %v1588_v62 = vpop.f32.mrf.mxu1 }
 0x341   : > { %vm1373_vm10 = vcmp.gt.f32.partialorder %v1372_v59, 0.0  ;;  %v1374_v63 = vmul.f32 %v1372_v59, %v7535_v47  ;;  %6836 = vmatmul.mubr.msk.f32.vlgmr.msra.gmra.mxu0 %vm466_vm6, %v1588_v62  ;;  %6843 = vmatmul.mubr.msk.f32.vlgmr.msra.gmra.mxu1 %vm466_vm6, %v1512_v61 }
 0x342   : > { %6846 = vmatpush3.msk.msra.mxu0 %vm314_vm4, %v1824_v60  ;;  %6851 = vmatpush3.msk.msra.mxu1 %vm314_vm4, %v1824_v60  ;;  %v6825_v0 = vpop.f32.mrf.mxu0  ;;  %v6830_v1 = vpop.f32.mrf.mxu1 }
 0x343   : > { %v1375_v2 = vsel %vm1373_vm10, %v1372_v59, %v1374_v63  ;;  %6847 = vmatprep.mubr.msk.f32.mxu0 %vm7291_vm1, %v7290_v4  ;;  %6852 = vmatprep.mubr.msk.f32.mxu1 %vm7291_vm1, %v7290_v4  ;;  %v2572_v59 = vsel %vm302_vm0, %v2571_v55, %v2562_v56  ;;  %v3316_v56 = vld [vmem:[%s7429_s11 + $0x14] sm:$0x1] }
 0x344   : > { %v1377_v3 = vcombine.high %v1375_v2, %v1375_v2  ;;  %v1384_v5 = vrot.slane %v1375_v2, %v7541_v52  ;;  %6855 = vmatprep.subr.mxu0 %v7290_v4  ;;  %6862 = vmatprep.subr.mxu1 %v7290_v4  ;;  %v2574_v63 = vsel %vm305_vm2, %v2573_v58, %v2572_v59  ;;  %v3314_v58 = vld [vmem:[%s7429_s11 + $0x4] sm:$0x1]  ;;  %v3317_v59 = vld [vmem:[%s7429_s11 + $0x1c] sm:$0x1] }
 0x345   : > { %6848 = vmatmul.mubr.msk.f32.vlgmr.msra.gmra.mxu0 %vm310_vm5, %v7440_v14  ;;  %6853 = vmatmul.mubr.msk.f32.vlgmr.msra.gmra.mxu1 %vm310_vm5, %v7445_v15 }
 0x346   : > { %v1391_v6 = vrot.slane %v1377_v3, %v7541_v52  ;;  %v1392_v7 = vcombine.high %v1384_v5, %v1384_v5  ;;  %v1400_v8 = vrot.slane %v1384_v5, %v7541_v52  ;;  %6856 = vmatpush3.msra.mxu0 %v7453_v17  ;;  %6863 = vmatpush3.msra.mxu1 %v7458_v18 }
 0x347   : > { %6857 = vmatprep.subr.mxu0 %v7290_v4  ;;  %6864 = vmatprep.subr.mxu1 %v7290_v4 }
 0x348   : > { %v1393_v9 = vcombine.high %v1391_v6, %v1391_v6  ;;  %v1407_v10 = vrot.slane %v1391_v6, %v7541_v52  ;;  %v1414_v11 = vrot.slane %v1392_v7, %v7541_v52  ;;  %v1422_v12 = vcombine.high %v1400_v8, %v1400_v8  ;;  %1434 = vst.msk [vmem:[%s7570_s6 + $0x2] sm:$0x1] %vm681_vm8, %v1400_v8 }
 0x349   : > { %6858 = vmatpush3.msra.mxu0 %v7469_v19  ;;  %6865 = vmatpush3.msra.mxu1 %v7474_v20 }
 0x34a   : > { %6859 = vmatprep.mubr.msk.f32.mxu0 %vm7291_vm1, %v7290_v4  ;;  %v1421_v13 = vrot.slane %v1393_v9, %v7541_v52  ;;  %v1423_v16 = vcombine.high %v1407_v10, %v1407_v10  ;;  %v1424_v21 = vcombine.high %v1414_v11, %v1414_v11  ;;  %1435 = vst.msk [vmem:[%s7570_s6 + $0x12] sm:$0x1] %vm681_vm8, %v1414_v11  ;;  %1436 = vst.msk [vmem:[%s7570_s6 + $0x22] sm:$0x1] %vm681_vm8, %v1422_v12 }
 0x34b   : > { %1438 = vst.msk [vmem:[%s7570_s6 + $0x42] sm:$0x1] %vm681_vm8, %v1407_v10  ;;  %6866 = vmatprep.mubr.msk.f32.mxu1 %vm7291_vm1, %v7290_v4  ;;  %6869 = vmatprep.subr.mxu0 %v7290_v4 }
 0x34c   : > { %6874 = vmatprep.subr.mxu1 %v7290_v4  ;;  %v1425_v22 = vcombine.high %v1421_v13, %v1421_v13  ;;  %1437 = vst.msk [vmem:[%s7570_s6 + $0x32] sm:$0x1] %vm681_vm8, %v1424_v21  ;;  %1439 = vst.msk [vmem:[%s7570_s6 + $0x52] sm:$0x1] %vm681_vm8, %v1421_v13 }
 0x34d   : > { %1440 = vst.msk [vmem:[%s7570_s6 + $0x62] sm:$0x1] %vm681_vm8, %v1423_v16 }
 0x34e   : > { %1441 = vst.msk [vmem:[%s7570_s6 + $0x72] sm:$0x1] %vm681_vm8, %v1425_v22 }
 0x401   : > { %v1663_v23 = vpop.f32.mrf.mxu0  ;;  %v1736_v24 = vpop.f32.mrf.mxu1 }
 0x402   : > { %v1737_v25 = vadd.f32 %v1736_v24, %v1663_v23 }
 0x403   : > { %v6837_v26 = vpop.f32.mrf.mxu0  ;;  %v6844_v29 = vpop.f32.mrf.mxu1 }
 0x404   : > { %v1740_v30 = vadd.f32 %v1737_v25, %v7532_v39 }
 0x405   : > { %v1896_v31 = vpop.f32.mrf.mxu0  ;;  %v1972_v32 = vpop.f32.mrf.mxu1 }
 0x406   : > { %vm1741_vm11 = vcmp.gt.f32.partialorder %v1740_v30, 0.0  ;;  %v1742_v33 = vmul.f32 %v1740_v30, %v7535_v47  ;;  %6860 = vmatmul.mubr.msk.f32.vlgmr.msra.gmra.mxu0 %vm466_vm6, %v1972_v32  ;;  %6867 = vmatmul.mubr.msk.f32.vlgmr.msra.gmra.mxu1 %vm466_vm6, %v1896_v31 }
 0x407   : > { %6870 = vmatpush3.msk.msra.mxu0 %vm314_vm4, %v1824_v60  ;;  %6875 = vmatpush3.msk.msra.mxu1 %vm314_vm4, %v1824_v60  ;;  %v6849_v34 = vpop.f32.mrf.mxu0  ;;  %v6854_v35 = vpop.f32.mrf.mxu1  ;;  %v2575_v60 = vrot.slane %v2565_v57, 5 }
 0x408   : > { %v1743_v36 = vsel %vm1741_vm11, %v1740_v30, %v1742_v33  ;;  %6871 = vmatprep.mubr.msk.f32.mxu0 %vm7291_vm1, %v7290_v4  ;;  %6876 = vmatprep.mubr.msk.f32.mxu1 %vm7291_vm1, %v7290_v4 }
 0x409   : > { %v1745_v37 = vcombine.high %v1743_v36, %v1743_v36  ;;  %v1752_v38 = vrot.slane %v1743_v36, %v7541_v52  ;;  %6879 = vmatprep.subr.mxu0 %v7290_v4  ;;  %6886 = vmatprep.subr.mxu1 %v7290_v4  ;;  %v2576_v5 = vsel %vm308_vm3, %v2575_v60, %v2574_v63  ;;  %v3325_v60 = vrot.slane %v3316_v56, 6 }
 0x40a   : > { %6872 = vmatmul.mubr.msk.f32.vlgmr.msra.gmra.mxu0 %vm310_vm5, %v7498_v27  ;;  %6877 = vmatmul.mubr.msk.f32.vlgmr.msra.gmra.mxu1 %vm310_vm5, %v7503_v28 }
 0x40b   : > { %v1759_v40 = vrot.slane %v1745_v37, %v7541_v52  ;;  %v1760_v41 = vcombine.high %v1752_v38, %v1752_v38  ;;  %v1768_v42 = vrot.slane %v1752_v38, %v7541_v52  ;;  %6880 = vmatpush3.msra.mxu0 %v7453_v17  ;;  %6887 = vmatpush3.msra.mxu1 %v7458_v18 }
 0x40c   : > { %6881 = vmatprep.subr.mxu0 %v7290_v4  ;;  %6888 = vmatprep.subr.mxu1 %v7290_v4 }
 0x40d   : > { %v1761_v43 = vcombine.high %v1759_v40, %v1759_v40  ;;  %v1775_v44 = vrot.slane %v1759_v40, %v7541_v52  ;;  %v1782_v45 = vrot.slane %v1760_v41, %v7541_v52  ;;  %v1790_v46 = vcombine.high %v1768_v42, %v1768_v42  ;;  %1802 = vst.msk [vmem:[%s7570_s6 + $0x3] sm:$0x1] %vm681_vm8, %v1768_v42 }
 0x40e   : > { %6882 = vmatpush3.msra.mxu0 %v7469_v19  ;;  %6889 = vmatpush3.msra.mxu1 %v7474_v20 }
 0x40f   : > { %6883 = vmatprep.mubr.msk.f32.mxu0 %vm7291_vm1, %v7290_v4  ;;  %v1789_v48 = vrot.slane %v1761_v43, %v7541_v52  ;;  %v1791_v49 = vcombine.high %v1775_v44, %v1775_v44  ;;  %v1792_v50 = vcombine.high %v1782_v45, %v1782_v45  ;;  %1803 = vst.msk [vmem:[%s7570_s6 + $0x13] sm:$0x1] %vm681_vm8, %v1782_v45  ;;  %1804 = vst.msk [vmem:[%s7570_s6 + $0x23] sm:$0x1] %vm681_vm8, %v1790_v46 }
 0x410   : > { %1806 = vst.msk [vmem:[%s7570_s6 + $0x43] sm:$0x1] %vm681_vm8, %v1775_v44  ;;  %6890 = vmatprep.mubr.msk.f32.mxu1 %vm7291_vm1, %v7290_v4  ;;  %6893 = vmatprep.subr.mxu0 %v7290_v4 }
 0x411   : > { %6898 = vmatprep.subr.mxu1 %v7290_v4  ;;  %v1793_v51 = vcombine.high %v1789_v48, %v1789_v48  ;;  %1805 = vst.msk [vmem:[%s7570_s6 + $0x33] sm:$0x1] %vm681_vm8, %v1792_v50  ;;  %1807 = vst.msk [vmem:[%s7570_s6 + $0x53] sm:$0x1] %vm681_vm8, %v1789_v48 }
 0x412   : > { %1808 = vst.msk [vmem:[%s7570_s6 + $0x63] sm:$0x1] %vm681_vm8, %v1791_v49 }
 0x413   : > { %1809 = vst.msk [vmem:[%s7570_s6 + $0x73] sm:$0x1] %vm681_vm8, %v1793_v51 }
 0x4c6   : > { %v2047_v61 = vpop.f32.mrf.mxu0  ;;  %v2120_v62 = vpop.f32.mrf.mxu1 }
 0x4c7   : > { %v2121_v0 = vadd.f32 %v2120_v62, %v2047_v61  ;;  %v3327_v62 = vrot.slane %v3317_v59, 5 }
 0x4c8   : > { %v6861_v1 = vpop.f32.mrf.mxu0  ;;  %v6868_v2 = vpop.f32.mrf.mxu1 }
 0x4c9   : > { %v2124_v3 = vadd.f32 %v2121_v0, %v7532_v39 }
 0x4ca   : > { %v2264_v6 = vpop.f32.mrf.mxu0  ;;  %v2340_v7 = vpop.f32.mrf.mxu1 }
 0x4cb   : > { %vm2125_vm12 = vcmp.gt.f32.partialorder %v2124_v3, 0.0  ;;  %v2126_v8 = vmul.f32 %v2124_v3, %v7535_v47  ;;  %6884 = vmatmul.mubr.msk.f32.vlgmr.msra.gmra.mxu0 %vm466_vm6, %v2340_v7  ;;  %6891 = vmatmul.mubr.msk.f32.vlgmr.msra.gmra.mxu1 %vm466_vm6, %v2264_v6 }
 0x4cc   : > { %6894 = vmatpush3.msk.msra.mxu0 %vm314_vm4, %v2576_v5  ;;  %6899 = vmatpush3.msk.msra.mxu1 %vm314_vm4, %v2576_v5  ;;  %v6873_v9 = vpop.f32.mrf.mxu0  ;;  %v6878_v10 = vpop.f32.mrf.mxu1 }
 0x4cd   : > { %v2127_v11 = vsel %vm2125_vm12, %v2124_v3, %v2126_v8  ;;  %6895 = vmatprep.mubr.msk.f32.mxu0 %vm7291_vm1, %v7290_v4  ;;  %6900 = vmatprep.mubr.msk.f32.mxu1 %vm7291_vm1, %v7290_v4 }
 0x4ce   : > { %v2129_v12 = vcombine.high %v2127_v11, %v2127_v11  ;;  %v2136_v13 = vrot.slane %v2127_v11, %v7541_v52  ;;  %6903 = vmatprep.subr.mxu0 %v7290_v4  ;;  %6910 = vmatprep.subr.mxu1 %v7290_v4 }
 0x4cf   : > { %6896 = vmatmul.mubr.msk.f32.vlgmr.msra.gmra.mxu0 %vm310_vm5, %v7440_v14  ;;  %6901 = vmatmul.mubr.msk.f32.vlgmr.msra.gmra.mxu1 %vm310_vm5, %v7445_v15 }
 0x4d0   : > { %v2143_v16 = vrot.slane %v2129_v12, %v7541_v52  ;;  %v2144_v21 = vcombine.high %v2136_v13, %v2136_v13  ;;  %v2152_v22 = vrot.slane %v2136_v13, %v7541_v52  ;;  %6904 = vmatpush3.msra.mxu0 %v7453_v17  ;;  %6911 = vmatpush3.msra.mxu1 %v7458_v18 }
 0x4d1   : > { %6905 = vmatprep.subr.mxu0 %v7290_v4  ;;  %6912 = vmatprep.subr.mxu1 %v7290_v4 }
 0x4d2   : > { %v2145_v23 = vcombine.high %v2143_v16, %v2143_v16  ;;  %v2159_v24 = vrot.slane %v2143_v16, %v7541_v52  ;;  %v2166_v25 = vrot.slane %v2144_v21, %v7541_v52  ;;  %v2174_v26 = vcombine.high %v2152_v22, %v2152_v22  ;;  %2186 = vst.msk [vmem:[%s7570_s6 + $0x4] sm:$0x1] %vm681_vm8, %v2152_v22 }
 0x4d3   : > { %6906 = vmatpush3.msra.mxu0 %v7469_v19  ;;  %6913 = vmatpush3.msra.mxu1 %v7474_v20 }
 0x4d4   : > { %6907 = vmatprep.mubr.msk.f32.mxu0 %vm7291_vm1, %v7290_v4  ;;  %v2173_v29 = vrot.slane %v2145_v23, %v7541_v52  ;;  %v2175_v30 = vcombine.high %v2159_v24, %v2159_v24  ;;  %v2176_v31 = vcombine.high %v2166_v25, %v2166_v25  ;;  %2187 = vst.msk [vmem:[%s7570_s6 + $0x14] sm:$0x1] %vm681_vm8, %v2166_v25  ;;  %2188 = vst.msk [vmem:[%s7570_s6 + $0x24] sm:$0x1] %vm681_vm8, %v2174_v26 }
 0x4d5   : > { %2190 = vst.msk [vmem:[%s7570_s6 + $0x44] sm:$0x1] %vm681_vm8, %v2159_v24  ;;  %6914 = vmatprep.mubr.msk.f32.mxu1 %vm7291_vm1, %v7290_v4  ;;  %6917 = vmatprep.subr.mxu0 %v7290_v4 }
 0x4d6   : > { %6922 = vmatprep.subr.mxu1 %v7290_v4  ;;  %v2177_v32 = vcombine.high %v2173_v29, %v2173_v29  ;;  %2189 = vst.msk [vmem:[%s7570_s6 + $0x34] sm:$0x1] %vm681_vm8, %v2176_v31  ;;  %2191 = vst.msk [vmem:[%s7570_s6 + $0x54] sm:$0x1] %vm681_vm8, %v2173_v29 }
 0x4d7   : > { %2192 = vst.msk [vmem:[%s7570_s6 + $0x64] sm:$0x1] %vm681_vm8, %v2175_v30 }
 0x4d8   : > { %2193 = vst.msk [vmem:[%s7570_s6 + $0x74] sm:$0x1] %vm681_vm8, %v2177_v32 }
 0x58b   : > { %v2415_v33 = vpop.f32.mrf.mxu0  ;;  %v2488_v34 = vpop.f32.mrf.mxu1 }
 0x58c   : > { %v2489_v35 = vadd.f32 %v2488_v34, %v2415_v33  ;;  %v7919_v33 = vld [vmem:[%s8442_s2 + $0x18] sm:$0xff]  ;;  %v7924_v34 = vld [vmem:[%s8442_s2 + $0x8] sm:$0xff] }
 0x58d   : > { %v6885_v36 = vpop.f32.mrf.mxu0  ;;  %v6892_v37 = vpop.f32.mrf.mxu1 }
 0x58e   : > { %v2492_v38 = vadd.f32 %v2489_v35, %v7532_v39  ;;  %v7933_v35 = vld [vmem:[%s8442_s2 + $0x10] sm:$0xff]  ;;  %v7938_v36 = vld [vmem:[%s8442_s2] sm:$0xff] }
 0x58f   : > { %v2648_v40 = vpop.f32.mrf.mxu0  ;;  %v2724_v41 = vpop.f32.mrf.mxu1 }
 0x590   : > { %vm2493_vm13 = vcmp.gt.f32.partialorder %v2492_v38, 0.0  ;;  %v2494_v42 = vmul.f32 %v2492_v38, %v7535_v47  ;;  %6908 = vmatmul.mubr.msk.f32.vlgmr.msra.gmra.mxu0 %vm466_vm6, %v2724_v41  ;;  %6915 = vmatmul.mubr.msk.f32.vlgmr.msra.gmra.mxu1 %vm466_vm6, %v2648_v40 }
 0x591   : > { %6918 = vmatpush3.msk.msra.mxu0 %vm314_vm4, %v2576_v5  ;;  %6923 = vmatpush3.msk.msra.mxu1 %vm314_vm4, %v2576_v5  ;;  %v6897_v43 = vpop.f32.mrf.mxu0  ;;  %v6902_v44 = vpop.f32.mrf.mxu1 }
 0x592   : > { %v2495_v45 = vsel %vm2493_vm13, %v2492_v38, %v2494_v42  ;;  %6919 = vmatprep.mubr.msk.f32.mxu0 %vm7291_vm1, %v7290_v4  ;;  %6924 = vmatprep.mubr.msk.f32.mxu1 %vm7291_vm1, %v7290_v4 }
 0x593   : > { %v2497_v46 = vcombine.high %v2495_v45, %v2495_v45  ;;  %v2504_v48 = vrot.slane %v2495_v45, %v7541_v52  ;;  %6927 = vmatprep.subr.mxu0 %v7290_v4  ;;  %6934 = vmatprep.subr.mxu1 %v7290_v4 }
 0x594   : > { %6920 = vmatmul.mubr.msk.f32.vlgmr.msra.gmra.mxu0 %vm310_vm5, %v7498_v27  ;;  %6925 = vmatmul.mubr.msk.f32.vlgmr.msra.gmra.mxu1 %vm310_vm5, %v7503_v28 }
 0x595   : > { %v2511_v49 = vrot.slane %v2497_v46, %v7541_v52  ;;  %v2512_v50 = vcombine.high %v2504_v48, %v2504_v48  ;;  %v2520_v51 = vrot.slane %v2504_v48, %v7541_v52  ;;  %6928 = vmatpush3.msra.mxu0 %v7453_v17  ;;  %6935 = vmatpush3.msra.mxu1 %v7458_v18 }
 0x596   : > { %6929 = vmatprep.subr.mxu0 %v7290_v4  ;;  %6936 = vmatprep.subr.mxu1 %v7290_v4 }
 0x597   : > { %v2513_v27 = vcombine.high %v2511_v49, %v2511_v49  ;;  %v2527_v53 = vrot.slane %v2511_v49, %v7541_v52  ;;  %v2534_v28 = vrot.slane %v2512_v50, %v7541_v52  ;;  %v2542_v54 = vcombine.high %v2520_v51, %v2520_v51  ;;  %2554 = vst.msk [vmem:[%s7570_s6 + $0x5] sm:$0x1] %vm681_vm8, %v2520_v51  ;;  %v7955_v50 = vld [vmem:[%s8441_s1 + $0x10] sm:$0xff]  ;;  %v7960_v51 = vld [vmem:[%s8441_s1 + $0x18] sm:$0xff] }
 0x598   : > { %6930 = vmatpush3.msra.mxu0 %v7469_v19  ;;  %6937 = vmatpush3.msra.mxu1 %v7474_v20  ;;  %v3315_v20 = vld [vmem:[%s7429_s11 + $0xc] sm:$0x1] }
 0x599   : > { %6931 = vmatprep.mubr.msk.f32.mxu0 %vm7291_vm1, %v7290_v4  ;;  %v2541_v17 = vrot.slane %v2513_v27, %v7541_v52  ;;  %v2543_v18 = vcombine.high %v2527_v53, %v2527_v53  ;;  %v2544_v55 = vcombine.high %v2534_v28, %v2534_v28  ;;  %2555 = vst.msk [vmem:[%s7570_s6 + $0x15] sm:$0x1] %vm681_vm8, %v2534_v28  ;;  %2556 = vst.msk [vmem:[%s7570_s6 + $0x25] sm:$0x1] %vm681_vm8, %v2542_v54 }
 0x59a   : > { %2558 = vst.msk [vmem:[%s7570_s6 + $0x45] sm:$0x1] %vm681_vm8, %v2527_v53  ;;  %6938 = vmatprep.mubr.msk.f32.mxu1 %vm7291_vm1, %v7290_v4  ;;  %6941 = vmatprep.subr.mxu0 %v7290_v4  ;;  %v3323_v57 = vrot.slane %v3315_v20, 7 }
 0x59b   : > { %6946 = vmatprep.subr.mxu1 %v7290_v4  ;;  %v2545_v19 = vcombine.high %v2541_v17, %v2541_v17  ;;  %2557 = vst.msk [vmem:[%s7570_s6 + $0x35] sm:$0x1] %vm681_vm8, %v2544_v55  ;;  %2559 = vst.msk [vmem:[%s7570_s6 + $0x55] sm:$0x1] %vm681_vm8, %v2541_v17 }
 0x59c   : > { %2560 = vst.msk [vmem:[%s7570_s6 + $0x65] sm:$0x1] %vm681_vm8, %v2543_v18  ;;  %v3324_v61 = vsel %vm302_vm0, %v3323_v57, %v3314_v58 }
 0x59d   : > { %2561 = vst.msk [vmem:[%s7570_s6 + $0x75] sm:$0x1] %vm681_vm8, %v2545_v19  ;;  %v3326_v1 = vsel %vm305_vm2, %v3325_v60, %v3324_v61  ;;  %v4067_v61 = vld [vmem:[%s7429_s11 + $0xd] sm:$0x1] }
 0x59e   : > { %v7871_v7 = vsel %vm308_vm3, %v3327_v62, %v3326_v1  ;;  %v4068_v62 = vld [vmem:[%s7429_s11 + $0x15] sm:$0x1]  ;;  %v4069_v1 = vld [vmem:[%s7429_s11 + $0x1d] sm:$0x1] }
 0x650   : > { %v2799_v63 = vpop.f32.mrf.mxu0  ;;  %v2872_v0 = vpop.f32.mrf.mxu1 }
 0x651   : > { %v2873_v2 = vadd.f32 %v2872_v0, %v2799_v63  ;;  %v4075_v63 = vrot.slane %v4067_v61, 7  ;;  %v4066_v0 = vld [vmem:[%s7429_s11 + $0x5] sm:$0x1] }
 0x652   : > { %v6909_v3 = vpop.f32.mrf.mxu0  ;;  %v6916_v5 = vpop.f32.mrf.mxu1 }
 0x653   : > { %v2876_v6 = vadd.f32 %v2873_v2, %v7532_v39  ;;  %v4077_v2 = vrot.slane %v4068_v62, 6  ;;  %v4076_v3 = vsel %vm302_vm0, %v4075_v63, %v4066_v0  ;;  %v4079_v5 = vrot.slane %v4069_v1, 5 }
 0x654   : > { %v3016_v8 = vpop.f32.mrf.mxu0  ;;  %v3092_v9 = vpop.f32.mrf.mxu1 }
 0x655   : > { %vm2877_vm14 = vcmp.gt.f32.partialorder %v2876_v6, 0.0  ;;  %v2878_v10 = vmul.f32 %v2876_v6, %v7535_v47  ;;  %6932 = vmatmul.mubr.msk.f32.vlgmr.msra.gmra.mxu0 %vm466_vm6, %v3092_v9  ;;  %6939 = vmatmul.mubr.msk.f32.vlgmr.msra.gmra.mxu1 %vm466_vm6, %v3016_v8  ;;  %v4078_v8 = vsel %vm305_vm2, %v4077_v2, %v4076_v3 }
 0x656   : > { %6942 = vmatpush3.msk.msra.mxu0 %vm314_vm4, %v7871_v7  ;;  %6947 = vmatpush3.msk.msra.mxu1 %vm314_vm4, %v7871_v7  ;;  %v6921_v11 = vpop.f32.mrf.mxu0  ;;  %v6926_v12 = vpop.f32.mrf.mxu1 }
 0x657   : > { %v2879_v13 = vsel %vm2877_vm14, %v2876_v6, %v2878_v10  ;;  %6943 = vmatprep.mubr.msk.f32.mxu0 %vm7291_vm1, %v7290_v4  ;;  %6948 = vmatprep.mubr.msk.f32.mxu1 %vm7291_vm1, %v7290_v4 }
 0x658   : > { %v2881_v16 = vcombine.high %v2879_v13, %v2879_v13  ;;  %v2888_v21 = vrot.slane %v2879_v13, %v7541_v52  ;;  %6951 = vmatprep.subr.mxu0 %v7290_v4  ;;  %6958 = vmatprep.subr.mxu1 %v7290_v4  ;;  %v8014_v13 = vsel %vm308_vm3, %v4079_v5, %v4078_v8 }
 0x659   : > { %6944 = vmatmul.mubr.msk.f32.vlgmr.msra.gmra.mxu0 %vm310_vm5, %v7440_v14  ;;  %6949 = vmatmul.mubr.msk.f32.vlgmr.msra.gmra.mxu1 %vm310_vm5, %v7445_v15 }
 0x65a   : > { %v2895_v22 = vrot.slane %v2881_v16, %v7541_v52  ;;  %v2896_v23 = vcombine.high %v2888_v21, %v2888_v21  ;;  %v2904_v24 = vrot.slane %v2888_v21, %v7541_v52  ;;  %6955 = vmatprep.mubr.msk.f32.mxu0 %vm7291_vm1, %v7290_v4  ;;  %6962 = vmatprep.mubr.msk.f32.mxu1 %vm7291_vm1, %v7290_v4 }
 0x65b   : > { %6952 = vmatpush3.msra.mxu0 %v7919_v33  ;;  %6959 = vmatpush3.msra.mxu1 %v7924_v34 }
 0x65c   : > { %v2897_v14 = vcombine.high %v2895_v22, %v2895_v22  ;;  %v2911_v25 = vrot.slane %v2895_v22, %v7541_v52  ;;  %v2918_v15 = vrot.slane %v2896_v23, %v7541_v52  ;;  %v2926_v26 = vcombine.high %v2904_v24, %v2904_v24  ;;  %2938 = vst.msk [vmem:[%s7570_s6 + $0x6] sm:$0x1] %vm681_vm8, %v2904_v24 }
 0x65d   : > { %6953 = vmatprep.subr.mxu0 %v7290_v4  ;;  %6960 = vmatprep.subr.mxu1 %v7290_v4 }
 0x65e   : > { %v2925_v29 = vrot.slane %v2897_v14, %v7541_v52  ;;  %v2927_v30 = vcombine.high %v2911_v25, %v2911_v25  ;;  %v2928_v31 = vcombine.high %v2918_v15, %v2918_v15  ;;  %2939 = vst.msk [vmem:[%s7570_s6 + $0x16] sm:$0x1] %vm681_vm8, %v2918_v15  ;;  %2940 = vst.msk [vmem:[%s7570_s6 + $0x26] sm:$0x1] %vm681_vm8, %v2926_v26  ;;  %6954 = vmatpush3.msra.mxu0 %v7933_v35  ;;  %v8026_v14 = vld [vmem:[%s8441_s1] sm:$0xff] }
 0x65f   : > { %2942 = vst.msk [vmem:[%s7570_s6 + $0x46] sm:$0x1] %vm681_vm8, %v2911_v25  ;;  %6961 = vmatpush3.msra.mxu1 %v7938_v36  ;;  %6965 = vmatprep.subr.mxu0 %v7290_v4  ;;  %v8031_v25 = vld [vmem:[%s8441_s1 + $0x8] sm:$0xff] }
 0x660   : > { %v2929_v32 = vcombine.high %v2925_v29, %v2925_v29  ;;  %2941 = vst.msk [vmem:[%s7570_s6 + $0x36] sm:$0x1] %vm681_vm8, %v2928_v31  ;;  %2943 = vst.msk [vmem:[%s7570_s6 + $0x56] sm:$0x1] %vm681_vm8, %v2925_v29  ;;  %6970 = vmatprep.subr.mxu1 %v7290_v4 }
 0x661   : > { %2944 = vst.msk [vmem:[%s7570_s6 + $0x66] sm:$0x1] %vm681_vm8, %v2927_v30 }
 0x662   : > { %2945 = vst.msk [vmem:[%s7570_s6 + $0x76] sm:$0x1] %vm681_vm8, %v2929_v32 }
 0x715   : > { %v3167_v37 = vpop.f32.mrf.mxu0  ;;  %v3240_v38 = vpop.f32.mrf.mxu1 }
 0x716   : > { %v3241_v40 = vadd.f32 %v3240_v38, %v3167_v37 }
 0x717   : > { %v6933_v41 = vpop.f32.mrf.mxu0  ;;  %v6940_v42 = vpop.f32.mrf.mxu1 }
 0x718   : > { %v3244_v43 = vadd.f32 %v3241_v40, %v7532_v39 }
 0x719   : > { %v3400_v44 = vpop.f32.mrf.mxu0  ;;  %v3476_v45 = vpop.f32.mrf.mxu1 }
 0x71a   : > { %vm3245_vm15 = vcmp.gt.f32.partialorder %v3244_v43, 0.0  ;;  %v3246_v46 = vmul.f32 %v3244_v43, %v7535_v47  ;;  %6956 = vmatmul.mubr.msk.f32.vlgmr.msra.gmra.mxu0 %vm466_vm6, %v3476_v45  ;;  %6963 = vmatmul.mubr.msk.f32.vlgmr.msra.gmra.mxu1 %vm466_vm6, %v3400_v44 }
 0x71b   : > { %6966 = vmatpush3.msk.msra.mxu0 %vm314_vm4, %v7871_v7  ;;  %6971 = vmatpush3.msk.msra.mxu1 %vm314_vm4, %v7871_v7  ;;  %v6945_v48 = vpop.f32.mrf.mxu0  ;;  %v6950_v49 = vpop.f32.mrf.mxu1 }
 0x71c   : > { %v3247_v27 = vsel %vm3245_vm15, %v3244_v43, %v3246_v46  ;;  %6967 = vmatprep.mubr.msk.f32.mxu0 %vm7291_vm1, %v7290_v4  ;;  %6972 = vmatprep.mubr.msk.f32.mxu1 %vm7291_vm1, %v7290_v4 }
 0x71d   : > { %v3249_v53 = vcombine.high %v3247_v27, %v3247_v27  ;;  %v3256_v28 = vrot.slane %v3247_v27, %v7541_v52  ;;  %6975 = vmatprep.subr.mxu0 %v7290_v4  ;;  %6982 = vmatprep.subr.mxu1 %v7290_v4 }
 0x71e   : > { %6968 = vmatmul.mubr.msk.f32.vlgmr.msra.gmra.mxu0 %vm310_vm5, %v7955_v50  ;;  %6973 = vmatmul.mubr.msk.f32.vlgmr.msra.gmra.mxu1 %vm310_vm5, %v7960_v51 }
 0x71f   : > { %v3263_v54 = vrot.slane %v3249_v53, %v7541_v52  ;;  %v3264_v17 = vcombine.high %v3256_v28, %v3256_v28  ;;  %v3272_v18 = vrot.slane %v3256_v28, %v7541_v52  ;;  %6976 = vmatpush3.msra.mxu0 %v7919_v33  ;;  %6983 = vmatpush3.msra.mxu1 %v7924_v34 }
 0x720   : > { %6977 = vmatprep.subr.mxu0 %v7290_v4  ;;  %6984 = vmatprep.subr.mxu1 %v7290_v4 }
 0x721   : > { %v3265_v55 = vcombine.high %v3263_v54, %v3263_v54  ;;  %v3279_v19 = vrot.slane %v3263_v54, %v7541_v52  ;;  %v3286_v20 = vrot.slane %v3264_v17, %v7541_v52  ;;  %v3294_v56 = vcombine.high %v3272_v18, %v3272_v18  ;;  %3306 = vst.msk [vmem:[%s7570_s6 + $0x7] sm:$0x1] %vm681_vm8, %v3272_v18 }
 0x722   : > { %6978 = vmatpush3.msra.mxu0 %v7933_v35  ;;  %6985 = vmatpush3.msra.mxu1 %v7938_v36 }
 0x723   : > { %6979 = vmatprep.mubr.msk.f32.mxu0 %vm7291_vm1, %v7290_v4  ;;  %v3293_v57 = vrot.slane %v3265_v55, %v7541_v52  ;;  %v3295_v58 = vcombine.high %v3279_v19, %v3279_v19  ;;  %v3296_v59 = vcombine.high %v3286_v20, %v3286_v20  ;;  %3307 = vst.msk [vmem:[%s7570_s6 + $0x17] sm:$0x1] %vm681_vm8, %v3286_v20  ;;  %3308 = vst.msk [vmem:[%s7570_s6 + $0x27] sm:$0x1] %vm681_vm8, %v3294_v56 }
 0x724   : > { %3310 = vst.msk [vmem:[%s7570_s6 + $0x47] sm:$0x1] %vm681_vm8, %v3279_v19  ;;  %6986 = vmatprep.mubr.msk.f32.mxu1 %vm7291_vm1, %v7290_v4  ;;  %6989 = vmatprep.subr.mxu0 %v7290_v4 }
 0x725   : > { %6994 = vmatprep.subr.mxu1 %v7290_v4  ;;  %v3297_v60 = vcombine.high %v3293_v57, %v3293_v57  ;;  %3309 = vst.msk [vmem:[%s7570_s6 + $0x37] sm:$0x1] %vm681_vm8, %v3296_v59  ;;  %3311 = vst.msk [vmem:[%s7570_s6 + $0x57] sm:$0x1] %vm681_vm8, %v3293_v57 }
 0x726   : > { %3312 = vst.msk [vmem:[%s7570_s6 + $0x67] sm:$0x1] %vm681_vm8, %v3295_v58 }
 0x727   : > { %3313 = vst.msk [vmem:[%s7570_s6 + $0x77] sm:$0x1] %vm681_vm8, %v3297_v60 }
 0x7da   : > { %v3551_v6 = vpop.f32.mrf.mxu0  ;;  %v3624_v7 = vpop.f32.mrf.mxu1 }
 0x7db   : > { %v3625_v9 = vadd.f32 %v3624_v7, %v3551_v6  ;;  %v4819_v6 = vld [vmem:[%s7429_s11 + $0xe] sm:$0x1]  ;;  %v4820_v7 = vld [vmem:[%s7429_s11 + $0x16] sm:$0x1] }
 0x7dc   : > { %v6957_v10 = vpop.f32.mrf.mxu0  ;;  %v6964_v11 = vpop.f32.mrf.mxu1  ;;  %v4827_v8 = vrot.slane %v4819_v6, 7 }
 0x7dd   : > { %v3628_v12 = vadd.f32 %v3625_v9, %v7532_v39  ;;  %v4818_v9 = vld [vmem:[%s7429_s11 + $0x6] sm:$0x1]  ;;  %v4821_v10 = vld [vmem:[%s7429_s11 + $0x1e] sm:$0x1]  ;;  %v4829_v11 = vrot.slane %v4820_v7, 6 }
 0x7de   : > { %v3768_v16 = vpop.f32.mrf.mxu0  ;;  %v3844_v21 = vpop.f32.mrf.mxu1 }
 0x7df   : > { %vm3629_vm7 = vcmp.gt.f32.partialorder %v3628_v12, 0.0  ;;  %v3630_v22 = vmul.f32 %v3628_v12, %v7535_v47  ;;  %6980 = vmatmul.mubr.msk.f32.vlgmr.msra.gmra.mxu0 %vm466_vm6, %v3844_v21  ;;  %6987 = vmatmul.mubr.msk.f32.vlgmr.msra.gmra.mxu1 %vm466_vm6, %v3768_v16 }
 0x7e0   : > { %6990 = vmatpush3.msk.msra.mxu0 %vm314_vm4, %v8014_v13  ;;  %6995 = vmatpush3.msk.msra.mxu1 %vm314_vm4, %v8014_v13  ;;  %v6969_v23 = vpop.f32.mrf.mxu0  ;;  %v6974_v24 = vpop.f32.mrf.mxu1 }
 0x7e1   : > { %v3631_v15 = vsel %vm3629_vm7, %v3628_v12, %v3630_v22  ;;  %6991 = vmatprep.mubr.msk.f32.mxu0 %vm7291_vm1, %v7290_v4  ;;  %6996 = vmatprep.mubr.msk.f32.mxu1 %vm7291_vm1, %v7290_v4  ;;  %v4828_v12 = vsel %vm302_vm0, %v4827_v8, %v4818_v9 }
 0x7e2   : > { %v3633_v26 = vcombine.high %v3631_v15, %v3631_v15  ;;  %v3640_v29 = vrot.slane %v3631_v15, %v7541_v52  ;;  %6999 = vmatprep.subr.mxu0 %v7290_v4  ;;  %7006 = vmatprep.subr.mxu1 %v7290_v4  ;;  %v4830_v22 = vsel %vm305_vm2, %v4829_v11, %v4828_v12 }
 0x7e3   : > { %6992 = vmatmul.mubr.msk.f32.vlgmr.msra.gmra.mxu0 %vm310_vm5, %v8026_v14  ;;  %6997 = vmatmul.mubr.msk.f32.vlgmr.msra.gmra.mxu1 %vm310_vm5, %v8031_v25 }
 0x7e4   : > { %v3647_v30 = vrot.slane %v3633_v26, %v7541_v52  ;;  %v3648_v31 = vcombine.high %v3640_v29, %v3640_v29  ;;  %v3656_v32 = vrot.slane %v3640_v29, %v7541_v52  ;;  %7000 = vmatpush3.msra.mxu0 %v7919_v33  ;;  %7007 = vmatpush3.msra.mxu1 %v7924_v34 }
 0x7e5   : > { %7001 = vmatprep.subr.mxu0 %v7290_v4  ;;  %7008 = vmatprep.subr.mxu1 %v7290_v4 }
 0x7e6   : > { %v3649_v37 = vcombine.high %v3647_v30, %v3647_v30  ;;  %v3663_v38 = vrot.slane %v3647_v30, %v7541_v52  ;;  %v3670_v40 = vrot.slane %v3648_v31, %v7541_v52  ;;  %v3678_v41 = vcombine.high %v3656_v32, %v3656_v32  ;;  %3690 = vst.msk [vmem:[%s7570_s6 + $0x8] sm:$0x1] %vm681_vm8, %v3656_v32 }
 0x7e7   : > { %7002 = vmatpush3.msra.mxu0 %v7933_v35  ;;  %7009 = vmatpush3.msra.mxu1 %v7938_v36 }
 0x7e8   : > { %7003 = vmatprep.mubr.msk.f32.mxu0 %vm7291_vm1, %v7290_v4  ;;  %v3677_v42 = vrot.slane %v3649_v37, %v7541_v52  ;;  %v3679_v43 = vcombine.high %v3663_v38, %v3663_v38  ;;  %v3680_v44 = vcombine.high %v3670_v40, %v3670_v40  ;;  %3691 = vst.msk [vmem:[%s7570_s6 + $0x18] sm:$0x1] %vm681_vm8, %v3670_v40  ;;  %3692 = vst.msk [vmem:[%s7570_s6 + $0x28] sm:$0x1] %vm681_vm8, %v3678_v41 }
 0x7e9   : > { %3694 = vst.msk [vmem:[%s7570_s6 + $0x48] sm:$0x1] %vm681_vm8, %v3663_v38  ;;  %7010 = vmatprep.mubr.msk.f32.mxu1 %vm7291_vm1, %v7290_v4  ;;  %7013 = vmatprep.subr.mxu0 %v7290_v4 }
 0x7ea   : > { %7018 = vmatprep.subr.mxu1 %v7290_v4  ;;  %v3681_v45 = vcombine.high %v3677_v42, %v3677_v42  ;;  %3693 = vst.msk [vmem:[%s7570_s6 + $0x38] sm:$0x1] %vm681_vm8, %v3680_v44  ;;  %3695 = vst.msk [vmem:[%s7570_s6 + $0x58] sm:$0x1] %vm681_vm8, %v3677_v42 }
 0x7eb   : > { %3696 = vst.msk [vmem:[%s7570_s6 + $0x68] sm:$0x1] %vm681_vm8, %v3679_v43 }
 0x7ec   : > { %3697 = vst.msk [vmem:[%s7570_s6 + $0x78] sm:$0x1] %vm681_vm8, %v3681_v45 }
 0x89f   : > { %v3919_v46 = vpop.f32.mrf.mxu0  ;;  %v3992_v48 = vpop.f32.mrf.mxu1 }
 0x8a0   : > { %v3993_v49 = vadd.f32 %v3992_v48, %v3919_v46 }
 0x8a1   : > { %v6981_v27 = vpop.f32.mrf.mxu0  ;;  %v6988_v53 = vpop.f32.mrf.mxu1 }
 0x8a2   : > { %v3996_v28 = vadd.f32 %v3993_v49, %v7532_v39 }
 0x8a3   : > { %v4152_v54 = vpop.f32.mrf.mxu0  ;;  %v4228_v17 = vpop.f32.mrf.mxu1 }
 0x8a4   : > { %vm3997_vm9 = vcmp.gt.f32.partialorder %v3996_v28, 0.0  ;;  %v3998_v18 = vmul.f32 %v3996_v28, %v7535_v47  ;;  %7004 = vmatmul.mubr.msk.f32.vlgmr.msra.gmra.mxu0 %vm466_vm6, %v4228_v17  ;;  %7011 = vmatmul.mubr.msk.f32.vlgmr.msra.gmra.mxu1 %vm466_vm6, %v4152_v54 }
 0x8a5   : > { %7014 = vmatpush3.msk.msra.mxu0 %vm314_vm4, %v8014_v13  ;;  %7019 = vmatpush3.msk.msra.mxu1 %vm314_vm4, %v8014_v13  ;;  %v6993_v55 = vpop.f32.mrf.mxu0  ;;  %v6998_v19 = vpop.f32.mrf.mxu1  ;;  %v4831_v13 = vrot.slane %v4821_v10, 5 }
 0x8a6   : > { %v3999_v20 = vsel %vm3997_vm9, %v3996_v28, %v3998_v18  ;;  %7015 = vmatprep.mubr.msk.f32.mxu0 %vm7291_vm1, %v7290_v4  ;;  %7020 = vmatprep.mubr.msk.f32.mxu1 %vm7291_vm1, %v7290_v4 }
 0x8a7   : > { %v4001_v56 = vcombine.high %v3999_v20, %v3999_v20  ;;  %v4008_v57 = vrot.slane %v3999_v20, %v7541_v52  ;;  %7023 = vmatprep.subr.mxu0 %v7290_v4  ;;  %7030 = vmatprep.subr.mxu1 %v7290_v4  ;;  %v4832_v29 = vsel %vm308_vm3, %v4831_v13, %v4830_v22 }
 0x8a8   : > { %7016 = vmatmul.mubr.msk.f32.vlgmr.msra.gmra.mxu0 %vm310_vm5, %v7955_v50  ;;  %7021 = vmatmul.mubr.msk.f32.vlgmr.msra.gmra.mxu1 %vm310_vm5, %v7960_v51 }
 0x8a9   : > { %v4015_v58 = vrot.slane %v4001_v56, %v7541_v52  ;;  %v4016_v59 = vcombine.high %v4008_v57, %v4008_v57  ;;  %v4024_v60 = vrot.slane %v4008_v57, %v7541_v52  ;;  %7024 = vmatpush3.msra.mxu0 %v7919_v33  ;;  %7031 = vmatpush3.msra.mxu1 %v7924_v34 }
 0x8aa   : > { %7025 = vmatprep.subr.mxu0 %v7290_v4  ;;  %7032 = vmatprep.subr.mxu1 %v7290_v4 }
 0x8ab   : > { %v4017_v61 = vcombine.high %v4015_v58, %v4015_v58  ;;  %v4031_v62 = vrot.slane %v4015_v58, %v7541_v52  ;;  %v4038_v63 = vrot.slane %v4016_v59, %v7541_v52  ;;  %v4046_v0 = vcombine.high %v4024_v60, %v4024_v60  ;;  %4058 = vst.msk [vmem:[%s7570_s6 + $0x9] sm:$0x1] %vm681_vm8, %v4024_v60 }
 0x8ac   : > { %7026 = vmatpush3.msra.mxu0 %v7933_v35  ;;  %7033 = vmatpush3.msra.mxu1 %v7938_v36 }
 0x8ad   : > { %7027 = vmatprep.mubr.msk.f32.mxu0 %vm7291_vm1, %v7290_v4  ;;  %v4045_v1 = vrot.slane %v4017_v61, %v7541_v52  ;;  %v4047_v2 = vcombine.high %v4031_v62, %v4031_v62  ;;  %v4048_v3 = vcombine.high %v4038_v63, %v4038_v63  ;;  %4059 = vst.msk [vmem:[%s7570_s6 + $0x19] sm:$0x1] %vm681_vm8, %v4038_v63  ;;  %4060 = vst.msk [vmem:[%s7570_s6 + $0x29] sm:$0x1] %vm681_vm8, %v4046_v0 }
 0x8ae   : > { %4062 = vst.msk [vmem:[%s7570_s6 + $0x49] sm:$0x1] %vm681_vm8, %v4031_v62  ;;  %7034 = vmatprep.mubr.msk.f32.mxu1 %vm7291_vm1, %v7290_v4  ;;  %7037 = vmatprep.subr.mxu0 %v7290_v4 }
 0x8af   : > { %7042 = vmatprep.subr.mxu1 %v7290_v4  ;;  %v4049_v5 = vcombine.high %v4045_v1, %v4045_v1  ;;  %4061 = vst.msk [vmem:[%s7570_s6 + $0x39] sm:$0x1] %vm681_vm8, %v4048_v3  ;;  %4063 = vst.msk [vmem:[%s7570_s6 + $0x59] sm:$0x1] %vm681_vm8, %v4045_v1 }
 0x8b0   : > { %4064 = vst.msk [vmem:[%s7570_s6 + $0x69] sm:$0x1] %vm681_vm8, %v4047_v2 }
 0x8b1   : > { %4065 = vst.msk [vmem:[%s7570_s6 + $0x79] sm:$0x1] %vm681_vm8, %v4049_v5 }
 0x964   : > { %v4303_v16 = vpop.f32.mrf.mxu0  ;;  %v4376_v21 = vpop.f32.mrf.mxu1 }
 0x965   : > { %v4377_v23 = vadd.f32 %v4376_v21, %v4303_v16  ;;  %v5571_v16 = vld [vmem:[%s7429_s11 + $0xf] sm:$0x1]  ;;  %v5572_v21 = vld [vmem:[%s7429_s11 + $0x17] sm:$0x1] }
 0x966   : > { %v7005_v24 = vpop.f32.mrf.mxu0  ;;  %v7012_v15 = vpop.f32.mrf.mxu1  ;;  %v5579_v22 = vrot.slane %v5571_v16, 7 }
 0x967   : > { %v4380_v26 = vadd.f32 %v4377_v23, %v7532_v39  ;;  %v5570_v23 = vld [vmem:[%s7429_s11 + $0x7] sm:$0x1]  ;;  %v5573_v24 = vld [vmem:[%s7429_s11 + $0x1f] sm:$0x1]  ;;  %v5581_v15 = vrot.slane %v5572_v21, 6  ;;  %s6323_s11 = scalar_lea.sflag [#allocation5], %s7420_s7 }
 0x968   : > { %v4520_v30 = vpop.f32.mrf.mxu0  ;;  %v4596_v31 = vpop.f32.mrf.mxu1 }
 0x969   : > { %vm4381_vm10 = vcmp.gt.f32.partialorder %v4380_v26, 0.0  ;;  %v4382_v32 = vmul.f32 %v4380_v26, %v7535_v47  ;;  %7028 = vmatmul.mubr.msk.f32.vlgmr.msra.gmra.mxu0 %vm466_vm6, %v4596_v31  ;;  %7035 = vmatmul.mubr.msk.f32.vlgmr.msra.gmra.mxu1 %vm466_vm6, %v4520_v30 }
 0x96a   : > { %7038 = vmatpush3.msk.msra.mxu0 %vm314_vm4, %v4832_v29  ;;  %7043 = vmatpush3.msk.msra.mxu1 %vm314_vm4, %v4832_v29  ;;  %v7017_v37 = vpop.f32.mrf.mxu0  ;;  %v7022_v38 = vpop.f32.mrf.mxu1 }
 0x96b   : > { %v4383_v40 = vsel %vm4381_vm10, %v4380_v26, %v4382_v32  ;;  %7039 = vmatprep.mubr.msk.f32.mxu0 %vm7291_vm1, %v7290_v4  ;;  %7044 = vmatprep.mubr.msk.f32.mxu1 %vm7291_vm1, %v7290_v4  ;;  %v5580_v26 = vsel %vm302_vm0, %v5579_v22, %v5570_v23 }
 0x96c   : > { %v4385_v41 = vcombine.high %v4383_v40, %v4383_v40  ;;  %v4392_v42 = vrot.slane %v4383_v40, %v7541_v52  ;;  %7047 = vmatprep.subr.mxu0 %v7290_v4  ;;  %7054 = vmatprep.subr.mxu1 %v7290_v4  ;;  %v5582_v32 = vsel %vm305_vm2, %v5581_v15, %v5580_v26 }
 0x96d   : > { %7040 = vmatmul.mubr.msk.f32.vlgmr.msra.gmra.mxu0 %vm310_vm5, %v8026_v14  ;;  %7045 = vmatmul.mubr.msk.f32.vlgmr.msra.gmra.mxu1 %vm310_vm5, %v8031_v25 }
 0x96e   : > { %v4399_v43 = vrot.slane %v4385_v41, %v7541_v52  ;;  %v4400_v44 = vcombine.high %v4392_v42, %v4392_v42  ;;  %v4408_v45 = vrot.slane %v4392_v42, %v7541_v52  ;;  %7048 = vmatpush3.msra.mxu0 %v7919_v33  ;;  %7055 = vmatpush3.msra.mxu1 %v7924_v34 }
 0x96f   : > { %7049 = vmatprep.subr.mxu0 %v7290_v4  ;;  %7056 = vmatprep.subr.mxu1 %v7290_v4 }
 0x970   : > { %v4401_v46 = vcombine.high %v4399_v43, %v4399_v43  ;;  %v4415_v48 = vrot.slane %v4399_v43, %v7541_v52  ;;  %v4422_v49 = vrot.slane %v4400_v44, %v7541_v52  ;;  %v4430_v27 = vcombine.high %v4408_v45, %v4408_v45  ;;  %4442 = vst.msk [vmem:[%s7570_s6 + $0xa] sm:$0x1] %vm681_vm8, %v4408_v45 }
 0x971   : > { %7050 = vmatpush3.msra.mxu0 %v7933_v35  ;;  %7057 = vmatpush3.msra.mxu1 %v7938_v36 }
 0x972   : > { %7051 = vmatprep.mubr.msk.f32.mxu0 %vm7291_vm1, %v7290_v4  ;;  %v4429_v53 = vrot.slane %v4401_v46, %v7541_v52  ;;  %v4431_v28 = vcombine.high %v4415_v48, %v4415_v48  ;;  %v4432_v54 = vcombine.high %v4422_v49, %v4422_v49  ;;  %4443 = vst.msk [vmem:[%s7570_s6 + $0x1a] sm:$0x1] %vm681_vm8, %v4422_v49  ;;  %4444 = vst.msk [vmem:[%s7570_s6 + $0x2a] sm:$0x1] %vm681_vm8, %v4430_v27 }
 0x973   : > { %4446 = vst.msk [vmem:[%s7570_s6 + $0x4a] sm:$0x1] %vm681_vm8, %v4415_v48  ;;  %7058 = vmatprep.mubr.msk.f32.mxu1 %vm7291_vm1, %v7290_v4  ;;  %7061 = vmatprep.subr.mxu0 %v7290_v4 }
 0x974   : > { %7066 = vmatprep.subr.mxu1 %v7290_v4  ;;  %v4433_v17 = vcombine.high %v4429_v53, %v4429_v53  ;;  %4445 = vst.msk [vmem:[%s7570_s6 + $0x3a] sm:$0x1] %vm681_vm8, %v4432_v54  ;;  %4447 = vst.msk [vmem:[%s7570_s6 + $0x5a] sm:$0x1] %vm681_vm8, %v4429_v53 }
 0x975   : > { %4448 = vst.msk [vmem:[%s7570_s6 + $0x6a] sm:$0x1] %vm681_vm8, %v4431_v28 }
 0x976   : > { %4449 = vst.msk [vmem:[%s7570_s6 + $0x7a] sm:$0x1] %vm681_vm8, %v4433_v17 }
 0xa29   : > { %v4671_v18 = vpop.f32.mrf.mxu0  ;;  %v4744_v55 = vpop.f32.mrf.mxu1 }
 0xa2a   : > { %v4745_v19 = vadd.f32 %v4744_v55, %v4671_v18 }
 0xa2b   : > { %v7029_v20 = vpop.f32.mrf.mxu0  ;;  %v7036_v56 = vpop.f32.mrf.mxu1 }
 0xa2c   : > { %v4748_v57 = vadd.f32 %v4745_v19, %v7532_v39 }
 0xa2d   : > { %v4904_v58 = vpop.f32.mrf.mxu0  ;;  %v4980_v59 = vpop.f32.mrf.mxu1 }
 0xa2e   : > { %vm4749_vm11 = vcmp.gt.f32.partialorder %v4748_v57, 0.0  ;;  %v4750_v60 = vmul.f32 %v4748_v57, %v7535_v47  ;;  %7052 = vmatmul.mubr.msk.f32.vlgmr.msra.gmra.mxu0 %vm466_vm6, %v4980_v59  ;;  %7059 = vmatmul.mubr.msk.f32.vlgmr.msra.gmra.mxu1 %vm466_vm6, %v4904_v58 }
 0xa2f   : > { %7062 = vmatpush3.msk.msra.mxu0 %vm314_vm4, %v4832_v29  ;;  %7067 = vmatpush3.msk.msra.mxu1 %vm314_vm4, %v4832_v29  ;;  %v7041_v61 = vpop.f32.mrf.mxu0  ;;  %v7046_v62 = vpop.f32.mrf.mxu1  ;;  %v5583_v29 = vrot.slane %v5573_v24, 5 }
 0xa30   : > { %v4751_v63 = vsel %vm4749_vm11, %v4748_v57, %v4750_v60  ;;  %7063 = vmatprep.mubr.msk.f32.mxu0 %vm7291_vm1, %v7290_v4  ;;  %7068 = vmatprep.mubr.msk.f32.mxu1 %vm7291_vm1, %v7290_v4 }
 0xa31   : > { %v4753_v0 = vcombine.high %v4751_v63, %v4751_v63  ;;  %v4760_v1 = vrot.slane %v4751_v63, %v7541_v52  ;;  %7071 = vmatprep.subr.mxu0 %v7290_v4  ;;  %7078 = vmatprep.subr.mxu1 %v7290_v4  ;;  %v5584_v42 = vsel %vm308_vm3, %v5583_v29, %v5582_v32 }
 0xa32   : > { %7064 = vmatmul.mubr.msk.f32.vlgmr.msra.gmra.mxu0 %vm310_vm5, %v7955_v50  ;;  %7069 = vmatmul.mubr.msk.f32.vlgmr.msra.gmra.mxu1 %vm310_vm5, %v7960_v51 }
 0xa33   : > { %v4767_v2 = vrot.slane %v4753_v0, %v7541_v52  ;;  %v4768_v3 = vcombine.high %v4760_v1, %v4760_v1  ;;  %v4776_v5 = vrot.slane %v4760_v1, %v7541_v52  ;;  %7072 = vmatpush3.msra.mxu0 %v7919_v33  ;;  %7079 = vmatpush3.msra.mxu1 %v7924_v34 }
 0xa34   : > { %7073 = vmatprep.subr.mxu0 %v7290_v4  ;;  %7080 = vmatprep.subr.mxu1 %v7290_v4 }
 0xa35   : > { %v4769_v6 = vcombine.high %v4767_v2, %v4767_v2  ;;  %v4783_v7 = vrot.slane %v4767_v2, %v7541_v52  ;;  %v4790_v8 = vrot.slane %v4768_v3, %v7541_v52  ;;  %v4798_v9 = vcombine.high %v4776_v5, %v4776_v5  ;;  %4810 = vst.msk [vmem:[%s7570_s6 + $0xb] sm:$0x1] %vm681_vm8, %v4776_v5 }
 0xa36   : > { %7074 = vmatpush3.msra.mxu0 %v7933_v35  ;;  %7081 = vmatpush3.msra.mxu1 %v7938_v36 }
 0xa37   : > { %7075 = vmatprep.mubr.msk.f32.mxu0 %vm7291_vm1, %v7290_v4  ;;  %v4797_v10 = vrot.slane %v4769_v6, %v7541_v52  ;;  %v4799_v11 = vcombine.high %v4783_v7, %v4783_v7  ;;  %v4800_v12 = vcombine.high %v4790_v8, %v4790_v8  ;;  %4811 = vst.msk [vmem:[%s7570_s6 + $0x1b] sm:$0x1] %vm681_vm8, %v4790_v8  ;;  %4812 = vst.msk [vmem:[%s7570_s6 + $0x2b] sm:$0x1] %vm681_vm8, %v4798_v9 }
 0xa38   : > { %4814 = vst.msk [vmem:[%s7570_s6 + $0x4b] sm:$0x1] %vm681_vm8, %v4783_v7  ;;  %7082 = vmatprep.mubr.msk.f32.mxu1 %vm7291_vm1, %v7290_v4  ;;  %7085 = vmatprep.subr.mxu0 %v7290_v4 }
 0xa39   : > { %7090 = vmatprep.subr.mxu1 %v7290_v4  ;;  %v4801_v13 = vcombine.high %v4797_v10, %v4797_v10  ;;  %4813 = vst.msk [vmem:[%s7570_s6 + $0x3b] sm:$0x1] %vm681_vm8, %v4800_v12  ;;  %4815 = vst.msk [vmem:[%s7570_s6 + $0x5b] sm:$0x1] %vm681_vm8, %v4797_v10 }
 0xa3a   : > { %4816 = vst.msk [vmem:[%s7570_s6 + $0x6b] sm:$0x1] %vm681_vm8, %v4799_v11 }
 0xa3b   : > { %4817 = vst.msk [vmem:[%s7570_s6 + $0x7b] sm:$0x1] %vm681_vm8, %v4801_v13 }
 0xaee   : > { %v5055_v30 = vpop.f32.mrf.mxu0  ;;  %v5128_v31 = vpop.f32.mrf.mxu1 }
 0xaef   : > { %v5129_v37 = vadd.f32 %v5128_v31, %v5055_v30 }
 0xaf0   : > { %v7053_v38 = vpop.f32.mrf.mxu0  ;;  %v7060_v40 = vpop.f32.mrf.mxu1 }
 0xaf1   : > { %v5132_v41 = vadd.f32 %v5129_v37, %v7532_v39 }
 0xaf2   : > { %v5272_v43 = vpop.f32.mrf.mxu0  ;;  %v5348_v44 = vpop.f32.mrf.mxu1 }
 0xaf3   : > { %vm5133_vm12 = vcmp.gt.f32.partialorder %v5132_v41, 0.0  ;;  %v5134_v45 = vmul.f32 %v5132_v41, %v7535_v47  ;;  %7076 = vmatmul.mubr.msk.f32.vlgmr.msra.gmra.mxu0 %vm466_vm6, %v5348_v44  ;;  %7083 = vmatmul.mubr.msk.f32.vlgmr.msra.gmra.mxu1 %vm466_vm6, %v5272_v43 }
 0xaf4   : > { %7086 = vmatpush3.msk.msra.mxu0 %vm314_vm4, %v5584_v42  ;;  %7091 = vmatpush3.msk.msra.mxu1 %vm314_vm4, %v5584_v42  ;;  %v7065_v46 = vpop.f32.mrf.mxu0  ;;  %v7070_v48 = vpop.f32.mrf.mxu1 }
 0xaf5   : > { %v5135_v49 = vsel %vm5133_vm12, %v5132_v41, %v5134_v45  ;;  %7087 = vmatprep.mubr.msk.f32.mxu0 %vm7291_vm1, %v7290_v4  ;;  %7092 = vmatprep.mubr.msk.f32.mxu1 %vm7291_vm1, %v7290_v4 }
 0xaf6   : > { %v5137_v27 = vcombine.high %v5135_v49, %v5135_v49  ;;  %v5144_v53 = vrot.slane %v5135_v49, %v7541_v52  ;;  %7095 = vmatprep.subr.mxu0 %v7290_v4  ;;  %7102 = vmatprep.subr.mxu1 %v7290_v4 }
 0xaf7   : > { %7088 = vmatmul.mubr.msk.f32.vlgmr.msra.gmra.mxu0 %vm310_vm5, %v8026_v14  ;;  %7093 = vmatmul.mubr.msk.f32.vlgmr.msra.gmra.mxu1 %vm310_vm5, %v8031_v25 }
 0xaf8   : > { %v5151_v28 = vrot.slane %v5137_v27, %v7541_v52  ;;  %v5152_v54 = vcombine.high %v5144_v53, %v5144_v53  ;;  %v5160_v17 = vrot.slane %v5144_v53, %v7541_v52  ;;  %7096 = vmatpush3.msra.mxu0 %v7919_v33  ;;  %7103 = vmatpush3.msra.mxu1 %v7924_v34 }
 0xaf9   : > { %7097 = vmatprep.subr.mxu0 %v7290_v4  ;;  %7104 = vmatprep.subr.mxu1 %v7290_v4 }
 0xafa   : > { %v5153_v14 = vcombine.high %v5151_v28, %v5151_v28  ;;  %v5167_v18 = vrot.slane %v5151_v28, %v7541_v52  ;;  %v5174_v25 = vrot.slane %v5152_v54, %v7541_v52  ;;  %v5182_v55 = vcombine.high %v5160_v17, %v5160_v17  ;;  %5194 = vst.msk [vmem:[%s7570_s6 + $0xc] sm:$0x1] %vm681_vm8, %v5160_v17 }
 0xafb   : > { %7098 = vmatpush3.msra.mxu0 %v7933_v35  ;;  %7105 = vmatpush3.msra.mxu1 %v7938_v36 }
 0xafc   : > { %7099 = vmatprep.mubr.msk.f32.mxu0 %vm7291_vm1, %v7290_v4  ;;  %v5181_v19 = vrot.slane %v5153_v14, %v7541_v52  ;;  %v5183_v20 = vcombine.high %v5167_v18, %v5167_v18  ;;  %v5184_v56 = vcombine.high %v5174_v25, %v5174_v25  ;;  %5195 = vst.msk [vmem:[%s7570_s6 + $0x1c] sm:$0x1] %vm681_vm8, %v5174_v25  ;;  %5196 = vst.msk [vmem:[%s7570_s6 + $0x2c] sm:$0x1] %vm681_vm8, %v5182_v55 }
 0xafd   : > { %5198 = vst.msk [vmem:[%s7570_s6 + $0x4c] sm:$0x1] %vm681_vm8, %v5167_v18  ;;  %7106 = vmatprep.mubr.msk.f32.mxu1 %vm7291_vm1, %v7290_v4  ;;  %7109 = vmatprep.subr.mxu0 %v7290_v4 }
 0xafe   : > { %7114 = vmatprep.subr.mxu1 %v7290_v4  ;;  %v5185_v57 = vcombine.high %v5181_v19, %v5181_v19  ;;  %5197 = vst.msk [vmem:[%s7570_s6 + $0x3c] sm:$0x1] %vm681_vm8, %v5184_v56  ;;  %5199 = vst.msk [vmem:[%s7570_s6 + $0x5c] sm:$0x1] %vm681_vm8, %v5181_v19 }
 0xaff   : > { %5200 = vst.msk [vmem:[%s7570_s6 + $0x6c] sm:$0x1] %vm681_vm8, %v5183_v20 }
 0xb00   : > { %5201 = vst.msk [vmem:[%s7570_s6 + $0x7c] sm:$0x1] %vm681_vm8, %v5185_v57 }
 0xbb3   : > { %v5423_v58 = vpop.f32.mrf.mxu0  ;;  %v5496_v59 = vpop.f32.mrf.mxu1 }
 0xbb4   : > { %v5497_v60 = vadd.f32 %v5496_v59, %v5423_v58 }
 0xbb5   : > { %v7077_v61 = vpop.f32.mrf.mxu0  ;;  %v7084_v62 = vpop.f32.mrf.mxu1 }
 0xbb6   : > { %v5500_v63 = vadd.f32 %v5497_v60, %v7532_v39 }
 0xbb7   : > { %v5656_v0 = vpop.f32.mrf.mxu0  ;;  %v5732_v1 = vpop.f32.mrf.mxu1 }
 0xbb8   : > { %vm5501_vm0 = vcmp.gt.f32.partialorder %v5500_v63, 0.0  ;;  %v5502_v2 = vmul.f32 %v5500_v63, %v7535_v47  ;;  %7100 = vmatmul.mubr.msk.f32.vlgmr.msra.gmra.mxu0 %vm466_vm6, %v5732_v1  ;;  %7107 = vmatmul.mubr.msk.f32.vlgmr.msra.gmra.mxu1 %vm466_vm6, %v5656_v0 }
 0xbb9   : > { %7110 = vmatpush3.msk.msra.mxu0 %vm314_vm4, %v5584_v42  ;;  %7115 = vmatpush3.msk.msra.mxu1 %vm314_vm4, %v5584_v42  ;;  %v7089_v3 = vpop.f32.mrf.mxu0  ;;  %v7094_v5 = vpop.f32.mrf.mxu1 }
 0xbba   : > { %v5503_v6 = vsel %vm5501_vm0, %v5500_v63, %v5502_v2  ;;  %7111 = vmatprep.mubr.msk.f32.mxu0 %vm7291_vm1, %v7290_v4  ;;  %7116 = vmatprep.mubr.msk.f32.mxu1 %vm7291_vm1, %v7290_v4 }
 0xbbb   : > { %v5505_v7 = vcombine.high %v5503_v6, %v5503_v6  ;;  %v5512_v8 = vrot.slane %v5503_v6, %v7541_v52  ;;  %7119 = vmatprep.subr.mxu0 %v7290_v4  ;;  %7126 = vmatprep.subr.mxu1 %v7290_v4 }
 0xbbc   : > { %7112 = vmatmul.mubr.msk.f32.vlgmr.msra.gmra.mxu0 %vm310_vm5, %v7955_v50  ;;  %7117 = vmatmul.mubr.msk.f32.vlgmr.msra.gmra.mxu1 %vm310_vm5, %v7960_v51 }
 0xbbd   : > { %v5519_v9 = vrot.slane %v5505_v7, %v7541_v52  ;;  %v5520_v10 = vcombine.high %v5512_v8, %v5512_v8  ;;  %v5528_v11 = vrot.slane %v5512_v8, %v7541_v52  ;;  %7120 = vmatpush3.msra.mxu0 %v7919_v33  ;;  %7127 = vmatpush3.msra.mxu1 %v7924_v34 }
 0xbbe   : > { %7121 = vmatprep.subr.mxu0 %v7290_v4  ;;  %7128 = vmatprep.subr.mxu1 %v7290_v4 }
 0xbbf   : > { %v5521_v50 = vcombine.high %v5519_v9, %v5519_v9  ;;  %v5535_v51 = vrot.slane %v5519_v9, %v7541_v52  ;;  %v5542_v12 = vrot.slane %v5520_v10, %v7541_v52  ;;  %v5550_v13 = vcombine.high %v5528_v11, %v5528_v11  ;;  %5562 = vst.msk [vmem:[%s7570_s6 + $0xd] sm:$0x1] %vm681_vm8, %v5528_v11 }
 0xbc0   : > { %7122 = vmatpush3.msra.mxu0 %v7933_v35  ;;  %7129 = vmatpush3.msra.mxu1 %v7938_v36 }
 0xbc1   : > { %7123 = vmatprep.mubr.msk.f32.mxu0 %vm7291_vm1, %v7290_v4  ;;  %v5549_v33 = vrot.slane %v5521_v50, %v7541_v52  ;;  %v5551_v34 = vcombine.high %v5535_v51, %v5535_v51  ;;  %v5552_v16 = vcombine.high %v5542_v12, %v5542_v12  ;;  %5563 = vst.msk [vmem:[%s7570_s6 + $0x1d] sm:$0x1] %vm681_vm8, %v5542_v12  ;;  %5564 = vst.msk [vmem:[%s7570_s6 + $0x2d] sm:$0x1] %vm681_vm8, %v5550_v13 }
 0xbc2   : > { %5566 = vst.msk [vmem:[%s7570_s6 + $0x4d] sm:$0x1] %vm681_vm8, %v5535_v51  ;;  %7130 = vmatprep.mubr.msk.f32.mxu1 %vm7291_vm1, %v7290_v4 }
 0xbc3   : > { %v5553_v21 = vcombine.high %v5549_v33, %v5549_v33  ;;  %5565 = vst.msk [vmem:[%s7570_s6 + $0x3d] sm:$0x1] %vm681_vm8, %v5552_v16  ;;  %5567 = vst.msk [vmem:[%s7570_s6 + $0x5d] sm:$0x1] %vm681_vm8, %v5549_v33 }
 0xbc4   : > { %5568 = vst.msk [vmem:[%s7570_s6 + $0x6d] sm:$0x1] %vm681_vm8, %v5551_v34 }
 0xbc5   : > { %5569 = vst.msk [vmem:[%s7570_s6 + $0x7d] sm:$0x1] %vm681_vm8, %v5553_v21 }
 0xc78   : > { %v5807_v35 = vpop.f32.mrf.mxu0  ;;  %v5880_v36 = vpop.f32.mrf.mxu1 }
 0xc79   : > { %v5881_v22 = vadd.f32 %v5880_v36, %v5807_v35 }
 0xc7a   : > { %v7101_v23 = vpop.f32.mrf.mxu0  ;;  %v7108_v24 = vpop.f32.mrf.mxu1 }
 0xc7b   : > { %v5884_v15 = vadd.f32 %v5881_v22, %v7532_v39 }
 0xc7c   : > { %v6024_v26 = vpop.f32.mrf.mxu0  ;;  %v6100_v29 = vpop.f32.mrf.mxu1 }
 0xc7d   : > { %vm5885_vm2 = vcmp.gt.f32.partialorder %v5884_v15, 0.0  ;;  %v5886_v4 = vmul.f32 %v5884_v15, %v7535_v47  ;;  %7124 = vmatmul.mubr.msk.f32.vlgmr.msra.gmra.mxu0 %vm466_vm6, %v6100_v29  ;;  %7131 = vmatmul.mubr.msk.f32.vlgmr.msra.gmra.mxu1 %vm466_vm6, %v6024_v26 }
 0xc7e   : > { %v7113_v30 = vpop.f32.mrf.mxu0  ;;  %v7118_v31 = vpop.f32.mrf.mxu1 }
 0xc7f   : > { %v5887_v32 = vsel %vm5885_vm2, %v5884_v15, %v5886_v4 }
 0xc80   : > { %v5889_v37 = vcombine.high %v5887_v32, %v5887_v32  ;;  %v5896_v38 = vrot.slane %v5887_v32, %v7541_v52 }
 0xc82   : > { %v5903_v40 = vrot.slane %v5889_v37, %v7541_v52  ;;  %v5904_v41 = vcombine.high %v5896_v38, %v5896_v38  ;;  %v5912_v42 = vrot.slane %v5896_v38, %v7541_v52 }
 0xc84   : > { %v5905_v43 = vcombine.high %v5903_v40, %v5903_v40  ;;  %v5919_v44 = vrot.slane %v5903_v40, %v7541_v52  ;;  %v5926_v45 = vrot.slane %v5904_v41, %v7541_v52  ;;  %v5934_v46 = vcombine.high %v5912_v42, %v5912_v42  ;;  %5946 = vst.msk [vmem:[%s7570_s6 + $0xe] sm:$0x1] %vm681_vm8, %v5912_v42 }
 0xc86   : > { %v5933_v48 = vrot.slane %v5905_v43, %v7541_v52  ;;  %v5935_v49 = vcombine.high %v5919_v44, %v5919_v44  ;;  %v5936_v27 = vcombine.high %v5926_v45, %v5926_v45  ;;  %5947 = vst.msk [vmem:[%s7570_s6 + $0x1e] sm:$0x1] %vm681_vm8, %v5926_v45  ;;  %5948 = vst.msk [vmem:[%s7570_s6 + $0x2e] sm:$0x1] %vm681_vm8, %v5934_v46 }
 0xc87   : > { %5950 = vst.msk [vmem:[%s7570_s6 + $0x4e] sm:$0x1] %vm681_vm8, %v5919_v44 }
 0xc88   : > { %v5937_v53 = vcombine.high %v5933_v48, %v5933_v48  ;;  %5949 = vst.msk [vmem:[%s7570_s6 + $0x3e] sm:$0x1] %vm681_vm8, %v5936_v27  ;;  %5951 = vst.msk [vmem:[%s7570_s6 + $0x5e] sm:$0x1] %vm681_vm8, %v5933_v48 }
 0xc89   : > { %5952 = vst.msk [vmem:[%s7570_s6 + $0x6e] sm:$0x1] %vm681_vm8, %v5935_v49 }
 0xc8a   : > { %5953 = vst.msk [vmem:[%s7570_s6 + $0x7e] sm:$0x1] %vm681_vm8, %v5937_v53 }
 0xd3d   : > { %v6175_v28 = vpop.f32.mrf.mxu0  ;;  %v6248_v54 = vpop.f32.mrf.mxu1 }
 0xd3e   : > { %v6249_v17 = vadd.f32 %v6248_v54, %v6175_v28 }
 0xd3f   : > { %v7125_v14 = vpop.f32.mrf.mxu0  ;;  %v7132_v18 = vpop.f32.mrf.mxu1 }
 0xd40   : > { %v6252_v25 = vadd.f32 %v6249_v17, %v7532_v39 }
 0xd42   : > { %vm6253_vm1 = vcmp.gt.f32.partialorder %v6252_v25, 0.0  ;;  %v6254_v55 = vmul.f32 %v6252_v25, %v7535_v47 }
 0xd44   : > { %v6255_v19 = vsel %vm6253_vm1, %v6252_v25, %v6254_v55 }
 0xd45   : > { %v6257_v20 = vcombine.high %v6255_v19, %v6255_v19  ;;  %v6264_v56 = vrot.slane %v6255_v19, %v7541_v52 }
 0xd47   : > { %v6271_v57 = vrot.slane %v6257_v20, %v7541_v52  ;;  %v6272_v58 = vcombine.high %v6264_v56, %v6264_v56  ;;  %v6280_v59 = vrot.slane %v6264_v56, %v7541_v52 }
 0xd49   : > { %v6273_v39 = vcombine.high %v6271_v57, %v6271_v57  ;;  %v6287_v60 = vrot.slane %v6271_v57, %v7541_v52  ;;  %v6294_v47 = vrot.slane %v6272_v58, %v7541_v52  ;;  %v6302_v61 = vcombine.high %v6280_v59, %v6280_v59  ;;  %6314 = vst.msk [vmem:[%s7570_s6 + $0xf] sm:$0x1] %vm681_vm8, %v6280_v59 }
 0xd4b   : > { %v6301_v62 = vrot.slane %v6273_v39, %v7541_v52  ;;  %v6303_v63 = vcombine.high %v6287_v60, %v6287_v60  ;;  %v6304_v0 = vcombine.high %v6294_v47, %v6294_v47  ;;  %6315 = vst.msk [vmem:[%s7570_s6 + $0x1f] sm:$0x1] %vm681_vm8, %v6294_v47  ;;  %6316 = vst.msk [vmem:[%s7570_s6 + $0x2f] sm:$0x1] %vm681_vm8, %v6302_v61 }
 0xd4c   : > { %6318 = vst.msk [vmem:[%s7570_s6 + $0x4f] sm:$0x1] %vm681_vm8, %v6287_v60 }
 0xd4d   : > { %v6305_v1 = vcombine.high %v6301_v62, %v6301_v62  ;;  %6317 = vst.msk [vmem:[%s7570_s6 + $0x3f] sm:$0x1] %vm681_vm8, %v6304_v0  ;;  %6319 = vst.msk [vmem:[%s7570_s6 + $0x5f] sm:$0x1] %vm681_vm8, %v6301_v62 }
 0xd4e   : > { %6320 = vst.msk [vmem:[%s7570_s6 + $0x6f] sm:$0x1] %vm681_vm8, %v6303_v63 }
 0xd4f   : > { %6321 = vst.msk [vmem:[%s7570_s6 + $0x7f] sm:$0x1] %vm681_vm8, %v6305_v1 }
 0xd50   : > { %s6584_s18 = sshll.u32 %s7272_s23, 1  ;;  %s6585_s19 = sshll.u32 %s7276_s24, 5 }
 0xd51   : > { %s6335_s4 = sadd.s32 %s6585_s19, %s6584_s18  ;;  %s6348_s28 = sshll.u32 %s7570_s6, 4  ;;  %s6349_s28 = int_to_ptr.vmem [resolvable:$true] %s6348_s28 }
 0xd52   : > { %s6586_s10 = sshll.u32 %s6335_s4, 7  ;;  %s7294_s15 = smov 256  }
 0xd53   : > { %s6337_s7 = scalar_lea.hbm %s8445_s5, %s6586_s10  ;;  %7133 = sst [smem:[#allocation7]] (%p7394_p8), %s7294_s15 }
 0xd54   : > { %s7295_s16 = smov 512   ;;  %s7296_s17 = smov 2  }
 0xd55   : > { %7134 = sst [smem:[#allocation7 + $0x1]] (%p7394_p8), %s7295_s16  ;;  %s7297_s23 = smov 128  }
 0xd56   : > { %7135 = sst [smem:[#allocation7 + $0x2]] (%p7394_p8), %s7296_s17  ;;  %s7298_s24 = smov 8  }
 0xd57   : > { %7136 = sst [smem:[#allocation7 + $0x3]] (%p7394_p8), %s7297_s23  ;;  %s7299_s6 = smov 131072  }
 0xd58   : > { %7137 = sst [smem:[#allocation7 + $0x4]] (%p7394_p8), %s7297_s23  ;;  %s7300_s18 = smov 0  }
 0xd59   : > { %7138 = sst [smem:[#allocation7 + $0x5]] (%p7394_p8), %s7298_s24 }
 0xd5a   : > { %7139 = dma.general (%p7394_p8), %s6349_s28, 2048, %s6337_s7, %s6323_s11, %s7299_s6, [#allocation7], %s7300_s18, 0  }
 0xd5b PF: > { %p7145_p1 = scmp.ge.s32.totalorder %s7288_s27, 2  ;;  %s6376_s19 = sand.u32 1, %s7260_s20  }
 0xd5c   : > { %s6377_s4 = scalar_lea.sflag [#allocation5], %s6376_s19 }
 0xd5d   : > { %p7142_p2 = pnand %p7145_p1, %p7398_p9 }
 0xd5f   : > { %p7143_p3 = pneg %p7142_p2 }
 0xd61   : > { %7255 = dma.done.wait (%p7143_p3), %s6377_s4, 2048  }
 0xd62   : > { %7257 = vsyncadd (%p7143_p3), %s6377_s4, 4294965248  ;;  %s19_s27 = sadd.s32 1, %s7288_s27   ;;  %s8449_s20 = smov %s7264_s21 }
 0xd63   : > { %p16_p4 = scmp.ge.s32.totalorder %s19_s27, 6   ;;  %s8450_s21 = smov %s7268_s22 }
 0xd64   : > { %s8451_s22 = smov %s7406_s13  ;;  %s8452_s23 = smov %s7280_s25 }
 0xd65   : > { %s8453_s24 = smov %s7284_s26  ;;  %s8454_s25 = smov %s8457_s29 }
 0xd66   : > { %s8455_s26 = smov %s8461_s30  ;;  %18 = sbr.rel (!%p16_p4) target bundleno = 7 (0x7), region = 124 }
 0xd6b   :  { %6382 = vsyncpa [#allocation5], 1 }
 0xd6c   :  { %6384 = vsyncpa [#allocation5 + $0x1], 1 }

</bundles_post_ra>
